<compile_context>
chip_gen: v6e
topology: v6e:2x2x1
jax: 0.10.0
libtpu: 0.0.40
codegen_flags: <defaults>
</compile_context>

<pallas_src>
import functools

import jax
import jax.numpy as jnp
from jax import lax
from jax.experimental import pallas as pl
from jax.experimental.pallas import tpu as pltpu


def _round_up(x, m):
    return ((x + m - 1) // m) * m


def _round_down(x, m):
    return (x // m) * m


# ----------------------------------------------------------------------------
# Pallas kernel: per-point MLP (layers 1..L-1, BN-folded) -> ReLU -> max over K
# ----------------------------------------------------------------------------
def sa_mlp_kernel(x_ref, w_ref, b_ref, o_ref, *, layer_meta, k_neighbors, tile):
    """x_ref : (K, tile, c0_pad)  bf16  layer-0 activations, K-major rows
       w_ref : (R, cmax)          bf16  packed weight slab [W1; W2; ...], 16-row aligned
       b_ref : (Lk, cmax)         f32   one bias row per kernel layer
       o_ref : (tile, dout_pad)   bf16  lane-dense output (dout_pad multiple of 128)
    """
    K = k_neighbors
    n_layers = len(layer_meta)

    # Hidden layers (all but the last) run on the merged (K*tile, c) block so
    # the MXU sees a tall M.  Rows stay K-major, so later per-neighbor slices
    # are contiguous and sublane-aligned.  (Not exercised for a 2-layer MLP:
    # layer 0 was pre-projected in XLA, so the kernel holds only the last layer.)
    h = None
    if n_layers > 1:
        c0 = x_ref.shape[-1]
        h = x_ref[...].reshape(K * tile, c0)          # pure relabel: tile % 16 == 0
        for li in range(n_layers - 1):
            ws, in_pad, out_pad = layer_meta[li]
            w = w_ref[ws:ws + in_pad, :out_pad]       # static, 16-row aligned slice
            acc = jnp.dot(h, w, preferred_element_type=jnp.float32)
            acc = jnp.maximum(acc + b_ref[li:li + 1, :out_pad], 0.0)
            h = acc.astype(jnp.bfloat16)

    # Last layer fused with the neighbor max: per-neighbor sub-matmul into a
    # (tile, out_pad) f32 max-accumulator (no (K*tile, cmax) f32 intermediate).
    ws, in_pad, out_pad = layer_meta[-1]
    w_last = w_ref[ws:ws + in_pad, :out_pad]
    b_last = b_ref[n_layers - 1:n_layers, :out_pad]
    m = None
    for k in range(K):
        hk = x_ref[k] if n_layers == 1 else h[k * tile:(k + 1) * tile, :]
        acc = jnp.dot(hk, w_last, preferred_element_type=jnp.float32)
        acc = jnp.maximum(acc + b_last, 0.0)
        m = acc if m is None else jnp.maximum(m, acc)
    o_ref[...] = m.astype(o_ref.dtype)


# ----------------------------------------------------------------------------
# Weight/bias packing (kernel layers only; layer 0 is handled in XLA)
# ----------------------------------------------------------------------------
def _pack_kernel_params(kernel_weights, kernel_biases, c0_pad, cmax):
    """Pack weights into one (R, cmax) bf16 slab with 16-row-aligned segments;
    biases into a tiny (Lk, cmax) f32 slab.  Per-layer padded output width
    (multiple of 128) is recorded so narrow intermediates are not dragged up
    to the widest layer's width."""
    segs, meta, r = [], [], 0
    in_pad = c0_pad                                   # multiple of 16 by construction
    for w in kernel_weights:
        in_l, out_l = w.shape
        out_pad = _round_up(max(out_l, 128), 128)
        wp = jnp.zeros((in_pad, cmax), jnp.float32).at[:in_l, :out_l].set(w)
        meta.append((r, in_pad, out_pad))
        segs.append(wp)
        r += in_pad
        in_pad = out_pad
    w_slab = jnp.concatenate(segs, axis=0).astype(jnp.bfloat16)

    Lk = len(kernel_biases)
    b_slab = jnp.zeros((Lk, cmax), jnp.float32)
    for li, b in enumerate(kernel_biases):
        bf = jnp.reshape(b, (-1,))
        b_slab = b_slab.at[li, :bf.shape[0]].set(bf)
    return w_slab, b_slab, tuple(meta), r


# ----------------------------------------------------------------------------
# Generation-aware tile / VMEM sizing
# ----------------------------------------------------------------------------
def _vmem_budget_bytes():
    cap = 64 * 1024 * 1024                            # conservative default (v7x-class)
    try:
        cap = int(getattr(pltpu.get_tpu_info(), "vmem_capacity_bytes", cap))
    except Exception:
        pass
    if cap <= 64 * 1024 * 1024:                       # v7x: 64 MiB physical VMEM
        return 22 * 1024 * 1024, 48 * 1024 * 1024
    return 48 * 1024 * 1024, 96 * 1024 * 1024         # v5e / v6e: 128 MiB physical


def _choose_tile(n_points, K, c0_lanes, hid_lanes, dout_lanes,
                 resident_bytes, vmem_budget):
    """Points-per-step tile: big enough to amortize ~0.35us/step (target ~2048
    K-major rows/step), small enough to fit the VMEM budget, capped so the
    grid has >= 2 steps (v7x megacore).  Always a multiple of 128."""
    per_pt = (2 * K * c0_lanes * 2        # bf16 input block, double-buffered
              + 2 * dout_lanes * 2        # bf16 output block, double-buffered
              + 2 * dout_lanes * 4        # f32 max accumulator + per-k acc
              + K * hid_lanes * 6)        # merged hidden act (bf16) + f32 acc
    avail = max(vmem_budget - resident_bytes, per_pt * 128)
    cap_vmem = max(128, _round_down(avail // per_pt, 128))
    want = max(128, _round_up(-(-2048 // K), 128))
    bsp_min = _round_up(max(n_points, 1), 128)
    cap_grid = max(128, _round_down(bsp_min // 2, 128))
    return max(128, min(want, cap_vmem, cap_grid))


# ----------------------------------------------------------------------------
# Wrapper: layer-0 pre-projection (XLA) + Pallas MLP/max-pool kernel
# ----------------------------------------------------------------------------
def pointnet_mlp_maxpool(grouped, weights, biases):
    """grouped: (BS, K, Din) float32 -> (BS, Dout) float32."""
    BS, K, Din = grouped.shape
    assert len(weights) >= 2, "expect at least two MLP layers"
    Dout = weights[-1].shape[1]

    # --- Layer 0 in XLA: gets the contraction-depth-6 matmul off the MXU and
    #     emits the kernel's K-major, dense 32-channel bf16 input in one pass.
    w0, b0 = weights[0], biases[0]
    C0 = w0.shape[1]
    h0 = jnp.maximum(
        jnp.einsum('pkd,dc->kpc', grouped, w0,
                   preferred_element_type=jnp.float32)
        + jnp.reshape(b0, (1, 1, C0)), 0.0)           # (K, BS, C0) f32
    h0 = h0.astype(jnp.bfloat16)

    c0_pad = _round_up(max(C0, 16), 16)
    kernel_weights, kernel_biases = weights[1:], biases[1:]
    cmax = max(_round_up(max(w.shape[1] for w in kernel_weights), 128), 128)
    dout_pad = _round_up(max(Dout, 128), 128)

    w_slab, b_slab, layer_meta, R = _pack_kernel_params(
        kernel_weights, kernel_biases, c0_pad, cmax)
    Lk = len(kernel_weights)

    hid_lanes = 0
    if Lk > 1:
        hid_lanes = max(out_pad for (_, _, out_pad) in layer_meta[:-1])
    resident_bytes = 2 * (R * cmax * 2 + Lk * cmax * 4)   # conservative (2x buffered)
    budget, vmem_limit = _vmem_budget_bytes()
    tile = _choose_tile(BS, K, _round_up(c0_pad, 128), hid_lanes, dout_pad,
                        resident_bytes, budget)

    BSp = _round_up(BS, tile)
    # Pad points (ragged last tile) and channels; usually a no-op.
    x = jnp.pad(h0, ((0, 0), (0, BSp - BS), (0, c0_pad - C0)))

    kernel = functools.partial(sa_mlp_kernel, layer_meta=layer_meta,
                               k_neighbors=K, tile=tile)
    flops = 2 * BSp * K * sum(ip * op for (_, ip, op) in layer_meta)
    cost = pl.CostEstimate(
        flops=flops, transcendentals=0,
        bytes_accessed=int(x.size * 2 + w_slab.size * 2 + b_slab.size * 4
                           + BSp * dout_pad * 2))

    def _run(single_buffer_slabs):
        res_kw = dict(pipeline_mode=pl.Buffered(1)) if single_buffer_slabs else {}
        return pl.pallas_call(
            kernel,
            out_shape=jax.ShapeDtypeStruct((BSp, dout_pad), jnp.bfloat16),
            grid_spec=pltpu.PrefetchScalarGridSpec(
                num_scalar_prefetch=0,
                grid=(BSp // tile,),
                in_specs=[
                    pl.BlockSpec((K, tile, c0_pad), lambda i: (0, i, 0)),
                    pl.BlockSpec((R, cmax), lambda i: (0, 0), **res_kw),
                    pl.BlockSpec((Lk, cmax), lambda i: (0, 0), **res_kw),
                ],
                out_specs=pl.BlockSpec((tile, dout_pad), lambda i: (i, 0)),
            ),
            compiler_params=pltpu.CompilerParams(
                dimension_semantics=("parallel",),
                vmem_limit_bytes=vmem_limit,
            ),
            cost_estimate=cost,
        )(x, w_slab, b_slab)

    try:
        out = _run(True)
    except Exception:
        # Fallback for JAX builds where BlockSpec(pipeline_mode=...) is unsupported.
        out = _run(False)
    return out[:BS, :Dout].astype(jnp.float32)


# ----------------------------------------------------------------------------
# Plain-JAX glue: farthest point sampling, ball query, grouping
# ----------------------------------------------------------------------------
def farthest_point_sampler(pos, npoints, start_idx=0):
    """pos: (B, N, 3) -> (B, npoints) int32 indices (deterministic start)."""
    # TODO(synk): this 'npoints'-step sequential lax.scan dominates module
    # latency for small MLPs; kernelizing/batching FPS is the next big win.
    B, N, _ = pos.shape

    def body(carry, _):
        dist, last_idx = carry
        last_pos = pos[jnp.arange(B), last_idx]                   # (B, 3)
        d = jnp.sum((pos - last_pos[:, None, :]) ** 2, axis=-1)   # (B, N)
        dist = jnp.minimum(dist, d)
        nxt = jnp.argmax(dist, axis=1).astype(jnp.int32)
        return (dist, nxt), last_idx

    init = (jnp.full((B, N), jnp.inf, dtype=jnp.float32),
            jnp.full((B,), start_idx, dtype=jnp.int32))
    (_, _), idxs = lax.scan(body, init, None, length=npoints)
    return idxs.T                                                 # (B, npoints)


def ball_query(pos, centroids, radius, n_neighbor):
    """Matches FixedRadiusNearNeighbors.forward semantics."""
    B, N, _ = pos.shape
    center_pos = pos[jnp.arange(B)[:, None], centroids]           # (B, S, 3)
    sqrdists = (-2.0 * jnp.einsum('bsd,bnd->bsn', center_pos, pos)
                + jnp.sum(center_pos ** 2, -1)[:, :, None]
                + jnp.sum(pos ** 2, -1)[:, None, :])              # (B, S, N)
    arange = jnp.arange(N, dtype=jnp.int32)[None, None, :]
    gidx = jnp.where(sqrdists > radius ** 2, N, arange)
    gidx = jnp.sort(gidx, axis=-1)[:, :, :n_neighbor]
    first = gidx[:, :, :1]
    gidx = jnp.where(gidx == N, first, gidx)
    return gidx                                                   # (B, S, K)


def sa_module_forward(pos, feat, weights, biases, *,
                      npoints, radius, n_neighbor):
    """Equivalent of SAModule.forward (group_all=False)."""
    B, N, _ = pos.shape
    centroids = farthest_point_sampler(pos, npoints)
    # DGL node ids are sorted per graph -> centroid rows come out index-sorted.
    centroids = jnp.sort(centroids, axis=1)

    group_idx = ball_query(pos, centroids, radius, n_neighbor)    # (B, S, K)
    bidx = jnp.arange(B)[:, None, None]
    center_pos = pos[jnp.arange(B)[:, None], centroids]           # (B, S, 3)
    rel_pos = pos[bidx, group_idx] - center_pos[:, :, None, :]    # (B, S, K, 3)
    grouped = jnp.concatenate([rel_pos, feat[bidx, group_idx]], axis=-1)
    BS = B * npoints
    grouped = grouped.reshape(BS, n_neighbor, -1).astype(jnp.float32)

    new_feat = pointnet_mlp_maxpool(grouped, weights, biases)
    new_feat = new_feat.reshape(B, npoints, -1)
    return center_pos, new_feat, grouped


# ----------------------------------------------------------------------------
# Deterministic parameter construction (Conv2d 1x1 + eval-mode BatchNorm fold)
# ----------------------------------------------------------------------------
def make_params(key, mlp_sizes, eps=1e-5):
    weights, biases = [], []
    for i in range(1, len(mlp_sizes)):
        cin, cout = mlp_sizes[i - 1], mlp_sizes[i]
        key, k1, k2, k3, k4, k5, k6 = jax.random.split(key, 7)
        w_conv = jax.random.normal(k1, (cout, cin), jnp.float32) * 0.2
        b_conv = jax.random.normal(k2, (cout,), jnp.float32) * 0.1
        gamma = jax.random.uniform(k3, (cout,), jnp.float32, 0.5, 1.5)
        beta = jax.random.normal(k4, (cout,), jnp.float32) * 0.1
        mean = jax.random.normal(k5, (cout,), jnp.float32) * 0.1
        var = jax.random.uniform(k6, (cout,), jnp.float32, 0.5, 1.5)
        # TODO(synk): BatchNorm is folded in eval mode (running stats); the
        # PyTorch module in train mode would use batch statistics instead.
        s = gamma / jnp.sqrt(var + eps)
        w_eff = (s[:, None] * w_conv).T                 # (cin, cout)
        b_eff = (s * (b_conv - mean) + beta)[None, :]   # (1, cout)
        weights.append(w_eff)
        biases.append(b_eff)
    return weights, biases


if __name__ == "__main__":
    B, N, C_pos, C_feat = 4, 512, 3, 3
    npoints, n_neighbor, radius = 256, 16, 0.25
    mlp_sizes = [C_pos + C_feat, 32, 64]

    key = jax.random.PRNGKey(0)
    kp, kf, kw = jax.random.split(key, 3)
    pos = jax.random.uniform(kp, (B, N, C_pos), jnp.float32)
    feat = jax.random.normal(kf, (B, N, C_feat), jnp.float32)
    weights, biases = make_params(kw, mlp_sizes)

    pos_res, feat_res, grouped = sa_module_forward(
        pos, feat, weights, biases,
        npoints=npoints, radius=radius, n_neighbor=n_neighbor)
    jax.block_until_ready((pos_res, feat_res))

    # Pure-JAX reference for the hot path with the same precision choices:
    # layer 0 in f32, later layers bf16 operands / f32 accumulation, f32 bias,
    # f32 ReLU/max, bf16 output rounding.
    def mlp_ref(g, ws, bs):
        BSr, Kr, Dr = g.shape
        h = jnp.maximum(g.reshape(-1, Dr) @ ws[0] + jnp.reshape(bs[0], (1, -1)), 0.0)
        h = h.astype(jnp.bfloat16)
        for li in range(1, len(ws)):
            wq = ws[li].astype(jnp.bfloat16)
            acc = jnp.dot(h, wq, preferred_element_type=jnp.float32)
            acc = jnp.maximum(acc + jnp.reshape(bs[li], (1, -1)), 0.0)
            h = acc.astype(jnp.bfloat16) if li < len(ws) - 1 else acc
        h = h.reshape(BSr, Kr, -1).max(axis=1)
        return h.astype(jnp.bfloat16).astype(jnp.float32)

    ref = mlp_ref(grouped, weights, biases).reshape(B, npoints, -1)

    assert pos_res.shape == (B, npoints, C_pos)
    assert feat_res.shape == (B, npoints, mlp_sizes[-1])
    # bf16 matmul operands / bf16 output -> compare at bf16-level tolerance.
    assert jnp.allclose(feat_res, ref, atol=2e-2, rtol=2e-2)

    print("KERNEL_OK")
</pallas_src>

<mosaic_0001>
module attributes {stable_mosaic.version = 11 : i64} {
  func.func @sa_mlp_kernel(%arg0: i32, %arg1: memref<16x128x32xbf16, #tpu.memory_space<vmem>>, %arg2: memref<32x128xbf16, #tpu.memory_space<vmem>>, %arg3: memref<1x128xf32, #tpu.memory_space<vmem>>, %arg4: memref<128x128xbf16, #tpu.memory_space<vmem>>) attributes {dimension_semantics = [#tpu.dimension_semantics<parallel>], iteration_bounds = array<i64: 8>, scalar_prefetch = 0 : i64, scratch_operands = 0 : i64, tpu.core_type = #tpu.core_type<tc>, window_params = [{transform_indices = @transform_0, window_bounds = array<i64: 16, 128, 32>}, {pipeline_mode = #tpu.pipeline_mode<synchronous>, transform_indices = @transform_1, window_bounds = array<i64: 32, 128>}, {pipeline_mode = #tpu.pipeline_mode<synchronous>, transform_indices = @transform_2, window_bounds = array<i64: 1, 128>}, {transform_indices = @transform_3, window_bounds = array<i64: 128, 128>}]} {
    %c0 = arith.constant 0 : index
    %c0_0 = arith.constant 0 : index
    %0 = vector.load %arg2[%c0, %c0_0] : memref<32x128xbf16, #tpu.memory_space<vmem>>, vector<32x128xbf16>
    %c0_1 = arith.constant 0 : index
    %c0_2 = arith.constant 0 : index
    %1 = vector.load %arg3[%c0_1, %c0_2] : memref<1x128xf32, #tpu.memory_space<vmem>>, vector<1x128xf32>
    %c0_3 = arith.constant 0 : index
    %c0_4 = arith.constant 0 : index
    %c0_5 = arith.constant 0 : index
    %2 = vector.load %arg1[%c0_3, %c0_4, %c0_5] : memref<16x128x32xbf16, #tpu.memory_space<vmem>>, vector<1x128x32xbf16>
    %3 = vector.shape_cast %2 : vector<1x128x32xbf16> to vector<128x32xbf16>
    %cst = arith.constant dense<0.000000e+00> : vector<128x128xf32>
    %4 = tpu.matmul %3, %0, %cst {dimension_numbers = #tpu.dot_dimension_numbers<[1], [0], [0], [1], [0, 0, 1, 1], [], []>} : vector<128x32xbf16>, vector<32x128xbf16>, vector<128x128xf32> -> vector<128x128xf32>
    %5 = vector.broadcast %1 : vector<1x128xf32> to vector<128x128xf32>
    %6 = arith.addf %4, %5 : vector<128x128xf32>
    %cst_6 = arith.constant 0.000000e+00 : f32
    %7 = vector.broadcast %cst_6 : f32 to vector<128x128xf32>
    %8 = arith.maximumf %6, %7 : vector<128x128xf32>
    %c1 = arith.constant 1 : index
    %c0_7 = arith.constant 0 : index
    %c0_8 = arith.constant 0 : index
    %9 = vector.load %arg1[%c1, %c0_7, %c0_8] : memref<16x128x32xbf16, #tpu.memory_space<vmem>>, vector<1x128x32xbf16>
    %10 = vector.shape_cast %9 : vector<1x128x32xbf16> to vector<128x32xbf16>
    %cst_9 = arith.constant dense<0.000000e+00> : vector<128x128xf32>
    %11 = tpu.matmul %10, %0, %cst_9 {dimension_numbers = #tpu.dot_dimension_numbers<[1], [0], [0], [1], [0, 0, 1, 1], [], []>} : vector<128x32xbf16>, vector<32x128xbf16>, vector<128x128xf32> -> vector<128x128xf32>
    %12 = vector.broadcast %1 : vector<1x128xf32> to vector<128x128xf32>
    %13 = arith.addf %11, %12 : vector<128x128xf32>
    %cst_10 = arith.constant 0.000000e+00 : f32
    %14 = vector.broadcast %cst_10 : f32 to vector<128x128xf32>
    %15 = arith.maximumf %13, %14 : vector<128x128xf32>
    %16 = arith.maximumf %8, %15 : vector<128x128xf32>
    %c2 = arith.constant 2 : index
    %c0_11 = arith.constant 0 : index
    %c0_12 = arith.constant 0 : index
    %17 = vector.load %arg1[%c2, %c0_11, %c0_12] : memref<16x128x32xbf16, #tpu.memory_space<vmem>>, vector<1x128x32xbf16>
    %18 = vector.shape_cast %17 : vector<1x128x32xbf16> to vector<128x32xbf16>
    %cst_13 = arith.constant dense<0.000000e+00> : vector<128x128xf32>
    %19 = tpu.matmul %18, %0, %cst_13 {dimension_numbers = #tpu.dot_dimension_numbers<[1], [0], [0], [1], [0, 0, 1, 1], [], []>} : vector<128x32xbf16>, vector<32x128xbf16>, vector<128x128xf32> -> vector<128x128xf32>
    %20 = vector.broadcast %1 : vector<1x128xf32> to vector<128x128xf32>
    %21 = arith.addf %19, %20 : vector<128x128xf32>
    %cst_14 = arith.constant 0.000000e+00 : f32
    %22 = vector.broadcast %cst_14 : f32 to vector<128x128xf32>
    %23 = arith.maximumf %21, %22 : vector<128x128xf32>
    %24 = arith.maximumf %16, %23 : vector<128x128xf32>
    %c3 = arith.constant 3 : index
    %c0_15 = arith.constant 0 : index
    %c0_16 = arith.constant 0 : index
    %25 = vector.load %arg1[%c3, %c0_15, %c0_16] : memref<16x128x32xbf16, #tpu.memory_space<vmem>>, vector<1x128x32xbf16>
    %26 = vector.shape_cast %25 : vector<1x128x32xbf16> to vector<128x32xbf16>
    %cst_17 = arith.constant dense<0.000000e+00> : vector<128x128xf32>
    %27 = tpu.matmul %26, %0, %cst_17 {dimension_numbers = #tpu.dot_dimension_numbers<[1], [0], [0], [1], [0, 0, 1, 1], [], []>} : vector<128x32xbf16>, vector<32x128xbf16>, vector<128x128xf32> -> vector<128x128xf32>
    %28 = vector.broadcast %1 : vector<1x128xf32> to vector<128x128xf32>
    %29 = arith.addf %27, %28 : vector<128x128xf32>
    %cst_18 = arith.constant 0.000000e+00 : f32
    %30 = vector.broadcast %cst_18 : f32 to vector<128x128xf32>
    %31 = arith.maximumf %29, %30 : vector<128x128xf32>
    %32 = arith.maximumf %24, %31 : vector<128x128xf32>
    %c4 = arith.constant 4 : index
    %c0_19 = arith.constant 0 : index
    %c0_20 = arith.constant 0 : index
    %33 = vector.load %arg1[%c4, %c0_19, %c0_20] : memref<16x128x32xbf16, #tpu.memory_space<vmem>>, vector<1x128x32xbf16>
    %34 = vector.shape_cast %33 : vector<1x128x32xbf16> to vector<128x32xbf16>
    %cst_21 = arith.constant dense<0.000000e+00> : vector<128x128xf32>
    %35 = tpu.matmul %34, %0, %cst_21 {dimension_numbers = #tpu.dot_dimension_numbers<[1], [0], [0], [1], [0, 0, 1, 1], [], []>} : vector<128x32xbf16>, vector<32x128xbf16>, vector<128x128xf32> -> vector<128x128xf32>
    %36 = vector.broadcast %1 : vector<1x128xf32> to vector<128x128xf32>
    %37 = arith.addf %35, %36 : vector<128x128xf32>
    %cst_22 = arith.constant 0.000000e+00 : f32
    %38 = vector.broadcast %cst_22 : f32 to vector<128x128xf32>
    %39 = arith.maximumf %37, %38 : vector<128x128xf32>
    %40 = arith.maximumf %32, %39 : vector<128x128xf32>
    %c5 = arith.constant 5 : index
    %c0_23 = arith.constant 0 : index
    %c0_24 = arith.constant 0 : index
    %41 = vector.load %arg1[%c5, %c0_23, %c0_24] : memref<16x128x32xbf16, #tpu.memory_space<vmem>>, vector<1x128x32xbf16>
    %42 = vector.shape_cast %41 : vector<1x128x32xbf16> to vector<128x32xbf16>
    %cst_25 = arith.constant dense<0.000000e+00> : vector<128x128xf32>
    %43 = tpu.matmul %42, %0, %cst_25 {dimension_numbers = #tpu.dot_dimension_numbers<[1], [0], [0], [1], [0, 0, 1, 1], [], []>} : vector<128x32xbf16>, vector<32x128xbf16>, vector<128x128xf32> -> vector<128x128xf32>
    %44 = vector.broadcast %1 : vector<1x128xf32> to vector<128x128xf32>
    %45 = arith.addf %43, %44 : vector<128x128xf32>
    %cst_26 = arith.constant 0.000000e+00 : f32
    %46 = vector.broadcast %cst_26 : f32 to vector<128x128xf32>
    %47 = arith.maximumf %45, %46 : vector<128x128xf32>
    %48 = arith.maximumf %40, %47 : vector<128x128xf32>
    %c6 = arith.constant 6 : index
    %c0_27 = arith.constant 0 : index
    %c0_28 = arith.constant 0 : index
    %49 = vector.load %arg1[%c6, %c0_27, %c0_28] : memref<16x128x32xbf16, #tpu.memory_space<vmem>>, vector<1x128x32xbf16>
    %50 = vector.shape_cast %49 : vector<1x128x32xbf16> to vector<128x32xbf16>
    %cst_29 = arith.constant dense<0.000000e+00> : vector<128x128xf32>
    %51 = tpu.matmul %50, %0, %cst_29 {dimension_numbers = #tpu.dot_dimension_numbers<[1], [0], [0], [1], [0, 0, 1, 1], [], []>} : vector<128x32xbf16>, vector<32x128xbf16>, vector<128x128xf32> -> vector<128x128xf32>
    %52 = vector.broadcast %1 : vector<1x128xf32> to vector<128x128xf32>
    %53 = arith.addf %51, %52 : vector<128x128xf32>
    %cst_30 = arith.constant 0.000000e+00 : f32
    %54 = vector.broadcast %cst_30 : f32 to vector<128x128xf32>
    %55 = arith.maximumf %53, %54 : vector<128x128xf32>
    %56 = arith.maximumf %48, %55 : vector<128x128xf32>
    %c7 = arith.constant 7 : index
    %c0_31 = arith.constant 0 : index
    %c0_32 = arith.constant 0 : index
    %57 = vector.load %arg1[%c7, %c0_31, %c0_32] : memref<16x128x32xbf16, #tpu.memory_space<vmem>>, vector<1x128x32xbf16>
    %58 = vector.shape_cast %57 : vector<1x128x32xbf16> to vector<128x32xbf16>
    %cst_33 = arith.constant dense<0.000000e+00> : vector<128x128xf32>
    %59 = tpu.matmul %58, %0, %cst_33 {dimension_numbers = #tpu.dot_dimension_numbers<[1], [0], [0], [1], [0, 0, 1, 1], [], []>} : vector<128x32xbf16>, vector<32x128xbf16>, vector<128x128xf32> -> vector<128x128xf32>
    %60 = vector.broadcast %1 : vector<1x128xf32> to vector<128x128xf32>
    %61 = arith.addf %59, %60 : vector<128x128xf32>
    %cst_34 = arith.constant 0.000000e+00 : f32
    %62 = vector.broadcast %cst_34 : f32 to vector<128x128xf32>
    %63 = arith.maximumf %61, %62 : vector<128x128xf32>
    %64 = arith.maximumf %56, %63 : vector<128x128xf32>
    %c8 = arith.constant 8 : index
    %c0_35 = arith.constant 0 : index
    %c0_36 = arith.constant 0 : index
    %65 = vector.load %arg1[%c8, %c0_35, %c0_36] : memref<16x128x32xbf16, #tpu.memory_space<vmem>>, vector<1x128x32xbf16>
    %66 = vector.shape_cast %65 : vector<1x128x32xbf16> to vector<128x32xbf16>
    %cst_37 = arith.constant dense<0.000000e+00> : vector<128x128xf32>
    %67 = tpu.matmul %66, %0, %cst_37 {dimension_numbers = #tpu.dot_dimension_numbers<[1], [0], [0], [1], [0, 0, 1, 1], [], []>} : vector<128x32xbf16>, vector<32x128xbf16>, vector<128x128xf32> -> vector<128x128xf32>
    %68 = vector.broadcast %1 : vector<1x128xf32> to vector<128x128xf32>
    %69 = arith.addf %67, %68 : vector<128x128xf32>
    %cst_38 = arith.constant 0.000000e+00 : f32
    %70 = vector.broadcast %cst_38 : f32 to vector<128x128xf32>
    %71 = arith.maximumf %69, %70 : vector<128x128xf32>
    %72 = arith.maximumf %64, %71 : vector<128x128xf32>
    %c9 = arith.constant 9 : index
    %c0_39 = arith.constant 0 : index
    %c0_40 = arith.constant 0 : index
    %73 = vector.load %arg1[%c9, %c0_39, %c0_40] : memref<16x128x32xbf16, #tpu.memory_space<vmem>>, vector<1x128x32xbf16>
    %74 = vector.shape_cast %73 : vector<1x128x32xbf16> to vector<128x32xbf16>
    %cst_41 = arith.constant dense<0.000000e+00> : vector<128x128xf32>
    %75 = tpu.matmul %74, %0, %cst_41 {dimension_numbers = #tpu.dot_dimension_numbers<[1], [0], [0], [1], [0, 0, 1, 1], [], []>} : vector<128x32xbf16>, vector<32x128xbf16>, vector<128x128xf32> -> vector<128x128xf32>
    %76 = vector.broadcast %1 : vector<1x128xf32> to vector<128x128xf32>
    %77 = arith.addf %75, %76 : vector<128x128xf32>
    %cst_42 = arith.constant 0.000000e+00 : f32
    %78 = vector.broadcast %cst_42 : f32 to vector<128x128xf32>
    %79 = arith.maximumf %77, %78 : vector<128x128xf32>
    %80 = arith.maximumf %72, %79 : vector<128x128xf32>
    %c10 = arith.constant 10 : index
    %c0_43 = arith.constant 0 : index
    %c0_44 = arith.constant 0 : index
    %81 = vector.load %arg1[%c10, %c0_43, %c0_44] : memref<16x128x32xbf16, #tpu.memory_space<vmem>>, vector<1x128x32xbf16>
    %82 = vector.shape_cast %81 : vector<1x128x32xbf16> to vector<128x32xbf16>
    %cst_45 = arith.constant dense<0.000000e+00> : vector<128x128xf32>
    %83 = tpu.matmul %82, %0, %cst_45 {dimension_numbers = #tpu.dot_dimension_numbers<[1], [0], [0], [1], [0, 0, 1, 1], [], []>} : vector<128x32xbf16>, vector<32x128xbf16>, vector<128x128xf32> -> vector<128x128xf32>
    %84 = vector.broadcast %1 : vector<1x128xf32> to vector<128x128xf32>
    %85 = arith.addf %83, %84 : vector<128x128xf32>
    %cst_46 = arith.constant 0.000000e+00 : f32
    %86 = vector.broadcast %cst_46 : f32 to vector<128x128xf32>
    %87 = arith.maximumf %85, %86 : vector<128x128xf32>
    %88 = arith.maximumf %80, %87 : vector<128x128xf32>
    %c11 = arith.constant 11 : index
    %c0_47 = arith.constant 0 : index
    %c0_48 = arith.constant 0 : index
    %89 = vector.load %arg1[%c11, %c0_47, %c0_48] : memref<16x128x32xbf16, #tpu.memory_space<vmem>>, vector<1x128x32xbf16>
    %90 = vector.shape_cast %89 : vector<1x128x32xbf16> to vector<128x32xbf16>
    %cst_49 = arith.constant dense<0.000000e+00> : vector<128x128xf32>
    %91 = tpu.matmul %90, %0, %cst_49 {dimension_numbers = #tpu.dot_dimension_numbers<[1], [0], [0], [1], [0, 0, 1, 1], [], []>} : vector<128x32xbf16>, vector<32x128xbf16>, vector<128x128xf32> -> vector<128x128xf32>
    %92 = vector.broadcast %1 : vector<1x128xf32> to vector<128x128xf32>
    %93 = arith.addf %91, %92 : vector<128x128xf32>
    %cst_50 = arith.constant 0.000000e+00 : f32
    %94 = vector.broadcast %cst_50 : f32 to vector<128x128xf32>
    %95 = arith.maximumf %93, %94 : vector<128x128xf32>
    %96 = arith.maximumf %88, %95 : vector<128x128xf32>
    %c12 = arith.constant 12 : index
    %c0_51 = arith.constant 0 : index
    %c0_52 = arith.constant 0 : index
    %97 = vector.load %arg1[%c12, %c0_51, %c0_52] : memref<16x128x32xbf16, #tpu.memory_space<vmem>>, vector<1x128x32xbf16>
    %98 = vector.shape_cast %97 : vector<1x128x32xbf16> to vector<128x32xbf16>
    %cst_53 = arith.constant dense<0.000000e+00> : vector<128x128xf32>
    %99 = tpu.matmul %98, %0, %cst_53 {dimension_numbers = #tpu.dot_dimension_numbers<[1], [0], [0], [1], [0, 0, 1, 1], [], []>} : vector<128x32xbf16>, vector<32x128xbf16>, vector<128x128xf32> -> vector<128x128xf32>
    %100 = vector.broadcast %1 : vector<1x128xf32> to vector<128x128xf32>
    %101 = arith.addf %99, %100 : vector<128x128xf32>
    %cst_54 = arith.constant 0.000000e+00 : f32
    %102 = vector.broadcast %cst_54 : f32 to vector<128x128xf32>
    %103 = arith.maximumf %101, %102 : vector<128x128xf32>
    %104 = arith.maximumf %96, %103 : vector<128x128xf32>
    %c13 = arith.constant 13 : index
    %c0_55 = arith.constant 0 : index
    %c0_56 = arith.constant 0 : index
    %105 = vector.load %arg1[%c13, %c0_55, %c0_56] : memref<16x128x32xbf16, #tpu.memory_space<vmem>>, vector<1x128x32xbf16>
    %106 = vector.shape_cast %105 : vector<1x128x32xbf16> to vector<128x32xbf16>
    %cst_57 = arith.constant dense<0.000000e+00> : vector<128x128xf32>
    %107 = tpu.matmul %106, %0, %cst_57 {dimension_numbers = #tpu.dot_dimension_numbers<[1], [0], [0], [1], [0, 0, 1, 1], [], []>} : vector<128x32xbf16>, vector<32x128xbf16>, vector<128x128xf32> -> vector<128x128xf32>
    %108 = vector.broadcast %1 : vector<1x128xf32> to vector<128x128xf32>
    %109 = arith.addf %107, %108 : vector<128x128xf32>
    %cst_58 = arith.constant 0.000000e+00 : f32
    %110 = vector.broadcast %cst_58 : f32 to vector<128x128xf32>
    %111 = arith.maximumf %109, %110 : vector<128x128xf32>
    %112 = arith.maximumf %104, %111 : vector<128x128xf32>
    %c14 = arith.constant 14 : index
    %c0_59 = arith.constant 0 : index
    %c0_60 = arith.constant 0 : index
    %113 = vector.load %arg1[%c14, %c0_59, %c0_60] : memref<16x128x32xbf16, #tpu.memory_space<vmem>>, vector<1x128x32xbf16>
    %114 = vector.shape_cast %113 : vector<1x128x32xbf16> to vector<128x32xbf16>
    %cst_61 = arith.constant dense<0.000000e+00> : vector<128x128xf32>
    %115 = tpu.matmul %114, %0, %cst_61 {dimension_numbers = #tpu.dot_dimension_numbers<[1], [0], [0], [1], [0, 0, 1, 1], [], []>} : vector<128x32xbf16>, vector<32x128xbf16>, vector<128x128xf32> -> vector<128x128xf32>
    %116 = vector.broadcast %1 : vector<1x128xf32> to vector<128x128xf32>
    %117 = arith.addf %115, %116 : vector<128x128xf32>
    %cst_62 = arith.constant 0.000000e+00 : f32
    %118 = vector.broadcast %cst_62 : f32 to vector<128x128xf32>
    %119 = arith.maximumf %117, %118 : vector<128x128xf32>
    %120 = arith.maximumf %112, %119 : vector<128x128xf32>
    %c15 = arith.constant 15 : index
    %c0_63 = arith.constant 0 : index
    %c0_64 = arith.constant 0 : index
    %121 = vector.load %arg1[%c15, %c0_63, %c0_64] : memref<16x128x32xbf16, #tpu.memory_space<vmem>>, vector<1x128x32xbf16>
    %122 = vector.shape_cast %121 : vector<1x128x32xbf16> to vector<128x32xbf16>
    %cst_65 = arith.constant dense<0.000000e+00> : vector<128x128xf32>
    %123 = tpu.matmul %122, %0, %cst_65 {dimension_numbers = #tpu.dot_dimension_numbers<[1], [0], [0], [1], [0, 0, 1, 1], [], []>} : vector<128x32xbf16>, vector<32x128xbf16>, vector<128x128xf32> -> vector<128x128xf32>
    %124 = vector.broadcast %1 : vector<1x128xf32> to vector<128x128xf32>
    %125 = arith.addf %123, %124 : vector<128x128xf32>
    %cst_66 = arith.constant 0.000000e+00 : f32
    %126 = vector.broadcast %cst_66 : f32 to vector<128x128xf32>
    %127 = arith.maximumf %125, %126 : vector<128x128xf32>
    %128 = arith.maximumf %120, %127 : vector<128x128xf32>
    %129 = arith.truncf %128 : vector<128x128xf32> to vector<128x128xbf16>
    %c0_67 = arith.constant 0 : index
    %c0_68 = arith.constant 0 : index
    %130 = vector.load %arg4[%c0_67, %c0_68] : memref<128x128xbf16, #tpu.memory_space<vmem>>, vector<128x128xbf16>
    tpu.vector_store %arg4[%c0_67, %c0_68], %129 {strides = array<i32>} : memref<128x128xbf16, #tpu.memory_space<vmem>>, vector<128x128xbf16>,
    return
  }
  func.func @transform_0(%arg0: i32) -> (i32, i32, i32) {
    %c0_i32 = arith.constant 0 : i32
    %c0_i32_0 = arith.constant 0 : i32
    %c0_i32_1 = arith.constant 0 : i32
    return %c0_i32, %arg0, %c0_i32_0 : i32, i32, i32
  }
  func.func @transform_1(%arg0: i32) -> (i32, i32) {
    %c0_i32 = arith.constant 0 : i32
    %c0_i32_0 = arith.constant 0 : i32
    %c0_i32_1 = arith.constant 0 : i32
    return %c0_i32, %c0_i32_0 : i32, i32
  }
  func.func @transform_2(%arg0: i32) -> (i32, i32) {
    %c0_i32 = arith.constant 0 : i32
    %c0_i32_0 = arith.constant 0 : i32
    %c0_i32_1 = arith.constant 0 : i32
    return %c0_i32, %c0_i32_0 : i32, i32
  }
  func.func @transform_3(%arg0: i32) -> (i32, i32) {
    %c0_i32 = arith.constant 0 : i32
    %c0_i32_0 = arith.constant 0 : i32
    return %arg0, %c0_i32 : i32, i32
  }
}

module attributes {stable_mosaic.version = 11 : i64} {
  func.func @sa_mlp_kernel(%arg0: i32, %arg1: memref<16x128x32xbf16, #tpu.memory_space<vmem>>, %arg2: memref<32x128xbf16, #tpu.memory_space<vmem>>, %arg3: memref<1x128xf32, #tpu.memory_space<vmem>>, %arg4: memref<128x128xbf16, #tpu.memory_space<vmem>>) attributes {dimension_semantics = [#tpu.dimension_semantics<parallel>], iteration_bounds = array<i64: 8>, scalar_prefetch = 0 : i64, scratch_operands = 0 : i64, tpu.core_type = #tpu.core_type<tc>, window_params = [{transform_indices = @transform_0, window_bounds = array<i64: 16, 128, 32>}, {pipeline_mode = #tpu.pipeline_mode<synchronous>, transform_indices = @transform_1, window_bounds = array<i64: 32, 128>}, {pipeline_mode = #tpu.pipeline_mode<synchronous>, transform_indices = @transform_2, window_bounds = array<i64: 1, 128>}, {transform_indices = @transform_3, window_bounds = array<i64: 128, 128>}]} {
    %c0 = arith.constant 0 : index
    %c0_0 = arith.constant 0 : index
    %0 = vector.load %arg2[%c0, %c0_0] : memref<32x128xbf16, #tpu.memory_space<vmem>>, vector<32x128xbf16>
    %c0_1 = arith.constant 0 : index
    %c0_2 = arith.constant 0 : index
    %1 = vector.load %arg3[%c0_1, %c0_2] : memref<1x128xf32, #tpu.memory_space<vmem>>, vector<1x128xf32>
    %c0_3 = arith.constant 0 : index
    %c0_4 = arith.constant 0 : index
    %c0_5 = arith.constant 0 : index
    %2 = vector.load %arg1[%c0_3, %c0_4, %c0_5] : memref<16x128x32xbf16, #tpu.memory_space<vmem>>, vector<1x128x32xbf16>
    %3 = vector.shape_cast %2 : vector<1x128x32xbf16> to vector<128x32xbf16>
    %cst = arith.constant dense<0.000000e+00> : vector<128x128xf32>
    %4 = tpu.matmul %3, %0, %cst {dimension_numbers = #tpu.dot_dimension_numbers<[1], [0], [0], [1], [0, 0, 1, 1], [], []>} : vector<128x32xbf16>, vector<32x128xbf16>, vector<128x128xf32> -> vector<128x128xf32>
    %5 = vector.broadcast %1 : vector<1x128xf32> to vector<128x128xf32>
    %6 = arith.addf %4, %5 : vector<128x128xf32>
    %cst_6 = arith.constant 0.000000e+00 : f32
    %7 = vector.broadcast %cst_6 : f32 to vector<128x128xf32>
    %8 = arith.maximumf %6, %7 : vector<128x128xf32>
    %c1 = arith.constant 1 : index
    %c0_7 = arith.constant 0 : index
    %c0_8 = arith.constant 0 : index
    %9 = vector.load %arg1[%c1, %c0_7, %c0_8] : memref<16x128x32xbf16, #tpu.memory_space<vmem>>, vector<1x128x32xbf16>
    %10 = vector.shape_cast %9 : vector<1x128x32xbf16> to vector<128x32xbf16>
    %cst_9 = arith.constant dense<0.000000e+00> : vector<128x128xf32>
    %11 = tpu.matmul %10, %0, %cst_9 {dimension_numbers = #tpu.dot_dimension_numbers<[1], [0], [0], [1], [0, 0, 1, 1], [], []>} : vector<128x32xbf16>, vector<32x128xbf16>, vector<128x128xf32> -> vector<128x128xf32>
    %12 = vector.broadcast %1 : vector<1x128xf32> to vector<128x128xf32>
    %13 = arith.addf %11, %12 : vector<128x128xf32>
    %cst_10 = arith.constant 0.000000e+00 : f32
    %14 = vector.broadcast %cst_10 : f32 to vector<128x128xf32>
    %15 = arith.maximumf %13, %14 : vector<128x128xf32>
    %16 = arith.maximumf %8, %15 : vector<128x128xf32>
    %c2 = arith.constant 2 : index
    %c0_11 = arith.constant 0 : index
    %c0_12 = arith.constant 0 : index
    %17 = vector.load %arg1[%c2, %c0_11, %c0_12] : memref<16x128x32xbf16, #tpu.memory_space<vmem>>, vector<1x128x32xbf16>
    %18 = vector.shape_cast %17 : vector<1x128x32xbf16> to vector<128x32xbf16>
    %cst_13 = arith.constant dense<0.000000e+00> : vector<128x128xf32>
    %19 = tpu.matmul %18, %0, %cst_13 {dimension_numbers = #tpu.dot_dimension_numbers<[1], [0], [0], [1], [0, 0, 1, 1], [], []>} : vector<128x32xbf16>, vector<32x128xbf16>, vector<128x128xf32> -> vector<128x128xf32>
    %20 = vector.broadcast %1 : vector<1x128xf32> to vector<128x128xf32>
    %21 = arith.addf %19, %20 : vector<128x128xf32>
    %cst_14 = arith.constant 0.000000e+00 : f32
    %22 = vector.broadcast %cst_14 : f32 to vector<128x128xf32>
    %23 = arith.maximumf %21, %22 : vector<128x128xf32>
    %24 = arith.maximumf %16, %23 : vector<128x128xf32>
    %c3 = arith.constant 3 : index
    %c0_15 = arith.constant 0 : index
    %c0_16 = arith.constant 0 : index
    %25 = vector.load %arg1[%c3, %c0_15, %c0_16] : memref<16x128x32xbf16, #tpu.memory_space<vmem>>, vector<1x128x32xbf16>
    %26 = vector.shape_cast %25 : vector<1x128x32xbf16> to vector<128x32xbf16>
    %cst_17 = arith.constant dense<0.000000e+00> : vector<128x128xf32>
    %27 = tpu.matmul %26, %0, %cst_17 {dimension_numbers = #tpu.dot_dimension_numbers<[1], [0], [0], [1], [0, 0, 1, 1], [], []>} : vector<128x32xbf16>, vector<32x128xbf16>, vector<128x128xf32> -> vector<128x128xf32>
    %28 = vector.broadcast %1 : vector<1x128xf32> to vector<128x128xf32>
    %29 = arith.addf %27, %28 : vector<128x128xf32>
    %cst_18 = arith.constant 0.000000e+00 : f32
    %30 = vector.broadcast %cst_18 : f32 to vector<128x128xf32>
    %31 = arith.maximumf %29, %30 : vector<128x128xf32>
    %32 = arith.maximumf %24, %31 : vector<128x128xf32>
    %c4 = arith.constant 4 : index
    %c0_19 = arith.constant 0 : index
    %c0_20 = arith.constant 0 : index
    %33 = vector.load %arg1[%c4, %c0_19, %c0_20] : memref<16x128x32xbf16, #tpu.memory_space<vmem>>, vector<1x128x32xbf16>
    %34 = vector.shape_cast %33 : vector<1x128x32xbf16> to vector<128x32xbf16>
    %cst_21 = arith.constant dense<0.000000e+00> : vector<128x128xf32>
    %35 = tpu.matmul %34, %0, %cst_21 {dimension_numbers = #tpu.dot_dimension_numbers<[1], [0], [0], [1], [0, 0, 1, 1], [], []>} : vector<128x32xbf16>, vector<32x128xbf16>, vector<128x128xf32> -> vector<128x128xf32>
    %36 = vector.broadcast %1 : vector<1x128xf32> to vector<128x128xf32>
    %37 = arith.addf %35, %36 : vector<128x128xf32>
    %cst_22 = arith.constant 0.000000e+00 : f32
    %38 = vector.broadcast %cst_22 : f32 to vector<128x128xf32>
    %39 = arith.maximumf %37, %38 : vector<128x128xf32>
    %40 = arith.maximumf %32, %39 : vector<128x128xf32>
    %c5 = arith.constant 5 : index
    %c0_23 = arith.constant 0 : index
    %c0_24 = arith.constant 0 : index
    %41 = vector.load %arg1[%c5, %c0_23, %c0_24] : memref<16x128x32xbf16, #tpu.memory_space<vmem>>, vector<1x128x32xbf16>
    %42 = vector.shape_cast %41 : vector<1x128x32xbf16> to vector<128x32xbf16>
    %cst_25 = arith.constant dense<0.000000e+00> : vector<128x128xf32>
    %43 = tpu.matmul %42, %0, %cst_25 {dimension_numbers = #tpu.dot_dimension_numbers<[1], [0], [0], [1], [0, 0, 1, 1], [], []>} : vector<128x32xbf16>, vector<32x128xbf16>, vector<128x128xf32> -> vector<128x128xf32>
    %44 = vector.broadcast %1 : vector<1x128xf32> to vector<128x128xf32>
    %45 = arith.addf %43, %44 : vector<128x128xf32>
    %cst_26 = arith.constant 0.000000e+00 : f32
    %46 = vector.broadcast %cst_26 : f32 to vector<128x128xf32>
    %47 = arith.maximumf %45, %46 : vector<128x128xf32>
    %48 = arith.maximumf %40, %47 : vector<128x128xf32>
    %c6 = arith.constant 6 : index
    %c0_27 = arith.constant 0 : index
    %c0_28 = arith.constant 0 : index
    %49 = vector.load %arg1[%c6, %c0_27, %c0_28] : memref<16x128x32xbf16, #tpu.memory_space<vmem>>, vector<1x128x32xbf16>
    %50 = vector.shape_cast %49 : vector<1x128x32xbf16> to vector<128x32xbf16>
    %cst_29 = arith.constant dense<0.000000e+00> : vector<128x128xf32>
    %51 = tpu.matmul %50, %0, %cst_29 {dimension_numbers = #tpu.dot_dimension_numbers<[1], [0], [0], [1], [0, 0, 1, 1], [], []>} : vector<128x32xbf16>, vector<32x128xbf16>, vector<128x128xf32> -> vector<128x128xf32>
    %52 = vector.broadcast %1 : vector<1x128xf32> to vector<128x128xf32>
    %53 = arith.addf %51, %52 : vector<128x128xf32>
    %cst_30 = arith.constant 0.000000e+00 : f32
    %54 = vector.broadcast %cst_30 : f32 to vector<128x128xf32>
    %55 = arith.maximumf %53, %54 : vector<128x128xf32>
    %56 = arith.maximumf %48, %55 : vector<128x128xf32>
    %c7 = arith.constant 7 : index
    %c0_31 = arith.constant 0 : index
    %c0_32 = arith.constant 0 : index
    %57 = vector.load %arg1[%c7, %c0_31, %c0_32] : memref<16x128x32xbf16, #tpu.memory_space<vmem>>, vector<1x128x32xbf16>
    %58 = vector.shape_cast %57 : vector<1x128x32xbf16> to vector<128x32xbf16>
    %cst_33 = arith.constant dense<0.000000e+00> : vector<128x128xf32>
    %59 = tpu.matmul %58, %0, %cst_33 {dimension_numbers = #tpu.dot_dimension_numbers<[1], [0], [0], [1], [0, 0, 1, 1], [], []>} : vector<128x32xbf16>, vector<32x128xbf16>, vector<128x128xf32> -> vector<128x128xf32>
    %60 = vector.broadcast %1 : vector<1x128xf32> to vector<128x128xf32>
    %61 = arith.addf %59, %60 : vector<128x128xf32>
    %cst_34 = arith.constant 0.000000e+00 : f32
    %62 = vector.broadcast %cst_34 : f32 to vector<128x128xf32>
    %63 = arith.maximumf %61, %62 : vector<128x128xf32>
    %64 = arith.maximumf %56, %63 : vector<128x128xf32>
    %c8 = arith.constant 8 : index
    %c0_35 = arith.constant 0 : index
    %c0_36 = arith.constant 0 : index
    %65 = vector.load %arg1[%c8, %c0_35, %c0_36] : memref<16x128x32xbf16, #tpu.memory_space<vmem>>, vector<1x128x32xbf16>
    %66 = vector.shape_cast %65 : vector<1x128x32xbf16> to vector<128x32xbf16>
    %cst_37 = arith.constant dense<0.000000e+00> : vector<128x128xf32>
    %67 = tpu.matmul %66, %0, %cst_37 {dimension_numbers = #tpu.dot_dimension_numbers<[1], [0], [0], [1], [0, 0, 1, 1], [], []>} : vector<128x32xbf16>, vector<32x128xbf16>, vector<128x128xf32> -> vector<128x128xf32>
    %68 = vector.broadcast %1 : vector<1x128xf32> to vector<128x128xf32>
    %69 = arith.addf %67, %68 : vector<128x128xf32>
    %cst_38 = arith.constant 0.000000e+00 : f32
    %70 = vector.broadcast %cst_38 : f32 to vector<128x128xf32>
    %71 = arith.maximumf %69, %70 : vector<128x128xf32>
    %72 = arith.maximumf %64, %71 : vector<128x128xf32>
    %c9 = arith.constant 9 : index
    %c0_39 = arith.constant 0 : index
    %c0_40 = arith.constant 0 : index
    %73 = vector.load %arg1[%c9, %c0_39, %c0_40] : memref<16x128x32xbf16, #tpu.memory_space<vmem>>, vector<1x128x32xbf16>
    %74 = vector.shape_cast %73 : vector<1x128x32xbf16> to vector<128x32xbf16>
    %cst_41 = arith.constant dense<0.000000e+00> : vector<128x128xf32>
    %75 = tpu.matmul %74, %0, %cst_41 {dimension_numbers = #tpu.dot_dimension_numbers<[1], [0], [0], [1], [0, 0, 1, 1], [], []>} : vector<128x32xbf16>, vector<32x128xbf16>, vector<128x128xf32> -> vector<128x128xf32>
    %76 = vector.broadcast %1 : vector<1x128xf32> to vector<128x128xf32>
    %77 = arith.addf %75, %76 : vector<128x128xf32>
    %cst_42 = arith.constant 0.000000e+00 : f32
    %78 = vector.broadcast %cst_42 : f32 to vector<128x128xf32>
    %79 = arith.maximumf %77, %78 : vector<128x128xf32>
    %80 = arith.maximumf %72, %79 : vector<128x128xf32>
    %c10 = arith.constant 10 : index
    %c0_43 = arith.constant 0 : index
    %c0_44 = arith.constant 0 : index
    %81 = vector.load %arg1[%c10, %c0_43, %c0_44] : memref<16x128x32xbf16, #tpu.memory_space<vmem>>, vector<1x128x32xbf16>
    %82 = vector.shape_cast %81 : vector<1x128x32xbf16> to vector<128x32xbf16>
    %cst_45 = arith.constant dense<0.000000e+00> : vector<128x128xf32>
    %83 = tpu.matmul %82, %0, %cst_45 {dimension_numbers = #tpu.dot_dimension_numbers<[1], [0], [0], [1], [0, 0, 1, 1], [], []>} : vector<128x32xbf16>, vector<32x128xbf16>, vector<128x128xf32> -> vector<128x128xf32>
    %84 = vector.broadcast %1 : vector<1x128xf32> to vector<128x128xf32>
    %85 = arith.addf %83, %84 : vector<128x128xf32>
    %cst_46 = arith.constant 0.000000e+00 : f32
    %86 = vector.broadcast %cst_46 : f32 to vector<128x128xf32>
    %87 = arith.maximumf %85, %86 : vector<128x128xf32>
    %88 = arith.maximumf %80, %87 : vector<128x128xf32>
    %c11 = arith.constant 11 : index
    %c0_47 = arith.constant 0 : index
    %c0_48 = arith.constant 0 : index
    %89 = vector.load %arg1[%c11, %c0_47, %c0_48] : memref<16x128x32xbf16, #tpu.memory_space<vmem>>, vector<1x128x32xbf16>
    %90 = vector.shape_cast %89 : vector<1x128x32xbf16> to vector<128x32xbf16>
    %cst_49 = arith.constant dense<0.000000e+00> : vector<128x128xf32>
    %91 = tpu.matmul %90, %0, %cst_49 {dimension_numbers = #tpu.dot_dimension_numbers<[1], [0], [0], [1], [0, 0, 1, 1], [], []>} : vector<128x32xbf16>, vector<32x128xbf16>, vector<128x128xf32> -> vector<128x128xf32>
    %92 = vector.broadcast %1 : vector<1x128xf32> to vector<128x128xf32>
    %93 = arith.addf %91, %92 : vector<128x128xf32>
    %cst_50 = arith.constant 0.000000e+00 : f32
    %94 = vector.broadcast %cst_50 : f32 to vector<128x128xf32>
    %95 = arith.maximumf %93, %94 : vector<128x128xf32>
    %96 = arith.maximumf %88, %95 : vector<128x128xf32>
    %c12 = arith.constant 12 : index
    %c0_51 = arith.constant 0 : index
    %c0_52 = arith.constant 0 : index
    %97 = vector.load %arg1[%c12, %c0_51, %c0_52] : memref<16x128x32xbf16, #tpu.memory_space<vmem>>, vector<1x128x32xbf16>
    %98 = vector.shape_cast %97 : vector<1x128x32xbf16> to vector<128x32xbf16>
    %cst_53 = arith.constant dense<0.000000e+00> : vector<128x128xf32>
    %99 = tpu.matmul %98, %0, %cst_53 {dimension_numbers = #tpu.dot_dimension_numbers<[1], [0], [0], [1], [0, 0, 1, 1], [], []>} : vector<128x32xbf16>, vector<32x128xbf16>, vector<128x128xf32> -> vector<128x128xf32>
    %100 = vector.broadcast %1 : vector<1x128xf32> to vector<128x128xf32>
    %101 = arith.addf %99, %100 : vector<128x128xf32>
    %cst_54 = arith.constant 0.000000e+00 : f32
    %102 = vector.broadcast %cst_54 : f32 to vector<128x128xf32>
    %103 = arith.maximumf %101, %102 : vector<128x128xf32>
    %104 = arith.maximumf %96, %103 : vector<128x128xf32>
    %c13 = arith.constant 13 : index
    %c0_55 = arith.constant 0 : index
    %c0_56 = arith.constant 0 : index
    %105 = vector.load %arg1[%c13, %c0_55, %c0_56] : memref<16x128x32xbf16, #tpu.memory_space<vmem>>, vector<1x128x32xbf16>
    %106 = vector.shape_cast %105 : vector<1x128x32xbf16> to vector<128x32xbf16>
    %cst_57 = arith.constant dense<0.000000e+00> : vector<128x128xf32>
    %107 = tpu.matmul %106, %0, %cst_57 {dimension_numbers = #tpu.dot_dimension_numbers<[1], [0], [0], [1], [0, 0, 1, 1], [], []>} : vector<128x32xbf16>, vector<32x128xbf16>, vector<128x128xf32> -> vector<128x128xf32>
    %108 = vector.broadcast %1 : vector<1x128xf32> to vector<128x128xf32>
    %109 = arith.addf %107, %108 : vector<128x128xf32>
    %cst_58 = arith.constant 0.000000e+00 : f32
    %110 = vector.broadcast %cst_58 : f32 to vector<128x128xf32>
    %111 = arith.maximumf %109, %110 : vector<128x128xf32>
    %112 = arith.maximumf %104, %111 : vector<128x128xf32>
    %c14 = arith.constant 14 : index
    %c0_59 = arith.constant 0 : index
    %c0_60 = arith.constant 0 : index
    %113 = vector.load %arg1[%c14, %c0_59, %c0_60] : memref<16x128x32xbf16, #tpu.memory_space<vmem>>, vector<1x128x32xbf16>
    %114 = vector.shape_cast %113 : vector<1x128x32xbf16> to vector<128x32xbf16>
    %cst_61 = arith.constant dense<0.000000e+00> : vector<128x128xf32>
    %115 = tpu.matmul %114, %0, %cst_61 {dimension_numbers = #tpu.dot_dimension_numbers<[1], [0], [0], [1], [0, 0, 1, 1], [], []>} : vector<128x32xbf16>, vector<32x128xbf16>, vector<128x128xf32> -> vector<128x128xf32>
    %116 = vector.broadcast %1 : vector<1x128xf32> to vector<128x128xf32>
    %117 = arith.addf %115, %116 : vector<128x128xf32>
    %cst_62 = arith.constant 0.000000e+00 : f32
    %118 = vector.broadcast %cst_62 : f32 to vector<128x128xf32>
    %119 = arith.maximumf %117, %118 : vector<128x128xf32>
    %120 = arith.maximumf %112, %119 : vector<128x128xf32>
    %c15 = arith.constant 15 : index
    %c0_63 = arith.constant 0 : index
    %c0_64 = arith.constant 0 : index
    %121 = vector.load %arg1[%c15, %c0_63, %c0_64] : memref<16x128x32xbf16, #tpu.memory_space<vmem>>, vector<1x128x32xbf16>
    %122 = vector.shape_cast %121 : vector<1x128x32xbf16> to vector<128x32xbf16>
    %cst_65 = arith.constant dense<0.000000e+00> : vector<128x128xf32>
    %123 = tpu.matmul %122, %0, %cst_65 {dimension_numbers = #tpu.dot_dimension_numbers<[1], [0], [0], [1], [0, 0, 1, 1], [], []>} : vector<128x32xbf16>, vector<32x128xbf16>, vector<128x128xf32> -> vector<128x128xf32>
    %124 = vector.broadcast %1 : vector<1x128xf32> to vector<128x128xf32>
    %125 = arith.addf %123, %124 : vector<128x128xf32>
    %cst_66 = arith.constant 0.000000e+00 : f32
    %126 = vector.broadcast %cst_66 : f32 to vector<128x128xf32>
    %127 = arith.maximumf %125, %126 : vector<128x128xf32>
    %128 = arith.maximumf %120, %127 : vector<128x128xf32>
    %129 = arith.truncf %128 : vector<128x128xf32> to vector<128x128xbf16>
    %c0_67 = arith.constant 0 : index
    %c0_68 = arith.constant 0 : index
    %130 = vector.load %arg4[%c0_67, %c0_68] : memref<128x128xbf16, #tpu.memory_space<vmem>>, vector<128x128xbf16>
    tpu.vector_store %arg4[%c0_67, %c0_68], %129 {strides = array<i32>} : memref<128x128xbf16, #tpu.memory_space<vmem>>, vector<128x128xbf16>,
    return
  }
  func.func @transform_0(%arg0: i32) -> (i32, i32, i32) {
    %c0_i32 = arith.constant 0 : i32
    %c0_i32_0 = arith.constant 0 : i32
    %c0_i32_1 = arith.constant 0 : i32
    return %c0_i32, %arg0, %c0_i32_0 : i32, i32, i32
  }
  func.func @transform_1(%arg0: i32) -> (i32, i32) {
    %c0_i32 = arith.constant 0 : i32
    %c0_i32_0 = arith.constant 0 : i32
    %c0_i32_1 = arith.constant 0 : i32
    return %c0_i32, %c0_i32_0 : i32, i32
  }
  func.func @transform_2(%arg0: i32) -> (i32, i32) {
    %c0_i32 = arith.constant 0 : i32
    %c0_i32_0 = arith.constant 0 : i32
    %c0_i32_1 = arith.constant 0 : i32
    return %c0_i32, %c0_i32_0 : i32, i32
  }
  func.func @transform_3(%arg0: i32) -> (i32, i32) {
    %c0_i32 = arith.constant 0 : i32
    %c0_i32_0 = arith.constant 0 : i32
    return %arg0, %c0_i32 : i32, i32
  }
}

</mosaic_0001>

<bundles_post_ra>
// kernel: tpu_custom_call.1
= control target key start
LH: loop header
LB: loop body
LE: loop exit
PB: predicated region body
PF: predicated region fallthrough
CT: control target
= control target key end

     0   :  { %8 = vsyncpa [#allocation4], 0  ;;  %s7482_s0 = inlined_call_operand.vmem [shape: bf16[16,1024,32], index: 0, kind: input, shape index: {}]   ;;  %s7483_s1 = inlined_call_operand.vmem [shape: bf16[32,128], index: 1, kind: input, shape index: {}]   ;;  %s7484_s2 = inlined_call_operand.vmem [shape: f32[1,128], index: 2, kind: input, shape index: {}]   ;;  %s7485_s3 = inlined_call_operand.hbm [shape: bf16[1024,128], index: 3, kind: output, shape index: {}]  }
   0x1   :  { %10 = vsyncpa [#allocation4 + $0x1], 0  ;;  %s6099_s12 = smov 0   ;;  %s6101_s13 = smov 0  }
   0x2   :  { %s6103_s14 = smov 0   ;;  %s6105_s15 = smov 0  }
   0x3 LB: > { %s4764_s16 = sadd.s32 4294967295, %s6074_s15   ;;  %s4765_s17 = sadd.s32 4294967294, %s6074_s15   ;;  %s6074_s15 = sphi %s6105_s15, %s7491_s15   ;;  %s6070_s14 = sphi %s6103_s14, %s7490_s14   ;;  %s6066_s13 = sphi %s6101_s13, %s7489_s13   ;;  %s6062_s12 = sphi %s6099_s12, %s7488_s12  }
   0x4   : > { %s6122_s18 = sadd.s32 1, %s6074_s15   ;;  %s23_s19 = sadd.s32 1, %s6070_s14 }
   0x5   : > { %s20_s20 = ssub.s32 %s6074_s15, %s6122_s18  ;;  %p30_p0 = scmp.ne.s32.totalorder %s6070_s14, %s6066_s13 }
   0x6   : > { %p21_p1 = scmp.eq.s32.totalorder %s20_s20, 0  ;;  %p31_p2 = scmp.eq.s32.totalorder %s6074_s15, 0 }
   0x7   : > { %p102_p3 = scmp.eq.s32.totalorder %s4764_s16, 7  ;;  %p107_p4 = scmp.ne.s32.totalorder %s6066_s13, %s6062_s12 }
   0x8   : > { %s6135_s21 = scalar_select %p21_p1, %s6070_s14, %s23_s19  }
   0x9   : > { %p32_p5 = por %p31_p2, %p30_p0  ;;  %p6137_p6 = por %p102_p3, %p30_p0 }
   0xa   : > { %p108_p7 = scmp.eq.s32.totalorder %s4765_s17, 7  ;;  %p4767_p9 = scmp.ge.s32.totalorder %s6074_s15, 8 }
   0xc   : > { %p6141_p8 = por %p108_p7, %p107_p4  ;;  %130 = sbr.rel (%p4767_p9) target bundleno = 85 (0x55), region = 24 }
  0x11   : > { %133 = sbr.rel (!%p32_p5) target bundleno = 85 (0x55), region = 28  ;;  %s135_s24 = sand.u32 (%p32_p5), 1, %s6070_s14  }
  0x12   : > { %s5294_s25 = sshll.u32 (%p32_p5), %s6074_s15, 6  ;;  %s4768_s26 = sshll.u32 (%p32_p5), %s135_s24, 10 }
  0x13   : > { %s6151_s29 = scalar_lea.vmem (%p32_p5), %s7482_s0, %s5294_s25  ;;  %s6156_s30 = scalar_lea.vmem (%p32_p5), [#allocation2], %s4768_s26 }
  0x14   : > { %v157_v0 = vld [vmem:[%s6151_s29] sm:$0xff] (%p32_p5)   ;;  %v161_v1 = vld [vmem:[%s6151_s29 + $0x8] sm:$0xff] (%p32_p5)   ;;  %v165_v2 = vld [vmem:[%s6151_s29 + $0x10] sm:$0xff] (%p32_p5)  }
  0x15   : > { %158 = vst [vmem:[%s6156_s30] sm:$0xff] (%p32_p5), %v157_v0   ;;  %162 = vst [vmem:[%s6156_s30 + $0x8] sm:$0xff] (%p32_p5), %v161_v1   ;;  %v169_v3 = vld [vmem:[%s6151_s29 + $0x18] sm:$0xff] (%p32_p5)   ;;  %v173_v4 = vld [vmem:[%s6151_s29 + $0x20] sm:$0xff] (%p32_p5)  }
  0x16   : > { %166 = vst [vmem:[%s6156_s30 + $0x10] sm:$0xff] %v165_v2   ;;  %v177_v5 = vld [vmem:[%s6151_s29 + $0x28] sm:$0xff]   ;;  %170 = vst [vmem:[%s6156_s30 + $0x18] sm:$0xff] %v169_v3   ;;  %v181_v6 = vld [vmem:[%s6151_s29 + $0x30] sm:$0xff]  }
  0x17   : > { %174 = vst [vmem:[%s6156_s30 + $0x20] sm:$0xff] %v173_v4   ;;  %178 = vst [vmem:[%s6156_s30 + $0x28] sm:$0xff] %v177_v5   ;;  %v185_v7 = vld [vmem:[%s6151_s29 + $0x38] sm:$0xff]   ;;  %v189_v8 = vld [vmem:[%s6151_s29 + $0x200] sm:$0xff]  }
  0x18   : > { %182 = vst [vmem:[%s6156_s30 + $0x30] sm:$0xff] %v181_v6   ;;  %186 = vst [vmem:[%s6156_s30 + $0x38] sm:$0xff] %v185_v7   ;;  %v193_v9 = vld [vmem:[%s6151_s29 + $0x208] sm:$0xff]   ;;  %v197_v10 = vld [vmem:[%s6151_s29 + $0x210] sm:$0xff]  }
  0x19   : > { %190 = vst [vmem:[%s6156_s30 + $0x40] sm:$0xff] %v189_v8   ;;  %v201_v11 = vld [vmem:[%s6151_s29 + $0x218] sm:$0xff]   ;;  %194 = vst [vmem:[%s6156_s30 + $0x48] sm:$0xff] %v193_v9   ;;  %v205_v12 = vld [vmem:[%s6151_s29 + $0x220] sm:$0xff]  }
  0x1a   : > { %198 = vst [vmem:[%s6156_s30 + $0x50] sm:$0xff] %v197_v10   ;;  %202 = vst [vmem:[%s6156_s30 + $0x58] sm:$0xff] %v201_v11   ;;  %v209_v13 = vld [vmem:[%s6151_s29 + $0x228] sm:$0xff]   ;;  %v213_v14 = vld [vmem:[%s6151_s29 + $0x230] sm:$0xff]  }
  0x1b   : > { %206 = vst [vmem:[%s6156_s30 + $0x60] sm:$0xff] %v205_v12   ;;  %210 = vst [vmem:[%s6156_s30 + $0x68] sm:$0xff] %v209_v13   ;;  %v217_v15 = vld [vmem:[%s6151_s29 + $0x238] sm:$0xff]   ;;  %v221_v16 = vld [vmem:[%s6151_s29 + $0x400] sm:$0xff]  }
  0x1c   : > { %214 = vst [vmem:[%s6156_s30 + $0x70] sm:$0xff] %v213_v14   ;;  %v225_v17 = vld [vmem:[%s6151_s29 + $0x408] sm:$0xff]   ;;  %218 = vst [vmem:[%s6156_s30 + $0x78] sm:$0xff] %v217_v15   ;;  %v229_v18 = vld [vmem:[%s6151_s29 + $0x410] sm:$0xff]  }
  0x1d   : > { %222 = vst [vmem:[%s6156_s30 + $0x80] sm:$0xff] %v221_v16   ;;  %226 = vst [vmem:[%s6156_s30 + $0x88] sm:$0xff] %v225_v17   ;;  %v233_v19 = vld [vmem:[%s6151_s29 + $0x418] sm:$0xff]   ;;  %v237_v20 = vld [vmem:[%s6151_s29 + $0x420] sm:$0xff]  }
  0x1e   : > { %230 = vst [vmem:[%s6156_s30 + $0x90] sm:$0xff] %v229_v18   ;;  %234 = vst [vmem:[%s6156_s30 + $0x98] sm:$0xff] %v233_v19   ;;  %v241_v21 = vld [vmem:[%s6151_s29 + $0x428] sm:$0xff]   ;;  %v245_v22 = vld [vmem:[%s6151_s29 + $0x430] sm:$0xff]  }
  0x1f   : > { %238 = vst [vmem:[%s6156_s30 + $0xa0] sm:$0xff] %v237_v20   ;;  %v249_v23 = vld [vmem:[%s6151_s29 + $0x438] sm:$0xff]   ;;  %242 = vst [vmem:[%s6156_s30 + $0xa8] sm:$0xff] %v241_v21   ;;  %v253_v24 = vld [vmem:[%s6151_s29 + $0x600] sm:$0xff]  }
  0x20   : > { %246 = vst [vmem:[%s6156_s30 + $0xb0] sm:$0xff] %v245_v22   ;;  %250 = vst [vmem:[%s6156_s30 + $0xb8] sm:$0xff] %v249_v23   ;;  %v257_v25 = vld [vmem:[%s6151_s29 + $0x608] sm:$0xff]   ;;  %v261_v26 = vld [vmem:[%s6151_s29 + $0x610] sm:$0xff]  }
  0x21   : > { %254 = vst [vmem:[%s6156_s30 + $0xc0] sm:$0xff] %v253_v24   ;;  %258 = vst [vmem:[%s6156_s30 + $0xc8] sm:$0xff] %v257_v25   ;;  %v265_v27 = vld [vmem:[%s6151_s29 + $0x618] sm:$0xff]   ;;  %v269_v28 = vld [vmem:[%s6151_s29 + $0x620] sm:$0xff]  }
  0x22   : > { %262 = vst [vmem:[%s6156_s30 + $0xd0] sm:$0xff] %v261_v26   ;;  %v273_v29 = vld [vmem:[%s6151_s29 + $0x628] sm:$0xff]   ;;  %266 = vst [vmem:[%s6156_s30 + $0xd8] sm:$0xff] %v265_v27   ;;  %v277_v30 = vld [vmem:[%s6151_s29 + $0x630] sm:$0xff]  }
  0x23   : > { %270 = vst [vmem:[%s6156_s30 + $0xe0] sm:$0xff] %v269_v28   ;;  %274 = vst [vmem:[%s6156_s30 + $0xe8] sm:$0xff] %v273_v29   ;;  %v281_v31 = vld [vmem:[%s6151_s29 + $0x638] sm:$0xff]   ;;  %v285_v32 = vld [vmem:[%s6151_s29 + $0x800] sm:$0xff]  }
  0x24   : > { %278 = vst [vmem:[%s6156_s30 + $0xf0] sm:$0xff] %v277_v30   ;;  %282 = vst [vmem:[%s6156_s30 + $0xf8] sm:$0xff] %v281_v31   ;;  %v289_v33 = vld [vmem:[%s6151_s29 + $0x808] sm:$0xff]   ;;  %v293_v34 = vld [vmem:[%s6151_s29 + $0x810] sm:$0xff]  }
  0x25   : > { %286 = vst [vmem:[%s6156_s30 + $0x100] sm:$0xff] %v285_v32   ;;  %v297_v35 = vld [vmem:[%s6151_s29 + $0x818] sm:$0xff]   ;;  %290 = vst [vmem:[%s6156_s30 + $0x108] sm:$0xff] %v289_v33   ;;  %v301_v36 = vld [vmem:[%s6151_s29 + $0x820] sm:$0xff]  }
  0x26   : > { %294 = vst [vmem:[%s6156_s30 + $0x110] sm:$0xff] %v293_v34   ;;  %298 = vst [vmem:[%s6156_s30 + $0x118] sm:$0xff] %v297_v35   ;;  %v305_v37 = vld [vmem:[%s6151_s29 + $0x828] sm:$0xff]   ;;  %v309_v38 = vld [vmem:[%s6151_s29 + $0x830] sm:$0xff]  }
  0x27   : > { %302 = vst [vmem:[%s6156_s30 + $0x120] sm:$0xff] %v301_v36   ;;  %306 = vst [vmem:[%s6156_s30 + $0x128] sm:$0xff] %v305_v37   ;;  %v313_v39 = vld [vmem:[%s6151_s29 + $0x838] sm:$0xff]   ;;  %v317_v40 = vld [vmem:[%s6151_s29 + $0xa00] sm:$0xff]  }
  0x28   : > { %310 = vst [vmem:[%s6156_s30 + $0x130] sm:$0xff] %v309_v38   ;;  %v321_v41 = vld [vmem:[%s6151_s29 + $0xa08] sm:$0xff]   ;;  %314 = vst [vmem:[%s6156_s30 + $0x138] sm:$0xff] %v313_v39   ;;  %v325_v42 = vld [vmem:[%s6151_s29 + $0xa10] sm:$0xff]  }
  0x29   : > { %318 = vst [vmem:[%s6156_s30 + $0x140] sm:$0xff] %v317_v40   ;;  %322 = vst [vmem:[%s6156_s30 + $0x148] sm:$0xff] %v321_v41   ;;  %v329_v43 = vld [vmem:[%s6151_s29 + $0xa18] sm:$0xff]   ;;  %v333_v44 = vld [vmem:[%s6151_s29 + $0xa20] sm:$0xff]  }
  0x2a   : > { %326 = vst [vmem:[%s6156_s30 + $0x150] sm:$0xff] %v325_v42   ;;  %330 = vst [vmem:[%s6156_s30 + $0x158] sm:$0xff] %v329_v43   ;;  %v337_v45 = vld [vmem:[%s6151_s29 + $0xa28] sm:$0xff]   ;;  %v341_v46 = vld [vmem:[%s6151_s29 + $0xa30] sm:$0xff]  }
  0x2b   : > { %334 = vst [vmem:[%s6156_s30 + $0x160] sm:$0xff] %v333_v44   ;;  %v345_v47 = vld [vmem:[%s6151_s29 + $0xa38] sm:$0xff]   ;;  %338 = vst [vmem:[%s6156_s30 + $0x168] sm:$0xff] %v337_v45   ;;  %v349_v48 = vld [vmem:[%s6151_s29 + $0xc00] sm:$0xff]  }
  0x2c   : > { %342 = vst [vmem:[%s6156_s30 + $0x170] sm:$0xff] %v341_v46   ;;  %346 = vst [vmem:[%s6156_s30 + $0x178] sm:$0xff] %v345_v47   ;;  %v353_v49 = vld [vmem:[%s6151_s29 + $0xc08] sm:$0xff]   ;;  %v357_v50 = vld [vmem:[%s6151_s29 + $0xc10] sm:$0xff]  }
  0x2d   : > { %350 = vst [vmem:[%s6156_s30 + $0x180] sm:$0xff] %v349_v48   ;;  %354 = vst [vmem:[%s6156_s30 + $0x188] sm:$0xff] %v353_v49   ;;  %v361_v51 = vld [vmem:[%s6151_s29 + $0xc18] sm:$0xff]   ;;  %v365_v52 = vld [vmem:[%s6151_s29 + $0xc20] sm:$0xff]  }
  0x2e   : > { %358 = vst [vmem:[%s6156_s30 + $0x190] sm:$0xff] %v357_v50   ;;  %v369_v53 = vld [vmem:[%s6151_s29 + $0xc28] sm:$0xff]   ;;  %362 = vst [vmem:[%s6156_s30 + $0x198] sm:$0xff] %v361_v51   ;;  %v373_v54 = vld [vmem:[%s6151_s29 + $0xc30] sm:$0xff]  }
  0x2f   : > { %366 = vst [vmem:[%s6156_s30 + $0x1a0] sm:$0xff] %v365_v52   ;;  %370 = vst [vmem:[%s6156_s30 + $0x1a8] sm:$0xff] %v369_v53   ;;  %v377_v55 = vld [vmem:[%s6151_s29 + $0xc38] sm:$0xff]   ;;  %v381_v56 = vld [vmem:[%s6151_s29 + $0xe00] sm:$0xff]  }
  0x30   : > { %374 = vst [vmem:[%s6156_s30 + $0x1b0] sm:$0xff] %v373_v54   ;;  %378 = vst [vmem:[%s6156_s30 + $0x1b8] sm:$0xff] %v377_v55   ;;  %v385_v57 = vld [vmem:[%s6151_s29 + $0xe08] sm:$0xff]   ;;  %v389_v58 = vld [vmem:[%s6151_s29 + $0xe10] sm:$0xff]  }
  0x31   : > { %382 = vst [vmem:[%s6156_s30 + $0x1c0] sm:$0xff] %v381_v56   ;;  %v393_v59 = vld [vmem:[%s6151_s29 + $0xe18] sm:$0xff]   ;;  %386 = vst [vmem:[%s6156_s30 + $0x1c8] sm:$0xff] %v385_v57   ;;  %v397_v60 = vld [vmem:[%s6151_s29 + $0xe20] sm:$0xff]  }
  0x32   : > { %390 = vst [vmem:[%s6156_s30 + $0x1d0] sm:$0xff] %v389_v58   ;;  %394 = vst [vmem:[%s6156_s30 + $0x1d8] sm:$0xff] %v393_v59   ;;  %v401_v61 = vld [vmem:[%s6151_s29 + $0xe28] sm:$0xff]   ;;  %v405_v62 = vld [vmem:[%s6151_s29 + $0xe30] sm:$0xff]  }
  0x33   : > { %398 = vst [vmem:[%s6156_s30 + $0x1e0] sm:$0xff] %v397_v60   ;;  %402 = vst [vmem:[%s6156_s30 + $0x1e8] sm:$0xff] %v401_v61   ;;  %v409_v63 = vld [vmem:[%s6151_s29 + $0xe38] sm:$0xff]   ;;  %v413_v0 = vld [vmem:[%s6151_s29 + $0x1000] sm:$0xff]  }
  0x34   : > { %406 = vst [vmem:[%s6156_s30 + $0x1f0] sm:$0xff] %v405_v62   ;;  %v417_v1 = vld [vmem:[%s6151_s29 + $0x1008] sm:$0xff]   ;;  %410 = vst [vmem:[%s6156_s30 + $0x1f8] sm:$0xff] %v409_v63   ;;  %v421_v2 = vld [vmem:[%s6151_s29 + $0x1010] sm:$0xff]  }
  0x35   : > { %414 = vst [vmem:[%s6156_s30 + $0x200] sm:$0xff] %v413_v0   ;;  %418 = vst [vmem:[%s6156_s30 + $0x208] sm:$0xff] %v417_v1   ;;  %v425_v3 = vld [vmem:[%s6151_s29 + $0x1018] sm:$0xff]   ;;  %v429_v4 = vld [vmem:[%s6151_s29 + $0x1020] sm:$0xff]  }
  0x36   : > { %422 = vst [vmem:[%s6156_s30 + $0x210] sm:$0xff] %v421_v2   ;;  %426 = vst [vmem:[%s6156_s30 + $0x218] sm:$0xff] %v425_v3   ;;  %v433_v5 = vld [vmem:[%s6151_s29 + $0x1028] sm:$0xff]   ;;  %v437_v6 = vld [vmem:[%s6151_s29 + $0x1030] sm:$0xff]  }
  0x37   : > { %430 = vst [vmem:[%s6156_s30 + $0x220] sm:$0xff] %v429_v4   ;;  %v441_v7 = vld [vmem:[%s6151_s29 + $0x1038] sm:$0xff]   ;;  %434 = vst [vmem:[%s6156_s30 + $0x228] sm:$0xff] %v433_v5   ;;  %v445_v8 = vld [vmem:[%s6151_s29 + $0x1200] sm:$0xff]  }
  0x38   : > { %438 = vst [vmem:[%s6156_s30 + $0x230] sm:$0xff] %v437_v6   ;;  %442 = vst [vmem:[%s6156_s30 + $0x238] sm:$0xff] %v441_v7   ;;  %v449_v9 = vld [vmem:[%s6151_s29 + $0x1208] sm:$0xff]   ;;  %v453_v10 = vld [vmem:[%s6151_s29 + $0x1210] sm:$0xff]  }
  0x39   : > { %446 = vst [vmem:[%s6156_s30 + $0x240] sm:$0xff] %v445_v8   ;;  %450 = vst [vmem:[%s6156_s30 + $0x248] sm:$0xff] %v449_v9   ;;  %v457_v11 = vld [vmem:[%s6151_s29 + $0x1218] sm:$0xff]   ;;  %v461_v12 = vld [vmem:[%s6151_s29 + $0x1220] sm:$0xff]  }
  0x3a   : > { %454 = vst [vmem:[%s6156_s30 + $0x250] sm:$0xff] %v453_v10   ;;  %v465_v13 = vld [vmem:[%s6151_s29 + $0x1228] sm:$0xff]   ;;  %458 = vst [vmem:[%s6156_s30 + $0x258] sm:$0xff] %v457_v11   ;;  %v469_v14 = vld [vmem:[%s6151_s29 + $0x1230] sm:$0xff]  }
  0x3b   : > { %462 = vst [vmem:[%s6156_s30 + $0x260] sm:$0xff] %v461_v12   ;;  %466 = vst [vmem:[%s6156_s30 + $0x268] sm:$0xff] %v465_v13   ;;  %v473_v15 = vld [vmem:[%s6151_s29 + $0x1238] sm:$0xff]   ;;  %v477_v16 = vld [vmem:[%s6151_s29 + $0x1400] sm:$0xff]  }
  0x3c   : > { %470 = vst [vmem:[%s6156_s30 + $0x270] sm:$0xff] %v469_v14   ;;  %474 = vst [vmem:[%s6156_s30 + $0x278] sm:$0xff] %v473_v15   ;;  %v481_v17 = vld [vmem:[%s6151_s29 + $0x1408] sm:$0xff]   ;;  %v485_v18 = vld [vmem:[%s6151_s29 + $0x1410] sm:$0xff]  }
  0x3d   : > { %478 = vst [vmem:[%s6156_s30 + $0x280] sm:$0xff] %v477_v16   ;;  %v489_v19 = vld [vmem:[%s6151_s29 + $0x1418] sm:$0xff]   ;;  %482 = vst [vmem:[%s6156_s30 + $0x288] sm:$0xff] %v481_v17   ;;  %v493_v20 = vld [vmem:[%s6151_s29 + $0x1420] sm:$0xff]  }
  0x3e   : > { %486 = vst [vmem:[%s6156_s30 + $0x290] sm:$0xff] %v485_v18   ;;  %490 = vst [vmem:[%s6156_s30 + $0x298] sm:$0xff] %v489_v19   ;;  %v497_v21 = vld [vmem:[%s6151_s29 + $0x1428] sm:$0xff]   ;;  %v501_v22 = vld [vmem:[%s6151_s29 + $0x1430] sm:$0xff]  }
  0x3f   : > { %494 = vst [vmem:[%s6156_s30 + $0x2a0] sm:$0xff] %v493_v20   ;;  %498 = vst [vmem:[%s6156_s30 + $0x2a8] sm:$0xff] %v497_v21   ;;  %v505_v23 = vld [vmem:[%s6151_s29 + $0x1438] sm:$0xff]   ;;  %v509_v24 = vld [vmem:[%s6151_s29 + $0x1600] sm:$0xff]  }
  0x40   : > { %502 = vst [vmem:[%s6156_s30 + $0x2b0] sm:$0xff] %v501_v22   ;;  %v513_v25 = vld [vmem:[%s6151_s29 + $0x1608] sm:$0xff]   ;;  %506 = vst [vmem:[%s6156_s30 + $0x2b8] sm:$0xff] %v505_v23   ;;  %v517_v26 = vld [vmem:[%s6151_s29 + $0x1610] sm:$0xff]  }
  0x41   : > { %510 = vst [vmem:[%s6156_s30 + $0x2c0] sm:$0xff] %v509_v24   ;;  %514 = vst [vmem:[%s6156_s30 + $0x2c8] sm:$0xff] %v513_v25   ;;  %v521_v27 = vld [vmem:[%s6151_s29 + $0x1618] sm:$0xff]   ;;  %v525_v28 = vld [vmem:[%s6151_s29 + $0x1620] sm:$0xff]  }
  0x42   : > { %518 = vst [vmem:[%s6156_s30 + $0x2d0] sm:$0xff] %v517_v26   ;;  %522 = vst [vmem:[%s6156_s30 + $0x2d8] sm:$0xff] %v521_v27   ;;  %v529_v29 = vld [vmem:[%s6151_s29 + $0x1628] sm:$0xff]   ;;  %v533_v30 = vld [vmem:[%s6151_s29 + $0x1630] sm:$0xff]  }
  0x43   : > { %526 = vst [vmem:[%s6156_s30 + $0x2e0] sm:$0xff] %v525_v28   ;;  %v537_v31 = vld [vmem:[%s6151_s29 + $0x1638] sm:$0xff]   ;;  %530 = vst [vmem:[%s6156_s30 + $0x2e8] sm:$0xff] %v529_v29   ;;  %v541_v32 = vld [vmem:[%s6151_s29 + $0x1800] sm:$0xff]  }
  0x44   : > { %534 = vst [vmem:[%s6156_s30 + $0x2f0] sm:$0xff] %v533_v30   ;;  %538 = vst [vmem:[%s6156_s30 + $0x2f8] sm:$0xff] %v537_v31   ;;  %v545_v33 = vld [vmem:[%s6151_s29 + $0x1808] sm:$0xff]   ;;  %v549_v34 = vld [vmem:[%s6151_s29 + $0x1810] sm:$0xff]  }
  0x45   : > { %542 = vst [vmem:[%s6156_s30 + $0x300] sm:$0xff] %v541_v32   ;;  %546 = vst [vmem:[%s6156_s30 + $0x308] sm:$0xff] %v545_v33   ;;  %v553_v35 = vld [vmem:[%s6151_s29 + $0x1818] sm:$0xff]   ;;  %v557_v36 = vld [vmem:[%s6151_s29 + $0x1820] sm:$0xff]  }
  0x46   : > { %550 = vst [vmem:[%s6156_s30 + $0x310] sm:$0xff] %v549_v34   ;;  %v561_v37 = vld [vmem:[%s6151_s29 + $0x1828] sm:$0xff]   ;;  %554 = vst [vmem:[%s6156_s30 + $0x318] sm:$0xff] %v553_v35   ;;  %v565_v38 = vld [vmem:[%s6151_s29 + $0x1830] sm:$0xff]  }
  0x47   : > { %558 = vst [vmem:[%s6156_s30 + $0x320] sm:$0xff] %v557_v36   ;;  %562 = vst [vmem:[%s6156_s30 + $0x328] sm:$0xff] %v561_v37   ;;  %v569_v39 = vld [vmem:[%s6151_s29 + $0x1838] sm:$0xff]   ;;  %v573_v40 = vld [vmem:[%s6151_s29 + $0x1a00] sm:$0xff]  }
  0x48   : > { %566 = vst [vmem:[%s6156_s30 + $0x330] sm:$0xff] %v565_v38   ;;  %570 = vst [vmem:[%s6156_s30 + $0x338] sm:$0xff] %v569_v39   ;;  %v577_v41 = vld [vmem:[%s6151_s29 + $0x1a08] sm:$0xff]   ;;  %v581_v42 = vld [vmem:[%s6151_s29 + $0x1a10] sm:$0xff]  }
  0x49   : > { %574 = vst [vmem:[%s6156_s30 + $0x340] sm:$0xff] %v573_v40   ;;  %v585_v43 = vld [vmem:[%s6151_s29 + $0x1a18] sm:$0xff]   ;;  %578 = vst [vmem:[%s6156_s30 + $0x348] sm:$0xff] %v577_v41   ;;  %v589_v44 = vld [vmem:[%s6151_s29 + $0x1a20] sm:$0xff]  }
  0x4a   : > { %582 = vst [vmem:[%s6156_s30 + $0x350] sm:$0xff] %v581_v42   ;;  %586 = vst [vmem:[%s6156_s30 + $0x358] sm:$0xff] %v585_v43   ;;  %v593_v45 = vld [vmem:[%s6151_s29 + $0x1a28] sm:$0xff]   ;;  %v597_v46 = vld [vmem:[%s6151_s29 + $0x1a30] sm:$0xff]  }
  0x4b   : > { %590 = vst [vmem:[%s6156_s30 + $0x360] sm:$0xff] %v589_v44   ;;  %594 = vst [vmem:[%s6156_s30 + $0x368] sm:$0xff] %v593_v45   ;;  %v601_v47 = vld [vmem:[%s6151_s29 + $0x1a38] sm:$0xff]   ;;  %v605_v48 = vld [vmem:[%s6151_s29 + $0x1c00] sm:$0xff]  }
  0x4c   : > { %598 = vst [vmem:[%s6156_s30 + $0x370] sm:$0xff] %v597_v46   ;;  %v609_v49 = vld [vmem:[%s6151_s29 + $0x1c08] sm:$0xff]   ;;  %602 = vst [vmem:[%s6156_s30 + $0x378] sm:$0xff] %v601_v47   ;;  %v613_v50 = vld [vmem:[%s6151_s29 + $0x1c10] sm:$0xff]  }
  0x4d   : > { %606 = vst [vmem:[%s6156_s30 + $0x380] sm:$0xff] %v605_v48   ;;  %610 = vst [vmem:[%s6156_s30 + $0x388] sm:$0xff] %v609_v49   ;;  %v617_v51 = vld [vmem:[%s6151_s29 + $0x1c18] sm:$0xff]   ;;  %v621_v52 = vld [vmem:[%s6151_s29 + $0x1c20] sm:$0xff]  }
  0x4e   : > { %614 = vst [vmem:[%s6156_s30 + $0x390] sm:$0xff] %v613_v50   ;;  %618 = vst [vmem:[%s6156_s30 + $0x398] sm:$0xff] %v617_v51   ;;  %v625_v53 = vld [vmem:[%s6151_s29 + $0x1c28] sm:$0xff]   ;;  %v629_v54 = vld [vmem:[%s6151_s29 + $0x1c30] sm:$0xff]  }
  0x4f   : > { %622 = vst [vmem:[%s6156_s30 + $0x3a0] sm:$0xff] %v621_v52   ;;  %v633_v55 = vld [vmem:[%s6151_s29 + $0x1c38] sm:$0xff]   ;;  %626 = vst [vmem:[%s6156_s30 + $0x3a8] sm:$0xff] %v625_v53   ;;  %v637_v56 = vld [vmem:[%s6151_s29 + $0x1e00] sm:$0xff]  }
  0x50   : > { %630 = vst [vmem:[%s6156_s30 + $0x3b0] sm:$0xff] %v629_v54   ;;  %634 = vst [vmem:[%s6156_s30 + $0x3b8] sm:$0xff] %v633_v55   ;;  %v641_v57 = vld [vmem:[%s6151_s29 + $0x1e08] sm:$0xff]   ;;  %v645_v58 = vld [vmem:[%s6151_s29 + $0x1e10] sm:$0xff]  }
  0x51   : > { %638 = vst [vmem:[%s6156_s30 + $0x3c0] sm:$0xff] %v637_v56   ;;  %642 = vst [vmem:[%s6156_s30 + $0x3c8] sm:$0xff] %v641_v57   ;;  %v649_v59 = vld [vmem:[%s6151_s29 + $0x1e18] sm:$0xff]   ;;  %v653_v60 = vld [vmem:[%s6151_s29 + $0x1e20] sm:$0xff]  }
  0x52   : > { %646 = vst [vmem:[%s6156_s30 + $0x3d0] sm:$0xff] %v645_v58   ;;  %v657_v61 = vld [vmem:[%s6151_s29 + $0x1e28] sm:$0xff]   ;;  %650 = vst [vmem:[%s6156_s30 + $0x3d8] sm:$0xff] %v649_v59   ;;  %v661_v62 = vld [vmem:[%s6151_s29 + $0x1e30] sm:$0xff]  }
  0x53   : > { %654 = vst [vmem:[%s6156_s30 + $0x3e0] sm:$0xff] %v653_v60   ;;  %658 = vst [vmem:[%s6156_s30 + $0x3e8] sm:$0xff] %v657_v61   ;;  %v665_v63 = vld [vmem:[%s6151_s29 + $0x1e38] sm:$0xff]  }
  0x54   : > { %662 = vst [vmem:[%s6156_s30 + $0x3f0] sm:$0xff] %v661_v62   ;;  %666 = vst [vmem:[%s6156_s30 + $0x3f8] sm:$0xff] %v665_v63  }
  0x55 PF: > { %p4771_p10 = scmp.ge.s32.totalorder %s6074_s15, 1  ;;  %p1203_p11 = scmp.lt.s32.totalorder %s6074_s15, 9 }
  0x57   : > { %p1204_p12 = pnand %p4771_p10, %p1203_p11 }
  0x58   : > { %s6419_s6 = sand.u32 (!%p1204_p12), 1, %s6066_s13   ;;  %s5311_s5 = sshll.u32 (!%p1204_p12), %s4764_s16, 10 }
  0x59   : > { %1207 = sbr.rel (%p1204_p12) target bundleno = 574 (0x23e), region = 69  ;;  %s4772_s9 = sshll.u32 (!%p1204_p12), %s6419_s6, 10 }
  0x5a   : > { %s6431_s10 = scalar_lea.vmem (!%p1204_p12), [#allocation2], %s4772_s9  ;;  %s4773_s28 = sshll.u32 (!%p1204_p12), %s6419_s6, 6 }
  0x5b   : > { %s7393_s29 = scalar_lea.vmem (!%p1204_p12), [#allocation3], %s4773_s28  ;;  %s4684_s11 = scalar_lea.sflag (!%p1204_p12), [#allocation4], %s6419_s6 }
  0x5c   : > { %s4697_s7 = sshll.u32 (!%p1204_p12), %s7393_s29, 4  ;;  %s6076_s16 = smov (!%p1204_p12), [#allocation3]   ;;  %s7439_s7 = int_to_ptr.vmem [resolvable:$true] %s4697_s7 }
  0x5d   : > { %s6014_s17 = scalar_lea.vmem (!%p1204_p12), %s7439_s7, 1024  ;;  %s6018_s19 = sshll.u32 (!%p1204_p12), %s6076_s16, 4  ;;  %s6019_s19 = int_to_ptr.vmem [resolvable:$false] %s6018_s19 }
  0x5e   : > { %v6416_v0 = vld [vmem:[%s7483_s1 + $0x8] sm:$0xff]   ;;  %v6424_v1 = vld [vmem:[%s7483_s1] sm:$0xff]   ;;  %vm1315_vm0 = vcmask 261120   ;;  %v5886_v6 = vld [vmem:[%s6431_s10 + $0x10] sm:$0xff]   ;;  %p6015_p13 = scmp.ne.s32.totalorder %s7439_s7, %s6014_s17  ;;  %s6020_s20 = scalar_lea.vmem %s6019_s19, 2048 }
  0x5f   : > { %5519 = vmatprep.subr.bf16.mxu0 %v6416_v0  ;;  %5539 = vmatprep.subr.bf16.mxu1 %v6416_v0  ;;  %v5882_v2 = vld [vmem:[%s6431_s10] sm:$0xff]   ;;  %v5884_v4 = vld [vmem:[%s6431_s10 + $0x8] sm:$0xff]   ;;  %v5887_v7 = vld [vmem:[%s6431_s10 + $0x50] sm:$0xff]   ;;  %p6021_p2 = scmp.lt.s32.totalorder %s7439_s7, %s6019_s19  ;;  %p6022_p3 = scmp.lt.s32.totalorder %s6020_s20, %s6014_s17 }
  0x60   : > { %5520 = vmatpush3.bf16.msra.mxu0 %v6416_v0  ;;  %5540 = vmatpush3.bf16.msra.mxu1 %v6416_v0  ;;  %v5883_v3 = vld [vmem:[%s6431_s10 + $0x40] sm:$0xff]   ;;  %v5885_v5 = vld [vmem:[%s6431_s10 + $0x48] sm:$0xff]   ;;  %v5888_v8 = vld [vmem:[%s6431_s10 + $0x18] sm:$0xff]   ;;  %p6016_p0 = pnand %p6015_p13, %p6137_p6 }
  0x61   : > { %5521 = vmatprep.subr.bf16.mxu0 %v6424_v1  ;;  %5541 = vmatprep.subr.bf16.mxu1 %v6424_v1  ;;  %v5889_v9 = vld [vmem:[%s6431_s10 + $0x58] sm:$0xff]   ;;  %v5890_v10 = vld [vmem:[%s6431_s10 + $0x20] sm:$0xff]   ;;  %v5892_v12 = vld [vmem:[%s6431_s10 + $0x28] sm:$0xff]   ;;  %p6023_p4 = por %p6022_p3, %p6021_p2 }
  0x62   : > { %5523 = vmatprep.mubr.msk.bf16.mxu0 %vm1315_vm0, %v5882_v2  ;;  %5543 = vmatprep.mubr.msk.bf16.mxu1 %vm1315_vm0, %v5883_v3  ;;  %v5891_v11 = vld [vmem:[%s6431_s10 + $0x60] sm:$0xff]   ;;  %v5893_v13 = vld [vmem:[%s6431_s10 + $0x68] sm:$0xff]   ;;  %v5894_v14 = vld [vmem:[%s6431_s10 + $0x30] sm:$0xff]   ;;  %p6017_p1 = pneg %p6016_p0 }
  0x63   : > { %v5895_v15 = vld [vmem:[%s6431_s10 + $0x70] sm:$0xff]   ;;  %v5896_v16 = vld [vmem:[%s6431_s10 + $0x38] sm:$0xff]   ;;  %v5898_v18 = vld [vmem:[%s6431_s10 + $0x80] sm:$0xff]  }
  0x64   : > { %5522 = vmatpush3.bf16.msra.mxu0 %v6424_v1  ;;  %5542 = vmatpush3.bf16.msra.mxu1 %v6424_v1  ;;  %v5897_v17 = vld [vmem:[%s6431_s10 + $0x78] sm:$0xff]   ;;  %v5899_v19 = vld [vmem:[%s6431_s10 + $0xc0] sm:$0xff]   ;;  %v5900_v20 = vld [vmem:[%s6431_s10 + $0x88] sm:$0xff]   ;;  %p6024_p5 = pnand %p6023_p4, %p6017_p1 }
  0x65   : > { %5559 = vmatprep.subr.bf16.mxu0 %v6416_v0  ;;  %5579 = vmatprep.subr.bf16.mxu1 %v6416_v0  ;;  %v5901_v21 = vld [vmem:[%s6431_s10 + $0xc8] sm:$0xff]   ;;  %v5902_v22 = vld [vmem:[%s6431_s10 + $0x90] sm:$0xff]   ;;  %v5904_v24 = vld [vmem:[%s6431_s10 + $0x98] sm:$0xff]  }
  0x66   : > { %v5903_v23 = vld [vmem:[%s6431_s10 + $0xd0] sm:$0xff]   ;;  %v5905_v25 = vld [vmem:[%s6431_s10 + $0xd8] sm:$0xff]   ;;  %v5906_v26 = vld [vmem:[%s6431_s10 + $0xa0] sm:$0xff]  }
  0x67   : > { %5524 = vmatmul.mubr.msk.bf16.vlgmr.msra.gmra.mxu0 %vm1315_vm0, %v5884_v4  ;;  %5544 = vmatmul.mubr.msk.bf16.vlgmr.msra.gmra.mxu1 %vm1315_vm0, %v5885_v5  ;;  %v5907_v27 = vld [vmem:[%s6431_s10 + $0xe0] sm:$0xff]   ;;  %v5908_v28 = vld [vmem:[%s6431_s10 + $0xa8] sm:$0xff]   ;;  %v5910_v30 = vld [vmem:[%s6431_s10 + $0xb0] sm:$0xff]  }
  0x68   : > { %5560 = vmatpush3.bf16.msra.mxu0 %v6416_v0  ;;  %5580 = vmatpush3.bf16.msra.mxu1 %v6416_v0  ;;  %v5909_v29 = vld [vmem:[%s6431_s10 + $0xe8] sm:$0xff]   ;;  %v5911_v31 = vld [vmem:[%s6431_s10 + $0xf0] sm:$0xff]   ;;  %v5912_v32 = vld [vmem:[%s6431_s10 + $0xb8] sm:$0xff]  }
  0x69   : > { %5527 = vmatprep.mubr.msk.bf16.mxu0 %vm1315_vm0, %v5886_v6  ;;  %5547 = vmatprep.mubr.msk.bf16.mxu1 %vm1315_vm0, %v5887_v7  ;;  %v5913_v33 = vld [vmem:[%s6431_s10 + $0xf8] sm:$0xff]   ;;  %v5914_v34 = vld [vmem:[%s6431_s10 + $0x100] sm:$0xff]   ;;  %v5916_v36 = vld [vmem:[%s6431_s10 + $0x108] sm:$0xff]  }
  0x6a   : > { %5561 = vmatprep.subr.bf16.mxu0 %v6424_v1  ;;  %5581 = vmatprep.subr.bf16.mxu1 %v6424_v1  ;;  %v5915_v35 = vld [vmem:[%s6431_s10 + $0x140] sm:$0xff]   ;;  %v5917_v37 = vld [vmem:[%s6431_s10 + $0x148] sm:$0xff]   ;;  %v5918_v38 = vld [vmem:[%s6431_s10 + $0x110] sm:$0xff]  }
  0x6b   : > { %v5919_v39 = vld [vmem:[%s6431_s10 + $0x150] sm:$0xff]   ;;  %v5920_v40 = vld [vmem:[%s6431_s10 + $0x118] sm:$0xff]   ;;  %v5922_v42 = vld [vmem:[%s6431_s10 + $0x120] sm:$0xff]  }
  0x6c   : > { %5562 = vmatpush3.bf16.msra.mxu0 %v6424_v1  ;;  %5582 = vmatpush3.bf16.msra.mxu1 %v6424_v1  ;;  %v5921_v41 = vld [vmem:[%s6431_s10 + $0x158] sm:$0xff]   ;;  %v5923_v43 = vld [vmem:[%s6431_s10 + $0x160] sm:$0xff]   ;;  %v5924_v44 = vld [vmem:[%s6431_s10 + $0x128] sm:$0xff]  }
  0x6d   : > { %5599 = vmatprep.subr.bf16.mxu0 %v6416_v0  ;;  %5619 = vmatprep.subr.bf16.mxu1 %v6416_v0  ;;  %v5925_v45 = vld [vmem:[%s6431_s10 + $0x168] sm:$0xff]   ;;  %v5926_v46 = vld [vmem:[%s6431_s10 + $0x130] sm:$0xff]   ;;  %v5928_v48 = vld [vmem:[%s6431_s10 + $0x138] sm:$0xff]  }
  0x6e   : > { %v5927_v47 = vld [vmem:[%s6431_s10 + $0x170] sm:$0xff]   ;;  %v5929_v49 = vld [vmem:[%s6431_s10 + $0x178] sm:$0xff]   ;;  %v5930_v50 = vld [vmem:[%s6431_s10 + $0x180] sm:$0xff]  }
  0x6f   : > { %5528 = vmatmul.mubr.msk.bf16.gmra.mxu0 %vm1315_vm0, %v5888_v8  ;;  %5548 = vmatmul.mubr.msk.bf16.gmra.mxu1 %vm1315_vm0, %v5889_v9  ;;  %v5931_v51 = vld [vmem:[%s6431_s10 + $0x1c0] sm:$0xff]   ;;  %v5932_v52 = vld [vmem:[%s6431_s10 + $0x188] sm:$0xff]   ;;  %v5934_v54 = vld [vmem:[%s6431_s10 + $0x190] sm:$0xff]  }
  0x70   : > { %5531 = vmatprep.mubr.msk.bf16.mxu0 %vm1315_vm0, %v5890_v10  ;;  %5551 = vmatprep.mubr.msk.bf16.mxu1 %vm1315_vm0, %v5891_v11  ;;  %v5933_v53 = vld [vmem:[%s6431_s10 + $0x1c8] sm:$0xff]   ;;  %v5935_v55 = vld [vmem:[%s6431_s10 + $0x1d0] sm:$0xff]   ;;  %v5936_v56 = vld [vmem:[%s6431_s10 + $0x198] sm:$0xff]  }
  0x71   : > { %v5937_v57 = vld [vmem:[%s6431_s10 + $0x1d8] sm:$0xff]   ;;  %v5938_v58 = vld [vmem:[%s6431_s10 + $0x1a0] sm:$0xff]   ;;  %v5940_v60 = vld [vmem:[%s6431_s10 + $0x1a8] sm:$0xff]  }
  0x72   : > { %v5939_v59 = vld [vmem:[%s6431_s10 + $0x1e0] sm:$0xff]   ;;  %v5941_v61 = vld [vmem:[%s6431_s10 + $0x1e8] sm:$0xff]   ;;  %v5942_v62 = vld [vmem:[%s6431_s10 + $0x1b0] sm:$0xff]  }
  0x73   : > { %v5943_v63 = vld [vmem:[%s6431_s10 + $0x1f0] sm:$0xff]   ;;  %v5944_v2 = vld [vmem:[%s6431_s10 + $0x1b8] sm:$0xff]   ;;  %v5946_v4 = vld [vmem:[%s6431_s10 + $0x200] sm:$0xff]  }
  0x74   : > { %v5945_v3 = vld [vmem:[%s6431_s10 + $0x1f8] sm:$0xff]   ;;  %v5947_v5 = vld [vmem:[%s6431_s10 + $0x240] sm:$0xff]   ;;  %v5948_v6 = vld [vmem:[%s6431_s10 + $0x208] sm:$0xff]  }
  0x75   : > { %v5949_v7 = vld [vmem:[%s6431_s10 + $0x248] sm:$0xff]   ;;  %v5950_v8 = vld [vmem:[%s6431_s10 + $0x210] sm:$0xff]   ;;  %v5952_v10 = vld [vmem:[%s6431_s10 + $0x218] sm:$0xff]  }
  0x76   : > { %v5951_v9 = vld [vmem:[%s6431_s10 + $0x250] sm:$0xff]   ;;  %v5953_v11 = vld [vmem:[%s6431_s10 + $0x258] sm:$0xff]  }
  0x77   : > { %5532 = vmatmul.mubr.msk.bf16.gmra.mxu0 %vm1315_vm0, %v5892_v12  ;;  %5552 = vmatmul.mubr.msk.bf16.gmra.mxu1 %vm1315_vm0, %v5893_v13  ;;  %v5954_v12 = vld [vmem:[%s6431_s10 + $0x220] sm:$0xff]  }
  0x78   : > { %5535 = vmatprep.mubr.msk.bf16.mxu0 %vm1315_vm0, %v5894_v14  ;;  %5555 = vmatprep.mubr.msk.bf16.mxu1 %vm1315_vm0, %v5895_v15  ;;  %v5955_v13 = vld [vmem:[%s6431_s10 + $0x260] sm:$0xff]   ;;  %v5956_v14 = vld [vmem:[%s6431_s10 + $0x228] sm:$0xff]  }
  0x79   : > { %v5957_v15 = vld [vmem:[%s6431_s10 + $0x268] sm:$0xff]  }
  0x7f   : > { %5536 = vmatmul.mubr.msk.bf16.gmra.mxu0 %vm1315_vm0, %v5896_v16  ;;  %5556 = vmatmul.mubr.msk.bf16.gmra.mxu1 %vm1315_vm0, %v5897_v17  ;;  %v5958_v16 = vld [vmem:[%s6431_s10 + $0x230] sm:$0xff]  }
  0x80   : > { %5563 = vmatprep.mubr.msk.bf16.mxu0 %vm1315_vm0, %v5898_v18  ;;  %5583 = vmatprep.mubr.msk.bf16.mxu1 %vm1315_vm0, %v5899_v19  ;;  %v5959_v17 = vld [vmem:[%s6431_s10 + $0x270] sm:$0xff]   ;;  %v5960_v18 = vld [vmem:[%s6431_s10 + $0x238] sm:$0xff]  }
  0x81   : > { %v5961_v19 = vld [vmem:[%s6431_s10 + $0x278] sm:$0xff]  }
  0x87   : > { %5564 = vmatmul.mubr.msk.bf16.vlgmr.msra.gmra.mxu0 %vm1315_vm0, %v5900_v20  ;;  %5584 = vmatmul.mubr.msk.bf16.vlgmr.msra.gmra.mxu1 %vm1315_vm0, %v5901_v21  ;;  %v5962_v20 = vld [vmem:[%s6431_s10 + $0x280] sm:$0xff]  }
  0x88   : > { %5600 = vmatpush3.bf16.msra.mxu0 %v6416_v0  ;;  %5620 = vmatpush3.bf16.msra.mxu1 %v6416_v0  ;;  %v5963_v21 = vld [vmem:[%s6431_s10 + $0x2c0] sm:$0xff]  }
  0x89   : > { %5567 = vmatprep.mubr.msk.bf16.mxu0 %vm1315_vm0, %v5902_v22  ;;  %5587 = vmatprep.mubr.msk.bf16.mxu1 %vm1315_vm0, %v5903_v23  ;;  %v5964_v22 = vld [vmem:[%s6431_s10 + $0x288] sm:$0xff]  }
  0x8a   : > { %5601 = vmatprep.subr.bf16.mxu0 %v6424_v1  ;;  %5621 = vmatprep.subr.bf16.mxu1 %v6424_v1  ;;  %v5965_v23 = vld [vmem:[%s6431_s10 + $0x2c8] sm:$0xff]  }
  0x8c   : > { %5602 = vmatpush3.bf16.msra.mxu0 %v6424_v1  ;;  %5622 = vmatpush3.bf16.msra.mxu1 %v6424_v1 }
  0x8d   : > { %5639 = vmatprep.subr.bf16.mxu0 %v6416_v0  ;;  %5659 = vmatprep.subr.bf16.mxu1 %v6416_v0 }
  0x8f   : > { %5568 = vmatmul.mubr.msk.bf16.gmra.mxu0 %vm1315_vm0, %v5904_v24  ;;  %5588 = vmatmul.mubr.msk.bf16.gmra.mxu1 %vm1315_vm0, %v5905_v25  ;;  %v5966_v24 = vld [vmem:[%s6431_s10 + $0x290] sm:$0xff]  }
  0x90   : > { %5571 = vmatprep.mubr.msk.bf16.mxu0 %vm1315_vm0, %v5906_v26  ;;  %5591 = vmatprep.mubr.msk.bf16.mxu1 %vm1315_vm0, %v5907_v27  ;;  %v5967_v25 = vld [vmem:[%s6431_s10 + $0x2d0] sm:$0xff]   ;;  %v5968_v26 = vld [vmem:[%s6431_s10 + $0x298] sm:$0xff]  }
  0x91   : > { %v5969_v27 = vld [vmem:[%s6431_s10 + $0x2d8] sm:$0xff]  }
  0x97   : > { %5572 = vmatmul.mubr.msk.bf16.gmra.mxu0 %vm1315_vm0, %v5908_v28  ;;  %5592 = vmatmul.mubr.msk.bf16.gmra.mxu1 %vm1315_vm0, %v5909_v29  ;;  %v5970_v28 = vld [vmem:[%s6431_s10 + $0x2a0] sm:$0xff]  }
  0x98   : > { %5575 = vmatprep.mubr.msk.bf16.mxu0 %vm1315_vm0, %v5910_v30  ;;  %5595 = vmatprep.mubr.msk.bf16.mxu1 %vm1315_vm0, %v5911_v31  ;;  %v5971_v29 = vld [vmem:[%s6431_s10 + $0x2e0] sm:$0xff]   ;;  %v5972_v30 = vld [vmem:[%s6431_s10 + $0x2a8] sm:$0xff]  }
  0x99   : > { %v5973_v31 = vld [vmem:[%s6431_s10 + $0x2e8] sm:$0xff]  }
  0x9f   : > { %5576 = vmatmul.mubr.msk.bf16.gmra.mxu0 %vm1315_vm0, %v5912_v32  ;;  %5596 = vmatmul.mubr.msk.bf16.gmra.mxu1 %vm1315_vm0, %v5913_v33  ;;  %v5975_v32 = vld [vmem:[%s6431_s10 + $0x2f0] sm:$0xff]   ;;  %v5977_v33 = vld [vmem:[%s6431_s10 + $0x2f8] sm:$0xff]  }
  0xa0   : > { %5603 = vmatprep.mubr.msk.bf16.mxu0 %vm1315_vm0, %v5914_v34  ;;  %5623 = vmatprep.mubr.msk.bf16.mxu1 %vm1315_vm0, %v5915_v35  ;;  %v5978_v34 = vld [vmem:[%s6431_s10 + $0x300] sm:$0xff]  }
  0xa1   : > { %v5979_v35 = vld [vmem:[%s6431_s10 + $0x340] sm:$0xff]  }
  0xa7   : > { %5604 = vmatmul.mubr.msk.bf16.vlgmr.msra.gmra.mxu0 %vm1315_vm0, %v5916_v36  ;;  %5624 = vmatmul.mubr.msk.bf16.vlgmr.msra.gmra.mxu1 %vm1315_vm0, %v5917_v37  ;;  %v5980_v36 = vld [vmem:[%s6431_s10 + $0x308] sm:$0xff]  }
  0xa8   : > { %5640 = vmatpush3.bf16.msra.mxu0 %v6416_v0  ;;  %5660 = vmatpush3.bf16.msra.mxu1 %v6416_v0  ;;  %v5981_v37 = vld [vmem:[%s6431_s10 + $0x348] sm:$0xff]  }
  0xa9   : > { %5607 = vmatprep.mubr.msk.bf16.mxu0 %vm1315_vm0, %v5918_v38  ;;  %5627 = vmatprep.mubr.msk.bf16.mxu1 %vm1315_vm0, %v5919_v39  ;;  %v6688_v38 = vld [vmem:[%s7484_s2] ss:$0 sm:$0xff]  ;;  %v5982_v39 = vld [vmem:[%s6431_s10 + $0x310] sm:$0xff]  }
  0xaa   : > { %5641 = vmatprep.subr.bf16.mxu0 %v6424_v1  ;;  %5661 = vmatprep.subr.bf16.mxu1 %v6424_v1 }
  0xac   : > { %5642 = vmatpush3.bf16.msra.mxu0 %v6424_v1  ;;  %5662 = vmatpush3.bf16.msra.mxu1 %v6424_v1 }
  0xad   : > { %5679 = vmatprep.subr.bf16.mxu0 %v6416_v0  ;;  %5699 = vmatprep.subr.bf16.mxu1 %v6416_v0 }
  0xaf   : > { %5608 = vmatmul.mubr.msk.bf16.gmra.mxu0 %vm1315_vm0, %v5920_v40  ;;  %5628 = vmatmul.mubr.msk.bf16.gmra.mxu1 %vm1315_vm0, %v5921_v41  ;;  %v5983_v40 = vld [vmem:[%s6431_s10 + $0x350] sm:$0xff]  }
  0xb0   : > { %5611 = vmatprep.mubr.msk.bf16.mxu0 %vm1315_vm0, %v5922_v42  ;;  %5631 = vmatprep.mubr.msk.bf16.mxu1 %vm1315_vm0, %v5923_v43 }
  0xb7   : > { %5612 = vmatmul.mubr.msk.bf16.gmra.mxu0 %vm1315_vm0, %v5924_v44  ;;  %5632 = vmatmul.mubr.msk.bf16.gmra.mxu1 %vm1315_vm0, %v5925_v45  ;;  %v6010_v45 = vld [vmem:[%s7483_s1 + $0x8] sm:$0xff]  }
  0xb8   : > { %5615 = vmatprep.mubr.msk.bf16.mxu0 %vm1315_vm0, %v5926_v46  ;;  %5635 = vmatprep.mubr.msk.bf16.mxu1 %vm1315_vm0, %v5927_v47 }
  0xbf   : > { %5616 = vmatmul.mubr.msk.bf16.gmra.mxu0 %vm1315_vm0, %v5928_v48  ;;  %5636 = vmatmul.mubr.msk.bf16.gmra.mxu1 %vm1315_vm0, %v5929_v49 }
  0xc0   : > { %5643 = vmatprep.mubr.msk.bf16.mxu0 %vm1315_vm0, %v5930_v50  ;;  %5663 = vmatprep.mubr.msk.bf16.mxu1 %vm1315_vm0, %v5931_v51 }
  0xc7   : > { %5644 = vmatmul.mubr.msk.bf16.vlgmr.msra.gmra.mxu0 %vm1315_vm0, %v5932_v52  ;;  %5664 = vmatmul.mubr.msk.bf16.vlgmr.msra.gmra.mxu1 %vm1315_vm0, %v5933_v53  ;;  %v6011_v52 = vld [vmem:[%s7483_s1] sm:$0xff]  }
  0xc8   : > { %5680 = vmatpush3.bf16.msra.mxu0 %v6416_v0  ;;  %5700 = vmatpush3.bf16.msra.mxu1 %v6416_v0 }
  0xc9   : > { %5647 = vmatprep.mubr.msk.bf16.mxu0 %vm1315_vm0, %v5934_v54  ;;  %5667 = vmatprep.mubr.msk.bf16.mxu1 %vm1315_vm0, %v5935_v55  ;;  %v5984_v55 = vld [vmem:[%s6431_s10 + $0x318] sm:$0xff]  }
  0xca   : > { %5681 = vmatprep.subr.bf16.mxu0 %v6424_v1  ;;  %5701 = vmatprep.subr.bf16.mxu1 %v6424_v1 }
  0xcc   : > { %5682 = vmatpush3.bf16.msra.mxu0 %v6424_v1  ;;  %5702 = vmatpush3.bf16.msra.mxu1 %v6424_v1 }
  0xcd   : > { %5719 = vmatprep.subr.bf16.mxu0 %v6416_v0  ;;  %5739 = vmatprep.subr.bf16.mxu1 %v6416_v0 }
  0xcf   : > { %5648 = vmatmul.mubr.msk.bf16.gmra.mxu0 %vm1315_vm0, %v5936_v56  ;;  %5668 = vmatmul.mubr.msk.bf16.gmra.mxu1 %vm1315_vm0, %v5937_v57  ;;  %v5985_v56 = vld [vmem:[%s6431_s10 + $0x358] sm:$0xff]  }
  0xd0   : > { %5651 = vmatprep.mubr.msk.bf16.mxu0 %vm1315_vm0, %v5938_v58  ;;  %5671 = vmatprep.mubr.msk.bf16.mxu1 %vm1315_vm0, %v5939_v59 }
  0xd7   : > { %5652 = vmatmul.mubr.msk.bf16.gmra.mxu0 %vm1315_vm0, %v5940_v60  ;;  %5672 = vmatmul.mubr.msk.bf16.gmra.mxu1 %vm1315_vm0, %v5941_v61  ;;  %v5986_v61 = vld [vmem:[%s6431_s10 + $0x320] sm:$0xff]  }
  0xd8   : > { %5655 = vmatprep.mubr.msk.bf16.mxu0 %vm1315_vm0, %v5942_v62  ;;  %5675 = vmatprep.mubr.msk.bf16.mxu1 %vm1315_vm0, %v5943_v63  ;;  %v5987_v62 = vld [vmem:[%s6431_s10 + $0x360] sm:$0xff]  }
  0xdf   : > { %5656 = vmatmul.mubr.msk.bf16.gmra.mxu0 %vm1315_vm0, %v5944_v2  ;;  %5676 = vmatmul.mubr.msk.bf16.gmra.mxu1 %vm1315_vm0, %v5945_v3 }
  0xe0   : > { %5683 = vmatprep.mubr.msk.bf16.mxu0 %vm1315_vm0, %v5946_v4  ;;  %5703 = vmatprep.mubr.msk.bf16.mxu1 %vm1315_vm0, %v5947_v5 }
  0xe7   : > { %5684 = vmatmul.mubr.msk.bf16.vlgmr.msra.gmra.mxu0 %vm1315_vm0, %v5948_v6  ;;  %5704 = vmatmul.mubr.msk.bf16.vlgmr.msra.gmra.mxu1 %vm1315_vm0, %v5949_v7 }
  0xe8   : > { %5720 = vmatpush3.bf16.msra.mxu0 %v6416_v0  ;;  %5740 = vmatpush3.bf16.msra.mxu1 %v6416_v0 }
  0xe9   : > { %5687 = vmatprep.mubr.msk.bf16.mxu0 %vm1315_vm0, %v5950_v8  ;;  %5707 = vmatprep.mubr.msk.bf16.mxu1 %vm1315_vm0, %v5951_v9 }
  0xea   : > { %5721 = vmatprep.subr.bf16.mxu0 %v6424_v1  ;;  %5741 = vmatprep.subr.bf16.mxu1 %v6424_v1 }
  0xec   : > { %5722 = vmatpush3.bf16.msra.mxu0 %v6424_v1  ;;  %5742 = vmatpush3.bf16.msra.mxu1 %v6424_v1 }
  0xed   : > { %5759 = vmatprep.subr.bf16.mxu0 %v6416_v0  ;;  %5779 = vmatprep.subr.bf16.mxu1 %v6416_v0 }
  0xef   : > { %5688 = vmatmul.mubr.msk.bf16.gmra.mxu0 %vm1315_vm0, %v5952_v10  ;;  %5708 = vmatmul.mubr.msk.bf16.gmra.mxu1 %vm1315_vm0, %v5953_v11 }
  0xf0   : > { %5691 = vmatprep.mubr.msk.bf16.mxu0 %vm1315_vm0, %v5954_v12  ;;  %5711 = vmatprep.mubr.msk.bf16.mxu1 %vm1315_vm0, %v5955_v13 }
  0xf7   : > { %5692 = vmatmul.mubr.msk.bf16.gmra.mxu0 %vm1315_vm0, %v5956_v14  ;;  %5712 = vmatmul.mubr.msk.bf16.gmra.mxu1 %vm1315_vm0, %v5957_v15 }
  0xf8   : > { %5695 = vmatprep.mubr.msk.bf16.mxu0 %vm1315_vm0, %v5958_v16  ;;  %5715 = vmatprep.mubr.msk.bf16.mxu1 %vm1315_vm0, %v5959_v17 }
  0xff   : > { %5696 = vmatmul.mubr.msk.bf16.gmra.mxu0 %vm1315_vm0, %v5960_v18  ;;  %5716 = vmatmul.mubr.msk.bf16.gmra.mxu1 %vm1315_vm0, %v5961_v19 }
 0x100   : > { %5723 = vmatprep.mubr.msk.bf16.mxu0 %vm1315_vm0, %v5962_v20  ;;  %5743 = vmatprep.mubr.msk.bf16.mxu1 %vm1315_vm0, %v5963_v21 }
 0x107   : > { %5724 = vmatmul.mubr.msk.bf16.vlgmr.msra.gmra.mxu0 %vm1315_vm0, %v5964_v22  ;;  %5744 = vmatmul.mubr.msk.bf16.vlgmr.msra.gmra.mxu1 %vm1315_vm0, %v5965_v23 }
 0x108   : > { %5760 = vmatpush3.bf16.msra.mxu0 %v6416_v0  ;;  %5780 = vmatpush3.bf16.msra.mxu1 %v6416_v0 }
 0x109   : > { %5727 = vmatprep.mubr.msk.bf16.mxu0 %vm1315_vm0, %v5966_v24  ;;  %5747 = vmatprep.mubr.msk.bf16.mxu1 %vm1315_vm0, %v5967_v25  ;;  %v5988_v25 = vld [vmem:[%s6431_s10 + $0x328] sm:$0xff]  }
 0x10a   : > { %5761 = vmatprep.subr.bf16.mxu0 %v6424_v1  ;;  %5781 = vmatprep.subr.bf16.mxu1 %v6424_v1 }
 0x10c   : > { %5762 = vmatpush3.bf16.msra.mxu0 %v6424_v1  ;;  %5782 = vmatpush3.bf16.msra.mxu1 %v6424_v1  ;;  %v5974_v1 = vld [vmem:[%s6431_s10 + $0x2b0] sm:$0xff]  }
 0x10d   : > { %5799 = vmatprep.subr.bf16.mxu0 %v6416_v0  ;;  %5819 = vmatprep.subr.bf16.mxu1 %v6416_v0  ;;  %v5976_v0 = vld [vmem:[%s6431_s10 + $0x2b8] sm:$0xff]  }
 0x10f   : > { %5728 = vmatmul.mubr.msk.bf16.gmra.mxu0 %vm1315_vm0, %v5968_v26  ;;  %5748 = vmatmul.mubr.msk.bf16.gmra.mxu1 %vm1315_vm0, %v5969_v27  ;;  %v5989_v26 = vld [vmem:[%s6431_s10 + $0x368] sm:$0xff]  }
 0x110   : > { %5731 = vmatprep.mubr.msk.bf16.mxu0 %vm1315_vm0, %v5970_v28  ;;  %5751 = vmatprep.mubr.msk.bf16.mxu1 %vm1315_vm0, %v5971_v29 }
 0x117   : > { %5732 = vmatmul.mubr.msk.bf16.gmra.mxu0 %vm1315_vm0, %v5972_v30  ;;  %5752 = vmatmul.mubr.msk.bf16.gmra.mxu1 %vm1315_vm0, %v5973_v31  ;;  %v5990_v31 = vld [vmem:[%s6431_s10 + $0x330] sm:$0xff]  }
 0x118   : > { %5735 = vmatprep.mubr.msk.bf16.mxu0 %vm1315_vm0, %v5974_v1  ;;  %5755 = vmatprep.mubr.msk.bf16.mxu1 %vm1315_vm0, %v5975_v32  ;;  %v5991_v1 = vld [vmem:[%s6431_s10 + $0x370] sm:$0xff]  }
 0x11f   : > { %5736 = vmatmul.mubr.msk.bf16.gmra.mxu0 %vm1315_vm0, %v5976_v0  ;;  %5756 = vmatmul.mubr.msk.bf16.gmra.mxu1 %vm1315_vm0, %v5977_v33 }
 0x120   : > { %5763 = vmatprep.mubr.msk.bf16.mxu0 %vm1315_vm0, %v5978_v34  ;;  %5783 = vmatprep.mubr.msk.bf16.mxu1 %vm1315_vm0, %v5979_v35 }
 0x127   : > { %v5525_v41 = vpop.f32.mrf.mxu0  ;;  %v5545_v42 = vpop.f32.mrf.mxu1  ;;  %5764 = vmatmul.mubr.msk.bf16.vlgmr.msra.gmra.mxu0 %vm1315_vm0, %v5980_v36  ;;  %5784 = vmatmul.mubr.msk.bf16.vlgmr.msra.gmra.mxu1 %vm1315_vm0, %v5981_v37 }
 0x128   : > { %v1383_v43 = vadd.f32 %v5525_v41, %v6688_v38  ;;  %v1577_v44 = vadd.f32 %v5545_v42, %v6688_v38  ;;  %5800 = vmatpush3.bf16.msra.mxu0 %v6010_v45  ;;  %5820 = vmatpush3.bf16.msra.mxu1 %v6010_v45 }
 0x129   : > { %v1374_v46 = vpop.f32.mrf.mxu0  ;;  %v1568_v47 = vpop.f32.mrf.mxu1  ;;  %5767 = vmatprep.mubr.msk.bf16.mxu0 %vm1315_vm0, %v5982_v39  ;;  %5787 = vmatprep.mubr.msk.bf16.mxu1 %vm1315_vm0, %v5983_v40 }
 0x12a   : > { %v1439_v48 = vmax.f32 %v1383_v43, 0.0  ;;  %v1633_v49 = vmax.f32 %v1577_v44, 0.0  ;;  %v1375_v50 = vadd.f32 %v6688_v38, %v1374_v46  ;;  %v1569_v51 = vadd.f32 %v6688_v38, %v1568_v47  ;;  %5801 = vmatprep.subr.bf16.mxu0 %v6011_v52  ;;  %5821 = vmatprep.subr.bf16.mxu1 %v6011_v52 }
 0x12b   : > { %v5526_v53 = vpop.f32.mrf.mxu0  ;;  %v5546_v54 = vpop.f32.mrf.mxu1 }
 0x12c   : > { %v6708_v57 = vmax.f32 %v1439_v48, %v1633_v49  ;;  %v1437_v58 = vmax.f32 %v1375_v50, 0.0  ;;  %v1631_v59 = vmax.f32 %v1569_v51, 0.0  ;;  %v1386_v60 = vadd.f32 %v5526_v53, %v6688_v38  ;;  %5802 = vmatpush3.bf16.msra.mxu0 %v6011_v52  ;;  %5822 = vmatpush3.bf16.msra.mxu1 %v6011_v52 }
 0x12d   : > { %v1580_v63 = vadd.f32 %v5546_v54, %v6688_v38  ;;  %v1377_v2 = vpop.f32.mrf.mxu0  ;;  %v1571_v3 = vpop.f32.mrf.mxu1 }
 0x12e   : > { %v6714_v4 = vmax.f32 %v1437_v58, %v1631_v59  ;;  %v1440_v5 = vmax.f32 %v1386_v60, 0.0  ;;  %v1378_v6 = vadd.f32 %v6688_v38, %v1377_v2  ;;  %v1572_v7 = vadd.f32 %v6688_v38, %v1571_v3  ;;  %v5993_v58 = vld [vmem:[%s6431_s10 + $0x378] sm:$0xff]   ;;  %v5995_v2 = vld [vmem:[%s6431_s10 + $0x3c0] sm:$0xff]  }
 0x12f   : > { %v1634_v8 = vmax.f32 %v1580_v63, 0.0  ;;  %v5529_v9 = vpop.f32.mrf.mxu0  ;;  %v5549_v10 = vpop.f32.mrf.mxu1  ;;  %5768 = vmatmul.mubr.msk.bf16.gmra.mxu0 %vm1315_vm0, %v5984_v55  ;;  %5788 = vmatmul.mubr.msk.bf16.gmra.mxu1 %vm1315_vm0, %v5985_v56  ;;  %v5992_v56 = vld [vmem:[%s6431_s10 + $0x338] sm:$0xff]   ;;  %v5994_v63 = vld [vmem:[%s6431_s10 + $0x380] sm:$0xff]  }
 0x130   : > { %v1438_v11 = vmax.f32 %v1378_v6, 0.0  ;;  %v1632_v12 = vmax.f32 %v1572_v7, 0.0  ;;  %v1399_v13 = vadd.f32 %v5529_v9, %v6688_v38  ;;  %v1593_v14 = vadd.f32 %v5549_v10, %v6688_v38  ;;  %5771 = vmatprep.mubr.msk.bf16.mxu0 %vm1315_vm0, %v5986_v61  ;;  %5791 = vmatprep.mubr.msk.bf16.mxu1 %vm1315_vm0, %v5987_v62 }
 0x131   : > { %v6724_v15 = vmax.f32 %v1440_v5, %v1634_v8  ;;  %v1390_v16 = vpop.f32.mrf.mxu0  ;;  %v1584_v17 = vpop.f32.mrf.mxu1 }
 0x132   : > { %v6726_v18 = vmax.f32 %v1438_v11, %v1632_v12  ;;  %v1443_v19 = vmax.f32 %v1399_v13, 0.0  ;;  %v1637_v20 = vmax.f32 %v1593_v14, 0.0  ;;  %v1391_v21 = vadd.f32 %v6688_v38, %v1390_v16 }
 0x133   : > { %v1585_v22 = vadd.f32 %v6688_v38, %v1584_v17  ;;  %v5530_v23 = vpop.f32.mrf.mxu0  ;;  %v5550_v24 = vpop.f32.mrf.mxu1 }
 0x134   : > { %v6732_v27 = vmax.f32 %v1443_v19, %v1637_v20  ;;  %v1441_v28 = vmax.f32 %v1391_v21, 0.0  ;;  %v1402_v29 = vadd.f32 %v5530_v23, %v6688_v38  ;;  %v1596_v30 = vadd.f32 %v5550_v24, %v6688_v38 }
 0x135   : > { %v1635_v32 = vmax.f32 %v1585_v22, 0.0  ;;  %v1393_v0 = vpop.f32.mrf.mxu0  ;;  %v1587_v33 = vpop.f32.mrf.mxu1 }
 0x136   : > { %v1444_v34 = vmax.f32 %v1402_v29, 0.0  ;;  %v1638_v35 = vmax.f32 %v1596_v30, 0.0  ;;  %v1394_v36 = vadd.f32 %v6688_v38, %v1393_v0  ;;  %v1588_v37 = vadd.f32 %v6688_v38, %v1587_v33 }
 0x137   : > { %v6740_v39 = vmax.f32 %v1441_v28, %v1635_v32  ;;  %v5533_v40 = vpop.f32.mrf.mxu0  ;;  %v5553_v41 = vpop.f32.mrf.mxu1  ;;  %5772 = vmatmul.mubr.msk.bf16.gmra.mxu0 %vm1315_vm0, %v5988_v25  ;;  %5792 = vmatmul.mubr.msk.bf16.gmra.mxu1 %vm1315_vm0, %v5989_v26 }
 0x138   : > { %v6744_v42 = vmax.f32 %v1444_v34, %v1638_v35  ;;  %v1442_v43 = vmax.f32 %v1394_v36, 0.0  ;;  %v1636_v44 = vmax.f32 %v1588_v37, 0.0  ;;  %v1415_v45 = vadd.f32 %v5533_v40, %v6688_v38  ;;  %5775 = vmatprep.mubr.msk.bf16.mxu0 %vm1315_vm0, %v5990_v31  ;;  %5795 = vmatprep.mubr.msk.bf16.mxu1 %vm1315_vm0, %v5991_v1  ;;  %v5996_v31 = vld [vmem:[%s6431_s10 + $0x388] sm:$0xff]   ;;  %v5998_v35 = vld [vmem:[%s6431_s10 + $0x390] sm:$0xff]  }
 0x139   : > { %v1609_v46 = vadd.f32 %v5553_v41, %v6688_v38  ;;  %v1406_v47 = vpop.f32.mrf.mxu0  ;;  %v1600_v48 = vpop.f32.mrf.mxu1  ;;  %v5997_v1 = vld [vmem:[%s6431_s10 + $0x3c8] sm:$0xff]   ;;  %v5999_v36 = vld [vmem:[%s6431_s10 + $0x3d0] sm:$0xff]  }
 0x13a   : > { %v6750_v49 = vmax.f32 %v1442_v43, %v1636_v44  ;;  %v1447_v50 = vmax.f32 %v1415_v45, 0.0  ;;  %v1407_v51 = vadd.f32 %v6688_v38, %v1406_v47  ;;  %v1601_v52 = vadd.f32 %v6688_v38, %v1600_v48 }
 0x13b   : > { %v1641_v53 = vmax.f32 %v1609_v46, 0.0  ;;  %v5534_v54 = vpop.f32.mrf.mxu0  ;;  %v5554_v55 = vpop.f32.mrf.mxu1 }
 0x13c   : > { %v1445_v59 = vmax.f32 %v1407_v51, 0.0  ;;  %v1639_v60 = vmax.f32 %v1601_v52, 0.0  ;;  %v1418_v61 = vadd.f32 %v5534_v54, %v6688_v38  ;;  %v1612_v62 = vadd.f32 %v5554_v55, %v6688_v38 }
 0x13d   : > { %v6760_v3 = vmax.f32 %v1447_v50, %v1641_v53  ;;  %v1409_v5 = vpop.f32.mrf.mxu0  ;;  %v1603_v6 = vpop.f32.mrf.mxu1 }
 0x13e   : > { %v6762_v7 = vmax.f32 %v1445_v59, %v1639_v60  ;;  %v1448_v8 = vmax.f32 %v1418_v61, 0.0  ;;  %v1642_v9 = vmax.f32 %v1612_v62, 0.0  ;;  %v1410_v10 = vadd.f32 %v6688_v38, %v1409_v5 }
 0x13f   : > { %v1604_v11 = vadd.f32 %v6688_v38, %v1603_v6  ;;  %v5537_v12 = vpop.f32.mrf.mxu0  ;;  %v5557_v13 = vpop.f32.mrf.mxu1  ;;  %5776 = vmatmul.mubr.msk.bf16.gmra.mxu0 %vm1315_vm0, %v5992_v56  ;;  %5796 = vmatmul.mubr.msk.bf16.gmra.mxu1 %vm1315_vm0, %v5993_v58  ;;  %v6000_v6 = vld [vmem:[%s6431_s10 + $0x398] sm:$0xff]  }
 0x140   : > { %v6768_v14 = vmax.f32 %v1448_v8, %v1642_v9  ;;  %v1446_v16 = vmax.f32 %v1410_v10, 0.0  ;;  %v1431_v17 = vadd.f32 %v5537_v12, %v6688_v38  ;;  %v1625_v19 = vadd.f32 %v5557_v13, %v6688_v38  ;;  %5803 = vmatprep.mubr.msk.bf16.mxu0 %vm1315_vm0, %v5994_v63  ;;  %5823 = vmatprep.mubr.msk.bf16.mxu1 %vm1315_vm0, %v5995_v2  ;;  %v6001_v8 = vld [vmem:[%s6431_s10 + $0x3d8] sm:$0xff]   ;;  %v6002_v13 = vld [vmem:[%s6431_s10 + $0x3a0] sm:$0xff]  }
 0x141   : > { %v1640_v20 = vmax.f32 %v1604_v11, 0.0  ;;  %v1422_v21 = vpop.f32.mrf.mxu0  ;;  %v1616_v22 = vpop.f32.mrf.mxu1 }
 0x142   : > { %v1451_v23 = vmax.f32 %v1431_v17, 0.0  ;;  %v1645_v24 = vmax.f32 %v1625_v19, 0.0  ;;  %v1423_v25 = vadd.f32 %v6688_v38, %v1422_v21  ;;  %v1617_v26 = vadd.f32 %v6688_v38, %v1616_v22  ;;  %v6003_v19 = vld [vmem:[%s6431_s10 + $0x3e0] sm:$0xff]  }
 0x143   : > { %v6776_v28 = vmax.f32 %v1446_v16, %v1640_v20  ;;  %v5538_v29 = vpop.f32.mrf.mxu0  ;;  %v5558_v30 = vpop.f32.mrf.mxu1 }
 0x144   : > { %v6780_v32 = vmax.f32 %v1451_v23, %v1645_v24  ;;  %v1449_v0 = vmax.f32 %v1423_v25, 0.0  ;;  %v1643_v33 = vmax.f32 %v1617_v26, 0.0  ;;  %v1434_v34 = vadd.f32 %v5538_v29, %v6688_v38 }
 0x145   : > { %v1628_v37 = vadd.f32 %v5558_v30, %v6688_v38  ;;  %v1425_v40 = vpop.f32.mrf.mxu0  ;;  %v1619_v41 = vpop.f32.mrf.mxu1 }
 0x146   : > { %v6786_v43 = vmax.f32 %v1449_v0, %v1643_v33  ;;  %v1452_v44 = vmax.f32 %v1434_v34, 0.0  ;;  %v1426_v45 = vadd.f32 %v6688_v38, %v1425_v40  ;;  %v1620_v46 = vadd.f32 %v6688_v38, %v1619_v41 }
 0x147   : > { %v1646_v47 = vmax.f32 %v1628_v37, 0.0  ;;  %v5565_v48 = vpop.f32.mrf.mxu0  ;;  %v5585_v50 = vpop.f32.mrf.mxu1  ;;  %5804 = vmatmul.mubr.msk.bf16.vlgmr.msra.gmra.mxu0 %vm1315_vm0, %v5996_v31  ;;  %5824 = vmatmul.mubr.msk.bf16.vlgmr.msra.gmra.mxu1 %vm1315_vm0, %v5997_v1 }
 0x148   : > { %v1450_v51 = vmax.f32 %v1426_v45, 0.0  ;;  %v1644_v52 = vmax.f32 %v1620_v46, 0.0  ;;  %v1787_v53 = vadd.f32 %v5565_v48, %v6688_v38  ;;  %v1997_v54 = vadd.f32 %v5585_v50, %v6688_v38  ;;  %5807 = vmatprep.mubr.msk.bf16.mxu0 %vm1315_vm0, %v5998_v35  ;;  %5827 = vmatprep.mubr.msk.bf16.mxu1 %vm1315_vm0, %v5999_v36  ;;  %v6005_v48 = vld [vmem:[%s6431_s10 + $0x3e8] sm:$0xff]  }
 0x149   : > { %v6796_v55 = vmax.f32 %v1452_v44, %v1646_v47  ;;  %v1778_v56 = vpop.f32.mrf.mxu0  ;;  %v1988_v58 = vpop.f32.mrf.mxu1  ;;  %v6004_v47 = vld [vmem:[%s6431_s10 + $0x3a8] sm:$0xff]  }
 0x14a   : > { %v6798_v59 = vmax.f32 %v1450_v51, %v1644_v52  ;;  %v1843_v60 = vmax.f32 %v1787_v53, 0.0  ;;  %v2053_v61 = vmax.f32 %v1997_v54, 0.0  ;;  %v1779_v62 = vadd.f32 %v6688_v38, %v1778_v56  ;;  %v6006_v54 = vld [vmem:[%s6431_s10 + $0x3b0] sm:$0xff]  }
 0x14b   : > { %v1989_v63 = vadd.f32 %v6688_v38, %v1988_v58  ;;  %v5566_v2 = vpop.f32.mrf.mxu0  ;;  %v5586_v5 = vpop.f32.mrf.mxu1 }
 0x14c   : > { %v1859_v9 = vmax.f32 %v6708_v57, %v1843_v60  ;;  %v1841_v10 = vmax.f32 %v1779_v62, 0.0  ;;  %v1790_v11 = vadd.f32 %v5566_v2, %v6688_v38  ;;  %v2000_v12 = vadd.f32 %v5586_v5, %v6688_v38 }
 0x14d   : > { %v1781_v16 = vpop.f32.mrf.mxu0  ;;  %v1991_v17 = vpop.f32.mrf.mxu1  ;;  %v2051_v22 = vmax.f32 %v1989_v63, 0.0 }
 0x14e   : > { %v6809_v20 = vmax.f32 %v1859_v9, %v2053_v61  ;;  %v1857_v21 = vmax.f32 %v6714_v4, %v1841_v10  ;;  %v1844_v23 = vmax.f32 %v1790_v11, 0.0  ;;  %v2054_v24 = vmax.f32 %v2000_v12, 0.0 }
 0x14f   : > { %v1782_v25 = vadd.f32 %v6688_v38, %v1781_v16  ;;  %v1992_v57 = vadd.f32 %v6688_v38, %v1991_v17  ;;  %v5569_v26 = vpop.f32.mrf.mxu0  ;;  %v5589_v29 = vpop.f32.mrf.mxu1  ;;  %5808 = vmatmul.mubr.msk.bf16.gmra.mxu0 %vm1315_vm0, %v6000_v6  ;;  %5828 = vmatmul.mubr.msk.bf16.gmra.mxu1 %vm1315_vm0, %v6001_v8 }
 0x150   : > { %v6816_v30 = vmax.f32 %v1857_v21, %v2051_v22  ;;  %v1860_v31 = vmax.f32 %v6724_v15, %v1844_v23  ;;  %v1803_v1 = vadd.f32 %v5569_v26, %v6688_v38  ;;  %v2013_v4 = vadd.f32 %v5589_v29, %v6688_v38  ;;  %5811 = vmatprep.mubr.msk.bf16.mxu0 %vm1315_vm0, %v6002_v13  ;;  %v6008_v29 = vld [vmem:[%s6431_s10 + $0x3b8] sm:$0xff]  }
 0x151   : > { %v1842_v0 = vmax.f32 %v1782_v25, 0.0  ;;  %v1794_v33 = vpop.f32.mrf.mxu0  ;;  %v2004_v34 = vpop.f32.mrf.mxu1  ;;  %5831 = vmatprep.mubr.msk.bf16.mxu1 %vm1315_vm0, %v6003_v19  ;;  %v2052_v41 = vmax.f32 %v1992_v57, 0.0 }
 0x152   : > { %v6823_v35 = vmax.f32 %v1860_v31, %v2054_v24  ;;  %v1847_v36 = vmax.f32 %v1803_v1, 0.0  ;;  %v2057_v37 = vmax.f32 %v2013_v4, 0.0  ;;  %v1795_v15 = vadd.f32 %v6688_v38, %v1794_v33  ;;  %v6009_v31 = vld [vmem:[%s6431_s10 + $0x3f8] sm:$0xff]  }
 0x153   : > { %v1858_v40 = vmax.f32 %v6726_v18, %v1842_v0  ;;  %v2005_v44 = vadd.f32 %v6688_v38, %v2004_v34  ;;  %v5570_v45 = vpop.f32.mrf.mxu0  ;;  %v5590_v46 = vpop.f32.mrf.mxu1  ;;  %v6007_v18 = vld [vmem:[%s6431_s10 + $0x3f0] sm:$0xff]   ;;  %s7437_s10 = scalar_lea.hbm %s7485_s3, %s5311_s5 }
 0x154   : > { %v1863_v50 = vmax.f32 %v6732_v27, %v1847_v36  ;;  %v1845_v51 = vmax.f32 %v1795_v15, 0.0  ;;  %v1806_v52 = vadd.f32 %v5570_v45, %v6688_v38  ;;  %v2016_v53 = vadd.f32 %v5590_v46, %v6688_v38 }
 0x155   : > { %v6834_v56 = vmax.f32 %v1858_v40, %v2052_v41  ;;  %v1797_v58 = vpop.f32.mrf.mxu0  ;;  %v2007_v60 = vpop.f32.mrf.mxu1  ;;  %v2055_v63 = vmax.f32 %v2005_v44, 0.0 }
 0x156   : > { %v6837_v61 = vmax.f32 %v1863_v50, %v2057_v37  ;;  %v1861_v62 = vmax.f32 %v6740_v39, %v1845_v51  ;;  %v1848_v2 = vmax.f32 %v1806_v52, 0.0  ;;  %v2058_v5 = vmax.f32 %v2016_v53, 0.0 }
 0x157   : > { %v1798_v27 = vadd.f32 %v6688_v38, %v1797_v58  ;;  %v2008_v6 = vadd.f32 %v6688_v38, %v2007_v60  ;;  %v5573_v8 = vpop.f32.mrf.mxu0  ;;  %v5593_v9 = vpop.f32.mrf.mxu1  ;;  %5812 = vmatmul.mubr.msk.bf16.gmra.mxu0 %vm1315_vm0, %v6004_v47  ;;  %5832 = vmatmul.mubr.msk.bf16.gmra.mxu1 %vm1315_vm0, %v6005_v48 }
 0x158   : > { %v6844_v10 = vmax.f32 %v1861_v62, %v2055_v63  ;;  %v1864_v11 = vmax.f32 %v6744_v42, %v1848_v2  ;;  %v1819_v12 = vadd.f32 %v5573_v8, %v6688_v38  ;;  %v2029_v39 = vadd.f32 %v5593_v9, %v6688_v38  ;;  %5815 = vmatprep.mubr.msk.bf16.mxu0 %vm1315_vm0, %v6006_v54 }
 0x159   : > { %v1846_v13 = vmax.f32 %v1798_v27, 0.0  ;;  %v1810_v16 = vpop.f32.mrf.mxu0  ;;  %v2020_v17 = vpop.f32.mrf.mxu1  ;;  %5835 = vmatprep.mubr.msk.bf16.mxu1 %vm1315_vm0, %v6007_v18  ;;  %v2056_v24 = vmax.f32 %v2008_v6, 0.0 }
 0x15a   : > { %v6851_v19 = vmax.f32 %v1864_v11, %v2058_v5  ;;  %v1851_v21 = vmax.f32 %v1819_v12, 0.0  ;;  %v2061_v22 = vmax.f32 %v2029_v39, 0.0  ;;  %v1811_v23 = vadd.f32 %v6688_v38, %v1810_v16 }
 0x15b   : > { %v1862_v42 = vmax.f32 %v6750_v49, %v1846_v13  ;;  %v2021_v25 = vadd.f32 %v6688_v38, %v2020_v17  ;;  %v5574_v57 = vpop.f32.mrf.mxu0  ;;  %v5594_v26 = vpop.f32.mrf.mxu1 }
 0x15c   : > { %v1867_v1 = vmax.f32 %v6760_v3, %v1851_v21  ;;  %v1849_v4 = vmax.f32 %v1811_v23, 0.0  ;;  %v1822_v0 = vadd.f32 %v5574_v57, %v6688_v38  ;;  %v2032_v33 = vadd.f32 %v5594_v26, %v6688_v38 }
 0x15d   : > { %v6861_v34 = vmax.f32 %v1862_v42, %v2056_v24  ;;  %v1813_v36 = vpop.f32.mrf.mxu0  ;;  %v2023_v37 = vpop.f32.mrf.mxu1  ;;  %v2059_v40 = vmax.f32 %v2021_v25, 0.0 }
 0x15e   : > { %v6863_v15 = vmax.f32 %v1867_v1, %v2061_v22  ;;  %v1865_v49 = vmax.f32 %v6762_v7, %v1849_v4  ;;  %v1852_v41 = vmax.f32 %v1822_v0, 0.0  ;;  %v2062_v44 = vmax.f32 %v2032_v33, 0.0 }
 0x15f   : > { %v1814_v45 = vadd.f32 %v6688_v38, %v1813_v36  ;;  %v2024_v3 = vadd.f32 %v6688_v38, %v2023_v37  ;;  %v5577_v46 = vpop.f32.mrf.mxu0  ;;  %v5597_v47 = vpop.f32.mrf.mxu1  ;;  %5816 = vmatmul.mubr.msk.bf16.gmra.mxu0 %vm1315_vm0, %v6008_v29  ;;  %5836 = vmatmul.mubr.msk.bf16.gmra.mxu1 %vm1315_vm0, %v6009_v31 }
 0x160   : > { %v6870_v48 = vmax.f32 %v1865_v49, %v2059_v40  ;;  %v1868_v50 = vmax.f32 %v6768_v14, %v1852_v41  ;;  %v1835_v51 = vadd.f32 %v5577_v46, %v6688_v38  ;;  %v2045_v7 = vadd.f32 %v5597_v47, %v6688_v38 }
 0x161   : > { %v1850_v52 = vmax.f32 %v1814_v45, 0.0  ;;  %v1826_v53 = vpop.f32.mrf.mxu0  ;;  %v2036_v54 = vpop.f32.mrf.mxu1  ;;  %v2060_v2 = vmax.f32 %v2024_v3, 0.0 }
 0x162   : > { %v6875_v58 = vmax.f32 %v1868_v50, %v2062_v44  ;;  %v1855_v60 = vmax.f32 %v1835_v51, 0.0  ;;  %v2065_v18 = vmax.f32 %v2045_v7, 0.0  ;;  %v1827_v62 = vadd.f32 %v6688_v38, %v1826_v53 }
 0x163   : > { %v1866_v63 = vmax.f32 %v6776_v28, %v1850_v52  ;;  %v2037_v5 = vadd.f32 %v6688_v38, %v2036_v54  ;;  %v5578_v27 = vpop.f32.mrf.mxu0  ;;  %v5598_v14 = vpop.f32.mrf.mxu1 }
 0x164   : > { %v1871_v6 = vmax.f32 %v6780_v32, %v1855_v60  ;;  %v1853_v8 = vmax.f32 %v1827_v62, 0.0  ;;  %v1838_v9 = vadd.f32 %v5578_v27, %v6688_v38  ;;  %v2048_v11 = vadd.f32 %v5598_v14, %v6688_v38 }
 0x165   : > { %v6883_v12 = vmax.f32 %v1866_v63, %v2060_v2  ;;  %v1829_v39 = vpop.f32.mrf.mxu0  ;;  %v2039_v13 = vpop.f32.mrf.mxu1  ;;  %v2063_v17 = vmax.f32 %v2037_v5, 0.0 }
 0x166   : > { %v6885_v16 = vmax.f32 %v1871_v6, %v2065_v18  ;;  %v1869_v28 = vmax.f32 %v6786_v43, %v1853_v8  ;;  %v1856_v21 = vmax.f32 %v1838_v9, 0.0  ;;  %v2066_v22 = vmax.f32 %v2048_v11, 0.0 }
 0x167   : > { %v1830_v23 = vadd.f32 %v6688_v38, %v1829_v39  ;;  %v2040_v32 = vadd.f32 %v6688_v38, %v2039_v13  ;;  %v5605_v42 = vpop.f32.mrf.mxu0  ;;  %v5625_v24 = vpop.f32.mrf.mxu1 }
 0x168   : > { %v6890_v25 = vmax.f32 %v1869_v28, %v2063_v17  ;;  %v1872_v57 = vmax.f32 %v6796_v55, %v1856_v21  ;;  %v2207_v26 = vadd.f32 %v5605_v42, %v6688_v38  ;;  %v2417_v29 = vadd.f32 %v5625_v24, %v6688_v38 }
 0x169   : > { %v1854_v31 = vmax.f32 %v1830_v23, 0.0  ;;  %v2198_v1 = vpop.f32.mrf.mxu0  ;;  %v2408_v43 = vpop.f32.mrf.mxu1  ;;  %v2064_v49 = vmax.f32 %v2040_v32, 0.0 }
 0x16a   : > { %v6895_v4 = vmax.f32 %v1872_v57, %v2066_v22  ;;  %v2263_v0 = vmax.f32 %v2207_v26, 0.0  ;;  %v2473_v33 = vmax.f32 %v2417_v29, 0.0  ;;  %v2199_v36 = vadd.f32 %v6688_v38, %v2198_v1 }
 0x16b   : > { %v1870_v37 = vmax.f32 %v6798_v59, %v1854_v31  ;;  %v2409_v40 = vadd.f32 %v6688_v38, %v2408_v43  ;;  %v5606_v41 = vpop.f32.mrf.mxu0  ;;  %v5626_v55 = vpop.f32.mrf.mxu1 }
 0x16c   : > { %v2279_v44 = vmax.f32 %v6809_v20, %v2263_v0  ;;  %v2261_v45 = vmax.f32 %v2199_v36, 0.0  ;;  %v2210_v3 = vadd.f32 %v5606_v41, %v6688_v38  ;;  %v2420_v46 = vadd.f32 %v5626_v55, %v6688_v38 }
 0x16d   : > { %v6903_v47 = vmax.f32 %v1870_v37, %v2064_v49  ;;  %v2201_v50 = vpop.f32.mrf.mxu0  ;;  %v2411_v51 = vpop.f32.mrf.mxu1  ;;  %v2471_v52 = vmax.f32 %v2409_v40, 0.0 }
 0x16e   : > { %v6905_v7 = vmax.f32 %v2279_v44, %v2473_v33  ;;  %v2277_v59 = vmax.f32 %v6816_v30, %v2261_v45  ;;  %v2264_v53 = vmax.f32 %v2210_v3, 0.0  ;;  %v2474_v54 = vmax.f32 %v2420_v46, 0.0 }
 0x16f   : > { %v2202_v60 = vadd.f32 %v6688_v38, %v2201_v50  ;;  %v2412_v20 = vadd.f32 %v6688_v38, %v2411_v51  ;;  %v5609_v18 = vpop.f32.mrf.mxu0  ;;  %v5629_v62 = vpop.f32.mrf.mxu1 }
 0x170   : > { %v6910_v63 = vmax.f32 %v2277_v59, %v2471_v52  ;;  %v2280_v2 = vmax.f32 %v6823_v35, %v2264_v53  ;;  %v2223_v5 = vadd.f32 %v5609_v18, %v6688_v38  ;;  %v2433_v27 = vadd.f32 %v5629_v62, %v6688_v38 }
 0x171   : > { %v2262_v14 = vmax.f32 %v2202_v60, 0.0  ;;  %v2214_v6 = vpop.f32.mrf.mxu0  ;;  %v2424_v30 = vpop.f32.mrf.mxu1  ;;  %v2472_v28 = vmax.f32 %v2412_v20, 0.0 }
 0x172   : > { %v6915_v8 = vmax.f32 %v2280_v2, %v2474_v54  ;;  %v2267_v9 = vmax.f32 %v2223_v5, 0.0  ;;  %v2477_v11 = vmax.f32 %v2433_v27, 0.0  ;;  %v2215_v39 = vadd.f32 %v6688_v38, %v2214_v6 }
 0x173   : > { %v2278_v13 = vmax.f32 %v6834_v56, %v2262_v14  ;;  %v2425_v17 = vadd.f32 %v6688_v38, %v2424_v30  ;;  %v5610_v21 = vpop.f32.mrf.mxu0  ;;  %v5630_v35 = vpop.f32.mrf.mxu1 }
 0x174   : > { %v2283_v22 = vmax.f32 %v6837_v61, %v2267_v9  ;;  %v2265_v23 = vmax.f32 %v2215_v39, 0.0  ;;  %v2226_v32 = vadd.f32 %v5610_v21, %v6688_v38  ;;  %v2436_v42 = vadd.f32 %v5630_v35, %v6688_v38 }
 0x175   : > { %v6923_v24 = vmax.f32 %v2278_v13, %v2472_v28  ;;  %v2217_v57 = vpop.f32.mrf.mxu0  ;;  %v2427_v26 = vpop.f32.mrf.mxu1  ;;  %v2475_v31 = vmax.f32 %v2425_v17, 0.0 }
 0x176   : > { %v6925_v29 = vmax.f32 %v2283_v22, %v2477_v11  ;;  %v2281_v56 = vmax.f32 %v6844_v10, %v2265_v23  ;;  %v2268_v1 = vmax.f32 %v2226_v32, 0.0  ;;  %v2478_v43 = vmax.f32 %v2436_v42, 0.0 }
 0x177   : > { %v2218_v0 = vadd.f32 %v6688_v38, %v2217_v57  ;;  %v2428_v61 = vadd.f32 %v6688_v38, %v2427_v26  ;;  %v5613_v33 = vpop.f32.mrf.mxu0  ;;  %v5633_v36 = vpop.f32.mrf.mxu1 }
 0x178   : > { %v6930_v37 = vmax.f32 %v2281_v56, %v2475_v31  ;;  %v2284_v49 = vmax.f32 %v6851_v19, %v2268_v1  ;;  %v2239_v40 = vadd.f32 %v5613_v33, %v6688_v38  ;;  %v2449_v41 = vadd.f32 %v5633_v36, %v6688_v38 }
 0x179   : > { %v2266_v55 = vmax.f32 %v2218_v0, 0.0  ;;  %v2230_v44 = vpop.f32.mrf.mxu0  ;;  %v2440_v10 = vpop.f32.mrf.mxu1  ;;  %v2476_v59 = vmax.f32 %v2428_v61, 0.0 }
 0x17a   : > { %v6935_v45 = vmax.f32 %v2284_v49, %v2478_v43  ;;  %v2271_v3 = vmax.f32 %v2239_v40, 0.0  ;;  %v2481_v46 = vmax.f32 %v2449_v41, 0.0  ;;  %v2231_v50 = vadd.f32 %v6688_v38, %v2230_v44 }
 0x17b   : > { %v2282_v51 = vmax.f32 %v6861_v34, %v2266_v55  ;;  %v2441_v52 = vadd.f32 %v6688_v38, %v2440_v10  ;;  %v5614_v53 = vpop.f32.mrf.mxu0  ;;  %v5634_v19 = vpop.f32.mrf.mxu1 }
 0x17c   : > { %v2287_v54 = vmax.f32 %v6863_v15, %v2271_v3  ;;  %v2269_v60 = vmax.f32 %v2231_v50, 0.0  ;;  %v2242_v20 = vadd.f32 %v5614_v53, %v6688_v38  ;;  %v2452_v18 = vadd.f32 %v5634_v19, %v6688_v38 }
 0x17d   : > { %v6943_v62 = vmax.f32 %v2282_v51, %v2476_v59  ;;  %v2233_v2 = vpop.f32.mrf.mxu0  ;;  %v2443_v5 = vpop.f32.mrf.mxu1  ;;  %v2479_v14 = vmax.f32 %v2441_v52, 0.0 }
 0x17e   : > { %v6945_v27 = vmax.f32 %v2287_v54, %v2481_v46  ;;  %v2285_v34 = vmax.f32 %v6870_v48, %v2269_v60  ;;  %v2272_v6 = vmax.f32 %v2242_v20, 0.0  ;;  %v2482_v30 = vmax.f32 %v2452_v18, 0.0 }
 0x17f   : > { %v2234_v9 = vadd.f32 %v6688_v38, %v2233_v2  ;;  %v2444_v15 = vadd.f32 %v6688_v38, %v2443_v5  ;;  %v5617_v11 = vpop.f32.mrf.mxu0  ;;  %v5637_v39 = vpop.f32.mrf.mxu1 }
 0x180   : > { %v6950_v13 = vmax.f32 %v2285_v34, %v2479_v14  ;;  %v2288_v28 = vmax.f32 %v6875_v58, %v2272_v6  ;;  %v2255_v17 = vadd.f32 %v5617_v11, %v6688_v38  ;;  %v2465_v21 = vadd.f32 %v5637_v39, %v6688_v38 }
 0x181   : > { %v2270_v35 = vmax.f32 %v2234_v9, 0.0  ;;  %v2246_v22 = vpop.f32.mrf.mxu0  ;;  %v2456_v48 = vpop.f32.mrf.mxu1  ;;  %v2480_v56 = vmax.f32 %v2444_v15, 0.0 }
 0x182   : > { %v6955_v23 = vmax.f32 %v2288_v28, %v2482_v30  ;;  %v2275_v32 = vmax.f32 %v2255_v17, 0.0  ;;  %v2485_v42 = vmax.f32 %v2465_v21, 0.0  ;;  %v2247_v57 = vadd.f32 %v6688_v38, %v2246_v22 }
 0x183   : > { %v2286_v26 = vmax.f32 %v6883_v12, %v2270_v35  ;;  %v2457_v31 = vadd.f32 %v6688_v38, %v2456_v48  ;;  %v5618_v1 = vpop.f32.mrf.mxu0  ;;  %v5638_v58 = vpop.f32.mrf.mxu1 }
 0x184   : > { %v2291_v43 = vmax.f32 %v6885_v16, %v2275_v32  ;;  %v2273_v0 = vmax.f32 %v2247_v57, 0.0  ;;  %v2258_v61 = vadd.f32 %v5618_v1, %v6688_v38  ;;  %v2468_v33 = vadd.f32 %v5638_v58, %v6688_v38 }
 0x185   : > { %v6963_v36 = vmax.f32 %v2286_v26, %v2480_v56  ;;  %v2249_v49 = vpop.f32.mrf.mxu0  ;;  %v2459_v40 = vpop.f32.mrf.mxu1  ;;  %v2483_v55 = vmax.f32 %v2457_v31, 0.0 }
 0x186   : > { %v6965_v41 = vmax.f32 %v2291_v43, %v2485_v42  ;;  %v2289_v12 = vmax.f32 %v6890_v25, %v2273_v0  ;;  %v2276_v44 = vmax.f32 %v2258_v61, 0.0  ;;  %v2486_v10 = vmax.f32 %v2468_v33, 0.0 }
 0x187   : > { %v2250_v3 = vadd.f32 %v6688_v38, %v2249_v49  ;;  %v2460_v16 = vadd.f32 %v6688_v38, %v2459_v40  ;;  %v5645_v46 = vpop.f32.mrf.mxu0  ;;  %v5665_v50 = vpop.f32.mrf.mxu1 }
 0x188   : > { %v6970_v51 = vmax.f32 %v2289_v12, %v2483_v55  ;;  %v2292_v59 = vmax.f32 %v6895_v4, %v2276_v44  ;;  %v2627_v52 = vadd.f32 %v5645_v46, %v6688_v38  ;;  %v2837_v53 = vadd.f32 %v5665_v50, %v6688_v38 }
 0x189   : > { %v2274_v19 = vmax.f32 %v2250_v3, 0.0  ;;  %v2618_v54 = vpop.f32.mrf.mxu0  ;;  %v2828_v25 = vpop.f32.mrf.mxu1  ;;  %v2484_v34 = vmax.f32 %v2460_v16, 0.0 }
 0x18a   : > { %v6975_v60 = vmax.f32 %v2292_v59, %v2486_v10  ;;  %v2683_v20 = vmax.f32 %v2627_v52, 0.0  ;;  %v2893_v18 = vmax.f32 %v2837_v53, 0.0  ;;  %v2619_v2 = vadd.f32 %v6688_v38, %v2618_v54 }
 0x18b   : > { %v2290_v5 = vmax.f32 %v6903_v47, %v2274_v19  ;;  %v2829_v14 = vadd.f32 %v6688_v38, %v2828_v25  ;;  %v5646_v6 = vpop.f32.mrf.mxu0  ;;  %v5666_v4 = vpop.f32.mrf.mxu1 }
 0x18c   : > { %v2699_v30 = vmax.f32 %v6905_v7, %v2683_v20  ;;  %v2681_v9 = vmax.f32 %v2619_v2, 0.0  ;;  %v2630_v15 = vadd.f32 %v5646_v6, %v6688_v38  ;;  %v2840_v11 = vadd.f32 %v5666_v4, %v6688_v38 }
 0x18d   : > { %v6983_v39 = vmax.f32 %v2290_v5, %v2484_v34  ;;  %v2621_v28 = vpop.f32.mrf.mxu0  ;;  %v2831_v17 = vpop.f32.mrf.mxu1  ;;  %v2891_v35 = vmax.f32 %v2829_v14, 0.0 }
 0x18e   : > { %v6985_v21 = vmax.f32 %v2699_v30, %v2893_v18  ;;  %v2697_v47 = vmax.f32 %v6910_v63, %v2681_v9  ;;  %v2684_v22 = vmax.f32 %v2630_v15, 0.0  ;;  %v2894_v48 = vmax.f32 %v2840_v11, 0.0 }
 0x18f   : > { %v2622_v32 = vadd.f32 %v6688_v38, %v2621_v28  ;;  %v2832_v7 = vadd.f32 %v6688_v38, %v2831_v17  ;;  %v5649_v42 = vpop.f32.mrf.mxu0  ;;  %v5669_v57 = vpop.f32.mrf.mxu1 }
 0x190   : > { %v6990_v26 = vmax.f32 %v2697_v47, %v2891_v35  ;;  %v2700_v56 = vmax.f32 %v6915_v8, %v2684_v22  ;;  %v2643_v31 = vadd.f32 %v5649_v42, %v6688_v38  ;;  %v2853_v1 = vadd.f32 %v5669_v57, %v6688_v38 }
 0x191   : > { %v2682_v58 = vmax.f32 %v2622_v32, 0.0  ;;  %v2634_v43 = vpop.f32.mrf.mxu0  ;;  %v2844_v63 = vpop.f32.mrf.mxu1  ;;  %v2892_v12 = vmax.f32 %v2832_v7, 0.0 }
 0x192   : > { %v6995_v0 = vmax.f32 %v2700_v56, %v2894_v48  ;;  %v2687_v61 = vmax.f32 %v2643_v31, 0.0  ;;  %v2897_v33 = vmax.f32 %v2853_v1, 0.0  ;;  %v2635_v49 = vadd.f32 %v6688_v38, %v2634_v43 }
 0x193   : > { %v2698_v40 = vmax.f32 %v6923_v24, %v2682_v58  ;;  %v2845_v55 = vadd.f32 %v6688_v38, %v2844_v63  ;;  %v5650_v44 = vpop.f32.mrf.mxu0  ;;  %v5670_v8 = vpop.f32.mrf.mxu1 }
 0x194   : > { %v2703_v10 = vmax.f32 %v6925_v29, %v2687_v61  ;;  %v2685_v3 = vmax.f32 %v2635_v49, 0.0  ;;  %v2646_v16 = vadd.f32 %v5650_v44, %v6688_v38  ;;  %v2856_v46 = vadd.f32 %v5670_v8, %v6688_v38 }
 0x195   : > { %v7003_v50 = vmax.f32 %v2698_v40, %v2892_v12  ;;  %v2637_v59 = vpop.f32.mrf.mxu0  ;;  %v2847_v52 = vpop.f32.mrf.mxu1  ;;  %v2895_v19 = vmax.f32 %v2845_v55, 0.0 }
 0x196   : > { %v7005_v53 = vmax.f32 %v2703_v10, %v2897_v33  ;;  %v2701_v24 = vmax.f32 %v6930_v37, %v2685_v3  ;;  %v2688_v54 = vmax.f32 %v2646_v16, 0.0  ;;  %v2898_v25 = vmax.f32 %v2856_v46, 0.0 }
 0x197   : > { %v2638_v20 = vadd.f32 %v6688_v38, %v2637_v59  ;;  %v2848_v29 = vadd.f32 %v6688_v38, %v2847_v52  ;;  %v5653_v18 = vpop.f32.mrf.mxu0  ;;  %v5673_v2 = vpop.f32.mrf.mxu1 }
 0x198   : > { %v7010_v5 = vmax.f32 %v2701_v24, %v2895_v19  ;;  %v2704_v34 = vmax.f32 %v6935_v45, %v2688_v54  ;;  %v2659_v14 = vadd.f32 %v5653_v18, %v6688_v38  ;;  %v2869_v6 = vadd.f32 %v5673_v2, %v6688_v38 }
 0x199   : > { %v2686_v4 = vmax.f32 %v2638_v20, 0.0  ;;  %v2650_v30 = vpop.f32.mrf.mxu0  ;;  %v2860_v37 = vpop.f32.mrf.mxu1  ;;  %v2896_v47 = vmax.f32 %v2848_v29, 0.0 }
 0x19a   : > { %v7015_v9 = vmax.f32 %v2704_v34, %v2898_v25  ;;  %v2691_v15 = vmax.f32 %v2659_v14, 0.0  ;;  %v2901_v11 = vmax.f32 %v2869_v6, 0.0  ;;  %v2651_v28 = vadd.f32 %v6688_v38, %v2650_v30 }
 0x19b   : > { %v2702_v17 = vmax.f32 %v6943_v62, %v2686_v4  ;;  %v2861_v35 = vadd.f32 %v6688_v38, %v2860_v37  ;;  %v5654_v22 = vpop.f32.mrf.mxu0  ;;  %v5674_v45 = vpop.f32.mrf.mxu1 }
 0x19c   : > { %v2707_v48 = vmax.f32 %v6945_v27, %v2691_v15  ;;  %v2689_v32 = vmax.f32 %v2651_v28, 0.0  ;;  %v2662_v7 = vadd.f32 %v5654_v22, %v6688_v38  ;;  %v2872_v42 = vadd.f32 %v5674_v45, %v6688_v38  ;;  %v7031_v27 = vld [vmem:[%s7484_s2] ss:$0 sm:$0xff] }
 0x19d   : > { %v7023_v57 = vmax.f32 %v2702_v17, %v2896_v47  ;;  %v2653_v56 = vpop.f32.mrf.mxu0  ;;  %v2863_v31 = vpop.f32.mrf.mxu1  ;;  %v2899_v58 = vmax.f32 %v2861_v35, 0.0 }
 0x19e   : > { %v7025_v1 = vmax.f32 %v2707_v48, %v2901_v11  ;;  %v2705_v62 = vmax.f32 %v6950_v13, %v2689_v32  ;;  %v2692_v43 = vmax.f32 %v2662_v7, 0.0  ;;  %v2902_v63 = vmax.f32 %v2872_v42, 0.0 }
 0x19f   : > { %v2654_v61 = vadd.f32 %v7031_v27, %v2653_v56  ;;  %v2864_v38 = vadd.f32 %v7031_v27, %v2863_v31  ;;  %v5657_v33 = vpop.f32.mrf.mxu0  ;;  %v5677_v49 = vpop.f32.mrf.mxu1 }
 0x1a0   : > { %v7035_v40 = vmax.f32 %v2705_v62, %v2899_v58  ;;  %v2708_v12 = vmax.f32 %v6955_v23, %v2692_v43  ;;  %v2675_v13 = vadd.f32 %v7031_v27, %v5657_v33  ;;  %v2885_v55 = vadd.f32 %v7031_v27, %v5677_v49 }
 0x1a1   : > { %v2690_v44 = vmax.f32 %v2654_v61, 0.0  ;;  %v2666_v8 = vpop.f32.mrf.mxu0  ;;  %v2876_v10 = vpop.f32.mrf.mxu1  ;;  %v2900_v24 = vmax.f32 %v2864_v38, 0.0 }
 0x1a2   : > { %v7040_v3 = vmax.f32 %v2708_v12, %v2902_v63  ;;  %v2695_v16 = vmax.f32 %v2675_v13, 0.0  ;;  %v2905_v46 = vmax.f32 %v2885_v55, 0.0  ;;  %v2667_v59 = vadd.f32 %v7031_v27, %v2666_v8 }
 0x1a3   : > { %v2706_v52 = vmax.f32 %v6963_v36, %v2690_v44  ;;  %v2877_v19 = vadd.f32 %v7031_v27, %v2876_v10  ;;  %v5658_v54 = vpop.f32.mrf.mxu0  ;;  %v5678_v23 = vpop.f32.mrf.mxu1 }
 0x1a4   : > { %v2711_v25 = vmax.f32 %v6965_v41, %v2695_v16  ;;  %v2693_v20 = vmax.f32 %v2667_v59, 0.0  ;;  %v2678_v29 = vadd.f32 %v7031_v27, %v5658_v54  ;;  %v2888_v18 = vadd.f32 %v7031_v27, %v5678_v23 }
 0x1a5   : > { %v7048_v2 = vmax.f32 %v2706_v52, %v2900_v24  ;;  %v2669_v34 = vpop.f32.mrf.mxu0  ;;  %v2879_v14 = vpop.f32.mrf.mxu1  ;;  %v2903_v4 = vmax.f32 %v2877_v19, 0.0 }
 0x1a6   : > { %v7050_v6 = vmax.f32 %v2711_v25, %v2905_v46  ;;  %v2709_v36 = vmax.f32 %v6970_v51, %v2693_v20  ;;  %v2696_v30 = vmax.f32 %v2678_v29, 0.0  ;;  %v2906_v37 = vmax.f32 %v2888_v18, 0.0 }
 0x1a7   : > { %v2670_v15 = vadd.f32 %v7031_v27, %v2669_v34  ;;  %v2880_v41 = vadd.f32 %v7031_v27, %v2879_v14  ;;  %v5685_v11 = vpop.f32.mrf.mxu0  ;;  %v5705_v28 = vpop.f32.mrf.mxu1 }
 0x1a8   : > { %v7055_v17 = vmax.f32 %v2709_v36, %v2903_v4  ;;  %v2712_v47 = vmax.f32 %v6975_v60, %v2696_v30  ;;  %v3047_v35 = vadd.f32 %v7031_v27, %v5685_v11  ;;  %v3257_v22 = vadd.f32 %v7031_v27, %v5705_v28 }
 0x1a9   : > { %v2694_v45 = vmax.f32 %v2670_v15, 0.0  ;;  %v3038_v48 = vpop.f32.mrf.mxu0  ;;  %v3248_v51 = vpop.f32.mrf.mxu1  ;;  %v2904_v62 = vmax.f32 %v2880_v41, 0.0 }
 0x1aa   : > { %v7060_v32 = vmax.f32 %v2712_v47, %v2906_v37  ;;  %v3103_v7 = vmax.f32 %v3047_v35, 0.0  ;;  %v3313_v42 = vmax.f32 %v3257_v22, 0.0  ;;  %v3039_v56 = vadd.f32 %v7031_v27, %v3038_v48 }
 0x1ab   : > { %v2710_v31 = vmax.f32 %v6983_v39, %v2694_v45  ;;  %v3249_v58 = vadd.f32 %v7031_v27, %v3248_v51  ;;  %v5686_v43 = vpop.f32.mrf.mxu0  ;;  %v5706_v60 = vpop.f32.mrf.mxu1 }
 0x1ac   : > { %v3119_v63 = vmax.f32 %v6985_v21, %v3103_v7  ;;  %v3101_v61 = vmax.f32 %v3039_v56, 0.0  ;;  %v3050_v38 = vadd.f32 %v7031_v27, %v5686_v43  ;;  %v3260_v33 = vadd.f32 %v7031_v27, %v5706_v60 }
 0x1ad   : > { %v7068_v49 = vmax.f32 %v2710_v31, %v2904_v62  ;;  %v3041_v12 = vpop.f32.mrf.mxu0  ;;  %v3251_v13 = vpop.f32.mrf.mxu1  ;;  %v3311_v44 = vmax.f32 %v3249_v58, 0.0 }
 0x1ae   : > { %v7070_v55 = vmax.f32 %v3119_v63, %v3313_v42  ;;  %v3117_v39 = vmax.f32 %v6990_v26, %v3101_v61  ;;  %v3104_v8 = vmax.f32 %v3050_v38, 0.0  ;;  %v3314_v10 = vmax.f32 %v3260_v33, 0.0 }
 0x1af   : > { %v3042_v16 = vadd.f32 %v7031_v27, %v3041_v12  ;;  %v3252_v21 = vadd.f32 %v7031_v27, %v3251_v13  ;;  %v5689_v46 = vpop.f32.mrf.mxu0  ;;  %v5709_v59 = vpop.f32.mrf.mxu1 }
 0x1b0   : > { %v7075_v52 = vmax.f32 %v3117_v39, %v3311_v44  ;;  %v3120_v24 = vmax.f32 %v6995_v0, %v3104_v8  ;;  %v3063_v19 = vadd.f32 %v7031_v27, %v5689_v46  ;;  %v3273_v54 = vadd.f32 %v7031_v27, %v5709_v59 }
 0x1b1   : > { %v3102_v23 = vmax.f32 %v3042_v16, 0.0  ;;  %v3054_v25 = vpop.f32.mrf.mxu0  ;;  %v3264_v26 = vpop.f32.mrf.mxu1  ;;  %v3312_v36 = vmax.f32 %v3252_v21, 0.0 }
 0x1b2   : > { %v7080_v20 = vmax.f32 %v3120_v24, %v3314_v10  ;;  %v3107_v29 = vmax.f32 %v3063_v19, 0.0  ;;  %v3317_v18 = vmax.f32 %v3273_v54, 0.0  ;;  %v3055_v34 = vadd.f32 %v7031_v27, %v3054_v25 }
 0x1b3   : > { %v3118_v14 = vmax.f32 %v7003_v50, %v3102_v23  ;;  %v3265_v4 = vadd.f32 %v7031_v27, %v3264_v26  ;;  %v5690_v30 = vpop.f32.mrf.mxu0  ;;  %v5710_v0 = vpop.f32.mrf.mxu1 }
 0x1b4   : > { %v3123_v37 = vmax.f32 %v7005_v53, %v3107_v29  ;;  %v3105_v15 = vmax.f32 %v3055_v34, 0.0  ;;  %v3066_v41 = vadd.f32 %v7031_v27, %v5690_v30  ;;  %v3276_v11 = vadd.f32 %v7031_v27, %v5710_v0 }
 0x1b5   : > { %v7088_v28 = vmax.f32 %v3118_v14, %v3312_v36  ;;  %v3057_v47 = vpop.f32.mrf.mxu0  ;;  %v3267_v35 = vpop.f32.mrf.mxu1  ;;  %v3315_v45 = vmax.f32 %v3265_v4, 0.0 }
 0x1b6   : > { %v7090_v22 = vmax.f32 %v3123_v37, %v3317_v18  ;;  %v3121_v50 = vmax.f32 %v7010_v5, %v3105_v15  ;;  %v3108_v48 = vmax.f32 %v3066_v41, 0.0  ;;  %v3318_v51 = vmax.f32 %v3276_v11, 0.0 }
 0x1b7   : > { %v3058_v7 = vadd.f32 %v7031_v27, %v3057_v47  ;;  %v3268_v53 = vadd.f32 %v7031_v27, %v3267_v35  ;;  %v5693_v42 = vpop.f32.mrf.mxu0  ;;  %v5713_v56 = vpop.f32.mrf.mxu1 }
 0x1b8   : > { %v7095_v31 = vmax.f32 %v3121_v50, %v3315_v45  ;;  %v3124_v62 = vmax.f32 %v7015_v9, %v3108_v48  ;;  %v3079_v58 = vadd.f32 %v7031_v27, %v5693_v42  ;;  %v3289_v43 = vadd.f32 %v7031_v27, %v5713_v56 }
 0x1b9   : > { %v3106_v60 = vmax.f32 %v3058_v7, 0.0  ;;  %v3070_v63 = vpop.f32.mrf.mxu0  ;;  %v3280_v5 = vpop.f32.mrf.mxu1  ;;  %v3316_v39 = vmax.f32 %v3268_v53, 0.0 }
 0x1ba   : > { %v7100_v61 = vmax.f32 %v3124_v62, %v3318_v51  ;;  %v3111_v38 = vmax.f32 %v3079_v58, 0.0  ;;  %v3321_v33 = vmax.f32 %v3289_v43, 0.0  ;;  %v3071_v12 = vadd.f32 %v7031_v27, %v3070_v63 }
 0x1bb   : > { %v3122_v13 = vmax.f32 %v7023_v57, %v3106_v60  ;;  %v3281_v44 = vadd.f32 %v7031_v27, %v3280_v5  ;;  %v5694_v8 = vpop.f32.mrf.mxu0  ;;  %v5714_v9 = vpop.f32.mrf.mxu1 }
 0x1bc   : > { %v3127_v10 = vmax.f32 %v7025_v1, %v3111_v38  ;;  %v3109_v16 = vmax.f32 %v3071_v12, 0.0  ;;  %v3082_v21 = vadd.f32 %v7031_v27, %v5694_v8  ;;  %v3292_v46 = vadd.f32 %v7031_v27, %v5714_v9 }
 0x1bd   : > { %v7108_v59 = vmax.f32 %v3122_v13, %v3316_v39  ;;  %v3073_v24 = vpop.f32.mrf.mxu0  ;;  %v3283_v19 = vpop.f32.mrf.mxu1  ;;  %v3319_v23 = vmax.f32 %v3281_v44, 0.0 }
 0x1be   : > { %v7110_v54 = vmax.f32 %v3127_v10, %v3321_v33  ;;  %v3125_v57 = vmax.f32 %v7035_v40, %v3109_v16  ;;  %v3112_v25 = vmax.f32 %v3082_v21, 0.0  ;;  %v3322_v26 = vmax.f32 %v3292_v46, 0.0 }
 0x1bf   : > { %v3074_v29 = vadd.f32 %v7031_v27, %v3073_v24  ;;  %v3284_v1 = vadd.f32 %v7031_v27, %v3283_v19  ;;  %v5697_v18 = vpop.f32.mrf.mxu0  ;;  %v5717_v34 = vpop.f32.mrf.mxu1 }
 0x1c0   : > { %v7115_v14 = vmax.f32 %v3125_v57, %v3319_v23  ;;  %v3128_v36 = vmax.f32 %v7040_v3, %v3112_v25  ;;  %v3095_v4 = vadd.f32 %v7031_v27, %v5697_v18  ;;  %v3305_v30 = vadd.f32 %v7031_v27, %v5717_v34 }
 0x1c1   : > { %v3110_v0 = vmax.f32 %v3074_v29, 0.0  ;;  %v3086_v37 = vpop.f32.mrf.mxu0  ;;  %v3296_v40 = vpop.f32.mrf.mxu1  ;;  %v3320_v50 = vmax.f32 %v3284_v1, 0.0 }
 0x1c2   : > { %v7120_v15 = vmax.f32 %v3128_v36, %v3322_v26  ;;  %v3115_v41 = vmax.f32 %v3095_v4, 0.0  ;;  %v3325_v11 = vmax.f32 %v3305_v30, 0.0  ;;  %v3087_v47 = vadd.f32 %v7031_v27, %v3086_v37 }
 0x1c3   : > { %v3126_v35 = vmax.f32 %v7048_v2, %v3110_v0  ;;  %v3297_v45 = vadd.f32 %v7031_v27, %v3296_v40  ;;  %v5698_v48 = vpop.f32.mrf.mxu0  ;;  %v5718_v3 = vpop.f32.mrf.mxu1 }
 0x1c4   : > { %v3131_v51 = vmax.f32 %v7050_v6, %v3115_v41  ;;  %v3113_v7 = vmax.f32 %v3087_v47, 0.0  ;;  %v3098_v53 = vadd.f32 %v7031_v27, %v5698_v48  ;;  %v3308_v42 = vadd.f32 %v7031_v27, %v5718_v3 }
 0x1c5   : > { %v7128_v56 = vmax.f32 %v3126_v35, %v3320_v50  ;;  %v3089_v62 = vpop.f32.mrf.mxu0  ;;  %v3299_v58 = vpop.f32.mrf.mxu1  ;;  %v3323_v60 = vmax.f32 %v3297_v45, 0.0 }
 0x1c6   : > { %v7130_v43 = vmax.f32 %v3131_v51, %v3325_v11  ;;  %v3129_v2 = vmax.f32 %v7055_v17, %v3113_v7  ;;  %v3116_v63 = vmax.f32 %v3098_v53, 0.0  ;;  %v3090_v5 = vadd.f32 %v7031_v27, %v3089_v62 }
 0x1c7   : > { %v3300_v38 = vadd.f32 %v7031_v27, %v3299_v58  ;;  %v5725_v6 = vpop.f32.mrf.mxu0  ;;  %v5745_v33 = vpop.f32.mrf.mxu1  ;;  %v3326_v39 = vmax.f32 %v3308_v42, 0.0 }
 0x1c8   : > { %v7135_v12 = vmax.f32 %v3129_v2, %v3323_v60  ;;  %v3132_v13 = vmax.f32 %v7060_v32, %v3116_v63  ;;  %v3114_v44 = vmax.f32 %v3090_v5, 0.0  ;;  %v3467_v11 = vadd.f32 %v7031_v27, %v5725_v6 }
 0x1c9   : > { %v3458_v8 = vpop.f32.mrf.mxu0  ;;  %v3668_v9 = vpop.f32.mrf.mxu1  ;;  %v3324_v16 = vmax.f32 %v3300_v38, 0.0  ;;  %v3677_v3 = vadd.f32 %v7031_v27, %v5745_v33 }
 0x1ca   : > { %v7138_v10 = vmax.f32 %v3132_v13, %v3326_v39  ;;  %v3130_v17 = vmax.f32 %v7068_v49, %v3114_v44  ;;  %v3459_v47 = vadd.f32 %v7031_v27, %v3458_v8  ;;  %v3523_v42 = vmax.f32 %v3467_v11, 0.0 }
 0x1cb   : > { %v5726_v21 = vpop.f32.mrf.mxu0  ;;  %v5746_v46 = vpop.f32.mrf.mxu1  ;;  %v3669_v62 = vadd.f32 %v7031_v27, %v3668_v9  ;;  %v3733_v39 = vmax.f32 %v3677_v3, 0.0 }
 0x1cc   : > { %v7141_v24 = vmax.f32 %v3130_v17, %v3324_v16  ;;  %v3470_v35 = vadd.f32 %v7031_v27, %v5726_v21  ;;  %v3521_v2 = vmax.f32 %v3459_v47, 0.0  ;;  %v3680_v63 = vadd.f32 %v7031_v27, %v5746_v46 }
 0x1cd   : > { %v3461_v19 = vpop.f32.mrf.mxu0  ;;  %v3671_v57 = vpop.f32.mrf.mxu1  ;;  %v3539_v16 = vmax.f32 %v7070_v55, %v3523_v42  ;;  %v3731_v21 = vmax.f32 %v3669_v62, 0.0 }
 0x1ce   : > { %v3462_v48 = vadd.f32 %v7031_v27, %v3461_v19  ;;  %v3524_v60 = vmax.f32 %v3470_v35, 0.0  ;;  %v3672_v33 = vadd.f32 %v7031_v27, %v3671_v57  ;;  %v3734_v57 = vmax.f32 %v3680_v63, 0.0 }
 0x1cf   : > { %v5729_v23 = vpop.f32.mrf.mxu0  ;;  %v5749_v25 = vpop.f32.mrf.mxu1 }
 0x1d0   : > { %v3483_v51 = vadd.f32 %v7031_v27, %v5729_v23  ;;  %v3522_v6 = vmax.f32 %v3462_v48, 0.0  ;;  %v3693_v13 = vadd.f32 %v7031_v27, %v5749_v25  ;;  %v3537_v23 = vmax.f32 %v7075_v52, %v3521_v2 }
 0x1d1   : > { %v3474_v26 = vpop.f32.mrf.mxu0  ;;  %v3684_v29 = vpop.f32.mrf.mxu1  ;;  %v3732_v35 = vmax.f32 %v3672_v33, 0.0  ;;  %v7196_v2 = vmax.f32 %v3539_v16, %v3733_v39 }
 0x1d2   : > { %v3475_v58 = vadd.f32 %v7031_v27, %v3474_v26  ;;  %v3527_v44 = vmax.f32 %v3483_v51, 0.0  ;;  %v3540_v26 = vmax.f32 %v7080_v20, %v3524_v60  ;;  %v3737_v48 = vmax.f32 %v3693_v13, 0.0 }
 0x1d3   : > { %v5730_v32 = vpop.f32.mrf.mxu0  ;;  %v5750_v1 = vpop.f32.mrf.mxu1  ;;  %v3685_v55 = vadd.f32 %v7031_v27, %v3684_v29  ;;  %v7198_v29 = vmax.f32 %v3537_v23, %v3731_v21 }
 0x1d4   : > { %v3486_v8 = vadd.f32 %v7031_v27, %v5730_v32  ;;  %v3525_v46 = vmax.f32 %v3475_v58, 0.0  ;;  %v3538_v32 = vmax.f32 %v7088_v28, %v3522_v6  ;;  %v3543_v3 = vmax.f32 %v7090_v22, %v3527_v44 }
 0x1d5   : > { %v3477_v18 = vpop.f32.mrf.mxu0  ;;  %v7143_v34 = vpop.f32.mrf.mxu1  ;;  %v7200_v22 = vmax.f32 %v3540_v26, %v3734_v57  ;;  %v3735_v6 = vmax.f32 %v3685_v55, 0.0 }
 0x1d6   : > { %v3478_v19 = vadd.f32 %v7031_v27, %v3477_v18  ;;  %v3528_v51 = vmax.f32 %v3486_v8, 0.0  ;;  %v3696_v18 = vadd.f32 %v7031_v27, %v5750_v1  ;;  %v7206_v63 = vmax.f32 %v3538_v32, %v3732_v35 }
 0x1d7   : > { %v5733_v36 = vpop.f32.mrf.mxu0  ;;  %v5753_v4 = vpop.f32.mrf.mxu1 }
 0x1d8   : > { %v3499_v25 = vadd.f32 %v7031_v27, %v5733_v36  ;;  %v3541_v36 = vmax.f32 %v7095_v31, %v3525_v46  ;;  %v3526_v62 = vmax.f32 %v3478_v19, 0.0  ;;  %v3709_v28 = vadd.f32 %v7031_v27, %v5753_v4 }
 0x1d9   : > { %v3490_v30 = vpop.f32.mrf.mxu0  ;;  %v7145_v49 = vpop.f32.mrf.mxu1  ;;  %v3688_v31 = vadd.f32 %v7031_v27, %v7143_v34  ;;  %v3544_v33 = vmax.f32 %v7100_v61, %v3528_v51  ;;  %v3738_v13 = vmax.f32 %v3696_v18, 0.0 }
 0x1da   : > { %v3491_v52 = vadd.f32 %v7031_v27, %v3490_v30  ;;  %v3531_v1 = vmax.f32 %v3499_v25, 0.0  ;;  %v7216_v16 = vmax.f32 %v3541_v36, %v3735_v6  ;;  %v3542_v21 = vmax.f32 %v7108_v59, %v3526_v62 }
 0x1db   : > { %v5734_v0 = vpop.f32.mrf.mxu0  ;;  %v7147_v37 = vpop.f32.mrf.mxu1  ;;  %v3741_v46 = vmax.f32 %v3709_v28, 0.0  ;;  %v3701_v34 = vadd.f32 %v7031_v27, %v7145_v49  ;;  %v3736_v25 = vmax.f32 %v3688_v31, 0.0  ;;  %v7232_v35 = vmax.f32 %v3544_v33, %v3738_v13 }
 0x1dc   : > { %v3502_v58 = vadd.f32 %v7031_v27, %v5734_v0  ;;  %v7211_v0 = vmax.f32 %v3543_v3, %v3737_v48  ;;  %v3529_v39 = vmax.f32 %v3491_v52, 0.0  ;;  %v3547_v23 = vmax.f32 %v7110_v54, %v3531_v1 }
 0x1dd   : > { %v3493_v40 = vpop.f32.mrf.mxu0  ;;  %v7149_v41 = vpop.f32.mrf.mxu1  ;;  %v3712_v59 = vadd.f32 %v7031_v27, %v7147_v37  ;;  %v7240_v3 = vmax.f32 %v3542_v21, %v3736_v25 }
 0x1de   : > { %v3494_v4 = vadd.f32 %v7031_v27, %v3493_v40  ;;  %v3532_v19 = vmax.f32 %v3502_v58, 0.0  ;;  %v3545_v49 = vmax.f32 %v7115_v14, %v3529_v39  ;;  %v7246_v18 = vmax.f32 %v3547_v23, %v3741_v46 }
 0x1df   : > { %v7154_v50 = vpop.f32.mrf.mxu0  ;;  %v7156_v45 = vpop.f32.mrf.mxu1  ;;  %v3739_v14 = vmax.f32 %v3701_v34, 0.0 }
 0x1e0   : > { %v3515_v40 = vadd.f32 %v7031_v27, %v7154_v50  ;;  %v3530_v32 = vmax.f32 %v3494_v4, 0.0  ;;  %v3704_v50 = vadd.f32 %v7031_v27, %v7149_v41  ;;  %v3548_v37 = vmax.f32 %v7120_v15, %v3532_v19 }
 0x1e1   : > { %v7161_v7 = vpop.f32.mrf.mxu0  ;;  %v7163_v53 = vpop.f32.mrf.mxu1  ;;  %v3725_v51 = vadd.f32 %v7031_v27, %v7156_v45  ;;  %v7253_v1 = vmax.f32 %v3545_v49, %v3739_v14 }
 0x1e2   : > { %v3507_v61 = vadd.f32 %v7031_v27, %v7161_v7  ;;  %v3535_v52 = vmax.f32 %v3515_v40, 0.0  ;;  %v3546_v28 = vmax.f32 %v7128_v56, %v3530_v32  ;;  %v3717_v58 = vadd.f32 %v7031_v27, %v7163_v53 }
 0x1e3   : > { %v7168_v5 = vpop.f32.mrf.mxu0  ;;  %v7170_v38 = vpop.f32.mrf.mxu1  ;;  %v3740_v45 = vmax.f32 %v3704_v50, 0.0  ;;  %v3745_v13 = vmax.f32 %v3725_v51, 0.0 }
 0x1e4   : > { %v3518_v54 = vadd.f32 %v7031_v27, %v7168_v5  ;;  %v3533_v36 = vmax.f32 %v3507_v61, 0.0  ;;  %v3551_v53 = vmax.f32 %v7130_v43, %v3535_v52  ;;  %v3743_v40 = vmax.f32 %v3717_v58, 0.0 }
 0x1e5   : > { %v3509_v9 = vpop.f32.mrf.mxu0  ;;  %v7175_v17 = vpop.f32.mrf.mxu1  ;;  %v7269_v34 = vmax.f32 %v3546_v28, %v3740_v45 }
 0x1e6   : > { %v3510_v7 = vadd.f32 %v7031_v27, %v3509_v9  ;;  %v3742_v9 = vmax.f32 %v3712_v59, 0.0  ;;  %v3536_v15 = vmax.f32 %v3518_v54, 0.0  ;;  %v3549_v21 = vmax.f32 %v7135_v12, %v3533_v36 }
 0x1e7   : > { %v5765_v11 = vpop.f32.mrf.mxu0  ;;  %v7182_v47 = vpop.f32.mrf.mxu1  ;;  %v3720_v46 = vadd.f32 %v7031_v27, %v7175_v17  ;;  %v7281_v50 = vmax.f32 %v3551_v53, %v3745_v13 }
 0x1e8   : > { %v3887_v5 = vadd.f32 %v7031_v27, %v5765_v11  ;;  %v3728_v11 = vadd.f32 %v7031_v27, %v7170_v38  ;;  %v3534_v6 = vmax.f32 %v3510_v7, 0.0  ;;  %v7259_v33 = vmax.f32 %v3548_v37, %v3742_v9 }
 0x1e9   : > { %v7189_v20 = vpop.f32.mrf.mxu0  ;;  %v7191_v42 = vpop.f32.mrf.mxu1  ;;  %v4097_v56 = vadd.f32 %v7031_v27, %v7182_v47  ;;  %v3552_v61 = vmax.f32 %v7138_v10, %v3536_v15  ;;  %v3744_v7 = vmax.f32 %v3720_v46, 0.0 }
 0x1ea   : > { %v3943_v39 = vmax.f32 %v3887_v5, 0.0  ;;  %v3879_v38 = vadd.f32 %v7031_v27, %v7189_v20  ;;  %v3746_v25 = vmax.f32 %v3728_v11, 0.0  ;;  %v3550_v43 = vmax.f32 %v7141_v24, %v3534_v6 }
 0x1eb   : > { %v7202_v60 = vpop.f32.mrf.mxu0  ;;  %v7204_v30 = vpop.f32.mrf.mxu1  ;;  %v4153_v54 = vmax.f32 %v4097_v56, 0.0  ;;  %v4089_v49 = vadd.f32 %v7031_v27, %v7191_v42 }
 0x1ec   : > { %v3890_v47 = vadd.f32 %v7031_v27, %v7202_v60  ;;  %v3959_v20 = vmax.f32 %v7196_v2, %v3943_v39  ;;  %v7283_v60 = vmax.f32 %v3549_v21, %v3743_v40  ;;  %v3941_v24 = vmax.f32 %v3879_v38, 0.0 }
 0x1ed   : > { %v3881_v44 = vpop.f32.mrf.mxu0  ;;  %v7214_v8 = vpop.f32.mrf.mxu1  ;;  %v7285_v51 = vmax.f32 %v3552_v61, %v3746_v25  ;;  %v4100_v2 = vadd.f32 %v7031_v27, %v7204_v30  ;;  %v7290_v14 = vmax.f32 %v3550_v43, %v3744_v7  ;;  %v4151_v58 = vmax.f32 %v4089_v49, 0.0 }
 0x1ee   : > { %v3882_v12 = vadd.f32 %v7031_v27, %v3881_v44  ;;  %v7294_v28 = vmax.f32 %v3959_v20, %v4153_v54  ;;  %v3957_v11 = vmax.f32 %v7198_v29, %v3941_v24  ;;  %v4092_v30 = vadd.f32 %v7031_v27, %v7214_v8 }
 0x1ef   : > { %v5769_v26 = vpop.f32.mrf.mxu0  ;;  %v7226_v57 = vpop.f32.mrf.mxu1  ;;  %v4154_v56 = vmax.f32 %v4100_v2, 0.0 }
 0x1f0   : > { %v3903_v17 = vadd.f32 %v7031_v27, %v5769_v26  ;;  %v3944_v26 = vmax.f32 %v3890_v47, 0.0  ;;  %v3942_v42 = vmax.f32 %v3882_v12, 0.0  ;;  %v4113_v52 = vadd.f32 %v7031_v27, %v7226_v57 }
 0x1f1   : > { %v3894_v48 = vpop.f32.mrf.mxu0  ;;  %v7238_v55 = vpop.f32.mrf.mxu1  ;;  %v4152_v25 = vmax.f32 %v4092_v30, 0.0 }
 0x1f2   : > { %v3895_v10 = vadd.f32 %v7031_v27, %v3894_v48  ;;  %v3947_v48 = vmax.f32 %v3903_v17, 0.0  ;;  %v3960_v57 = vmax.f32 %v7200_v22, %v3944_v26  ;;  %v4105_v53 = vadd.f32 %v7031_v27, %v7238_v55 }
 0x1f3   : > { %v5770_v41 = vpop.f32.mrf.mxu0  ;;  %v7248_v62 = vpop.f32.mrf.mxu1  ;;  %v4157_v46 = vmax.f32 %v4113_v52, 0.0  ;;  %v4167_v55 = vmax.f32 %v3957_v11, %v4151_v58 }
 0x1f4   : > { %v3906_v5 = vadd.f32 %v7031_v27, %v5770_v41  ;;  %v3945_v15 = vmax.f32 %v3895_v10, 0.0  ;;  %v3963_v29 = vmax.f32 %v7211_v0, %v3947_v48  ;;  %v4116_v22 = vadd.f32 %v7031_v27, %v7248_v62 }
 0x1f5   : > { %v3897_v31 = vpop.f32.mrf.mxu0  ;;  %v7257_v4 = vpop.f32.mrf.mxu1  ;;  %v4170_v17 = vmax.f32 %v3960_v57, %v4154_v56 }
 0x1f6   : > { %v3898_v45 = vadd.f32 %v7031_v27, %v3897_v31  ;;  %v3948_v21 = vmax.f32 %v3906_v5, 0.0  ;;  %v3958_v31 = vmax.f32 %v7206_v63, %v3942_v42  ;;  %v3961_v40 = vmax.f32 %v7216_v16, %v3945_v15 }
 0x1f7   : > { %v5773_v19 = vpop.f32.mrf.mxu0  ;;  %v5793_v23 = vpop.f32.mrf.mxu1  ;;  %v4108_v16 = vadd.f32 %v7031_v27, %v7257_v4  ;;  %v7323_v62 = vmax.f32 %v3963_v29, %v4157_v46 }
 0x1f8   : > { %v3919_v41 = vadd.f32 %v7031_v27, %v5773_v19  ;;  %v3946_v61 = vmax.f32 %v3898_v45, 0.0  ;;  %v4129_v47 = vadd.f32 %v7031_v27, %v5793_v23  ;;  %v3964_v20 = vmax.f32 %v7232_v35, %v3948_v21 }
 0x1f9   : > { %v3910_v59 = vpop.f32.mrf.mxu0  ;;  %v4120_v32 = vpop.f32.mrf.mxu1  ;;  %v7321_v54 = vmax.f32 %v3958_v31, %v4152_v25  ;;  %v4156_v58 = vmax.f32 %v4108_v16, 0.0 }
 0x1fa   : > { %v3911_v6 = vadd.f32 %v7031_v27, %v3910_v59  ;;  %v3951_v43 = vmax.f32 %v3919_v41, 0.0  ;;  %v4155_v59 = vmax.f32 %v4105_v53, 0.0  ;;  %v4121_v23 = vadd.f32 %v7031_v27, %v4120_v32 }
 0x1fb   : > { %v5774_v37 = vpop.f32.mrf.mxu0  ;;  %v5794_v44 = vpop.f32.mrf.mxu1  ;;  %v3962_v26 = vmax.f32 %v7240_v3, %v3946_v61  ;;  %v4161_v35 = vmax.f32 %v4129_v47, 0.0 }
 0x1fc   : > { %v3922_v8 = vadd.f32 %v7031_v27, %v5774_v37  ;;  %v3949_v63 = vmax.f32 %v3911_v6, 0.0  ;;  %v7330_v24 = vmax.f32 %v3961_v40, %v4155_v59  ;;  %v4158_v37 = vmax.f32 %v4116_v22, 0.0 }
 0x1fd   : > { %v3913_v36 = vpop.f32.mrf.mxu0  ;;  %v4123_v9 = vpop.f32.mrf.mxu1  ;;  %v3967_v2 = vmax.f32 %v7246_v18, %v3951_v43  ;;  %v4132_v5 = vadd.f32 %v7031_v27, %v5794_v44  ;;  %v4159_v3 = vmax.f32 %v4121_v23, 0.0  ;;  %v7348_v30 = vmax.f32 %v3962_v26, %v4156_v58 }
 0x1fe   : > { %v3952_v49 = vmax.f32 %v3922_v8, 0.0  ;;  %v3965_v4 = vmax.f32 %v7253_v1, %v3949_v63  ;;  %v3914_v42 = vadd.f32 %v7031_v27, %v3913_v36  ;;  %v7337_v52 = vmax.f32 %v3964_v20, %v4158_v37 }
 0x1ff   : > { %v5777_v13 = vpop.f32.mrf.mxu0  ;;  %v5797_v39 = vpop.f32.mrf.mxu1  ;;  %v7340_v15 = vadd.f32 %v7031_v27, %v4123_v9  ;;  %v7352_v57 = vmax.f32 %v3967_v2, %v4161_v35  ;;  %v4162_v53 = vmax.f32 %v4132_v5, 0.0 }
 0x200   : > { %v3968_v11 = vmax.f32 %v7259_v33, %v3952_v49  ;;  %v3935_v18 = vadd.f32 %v7031_v27, %v5777_v13  ;;  %v7346_v1 = vadd.f32 %v7031_v27, %v5797_v39  ;;  %v7354_v56 = vmax.f32 %v3965_v4, %v4159_v3 }
 0x201   : > { %v3926_v38 = vpop.f32.mrf.mxu0  ;;  %v7308_v19 = vpop.f32.mrf.mxu1  ;;  %v3950_v33 = vmax.f32 %v3914_v42, 0.0  ;;  %v4160_v39 = vmax.f32 %v7340_v15, 0.0 }
 0x202   : > { %v7359_v8 = vmax.f32 %v3968_v11, %v4162_v53  ;;  %v3955_v40 = vmax.f32 %v3935_v18, 0.0  ;;  %v4165_v22 = vmax.f32 %v7346_v1, 0.0  ;;  %v7364_v43 = vadd.f32 %v7031_v27, %v3926_v38 }
 0x203   : > { %v7314_v12 = vpop.f32.mrf.mxu0  ;;  %v7316_v0 = vpop.f32.mrf.mxu1  ;;  %v3966_v16 = vmax.f32 %v7269_v34, %v3950_v33  ;;  %v7376_v42 = vadd.f32 %v7031_v27, %v7308_v19 }
 0x204   : > { %v3938_v3 = vadd.f32 %v7031_v27, %v7314_v12 }
 0x205   : > { %v7326_v10 = vpop.f32.mrf.mxu0  ;;  %v7328_v7 = vpop.f32.mrf.mxu1 }
 0x207   : > { %v5805_v32 = vpop.f32.mrf.mxu0  ;;  %v5825_v48 = vpop.f32.mrf.mxu1 }
 0x208   : > { %v4307_v45 = vadd.f32 %v7031_v27, %v5805_v32  ;;  %v4517_v6 = vadd.f32 %v7031_v27, %v5825_v48 }
 0x209   : > { %v4298_v44 = vpop.f32.mrf.mxu0  ;;  %v4508_v36 = vpop.f32.mrf.mxu1 }
 0x20a   : > { %v4363_v41 = vmax.f32 %v4307_v45, 0.0  ;;  %v4299_v9 = vadd.f32 %v7031_v27, %v4298_v44  ;;  %v4509_v61 = vadd.f32 %v7031_v27, %v4508_v36  ;;  %v4573_v59 = vmax.f32 %v4517_v6, 0.0 }
 0x20b   : > { %v5806_v21 = vpop.f32.mrf.mxu0  ;;  %v5826_v13 = vpop.f32.mrf.mxu1 }
 0x20c   : > { %v4361_v31 = vmax.f32 %v4299_v9, 0.0  ;;  %v4310_v29 = vadd.f32 %v7031_v27, %v5806_v21  ;;  %v4520_v46 = vadd.f32 %v7031_v27, %v5826_v13  ;;  %v4379_v63 = vmax.f32 %v7294_v28, %v4363_v41 }
 0x20d   : > { %v4301_v47 = vpop.f32.mrf.mxu0  ;;  %v4511_v25 = vpop.f32.mrf.mxu1  ;;  %v3971_v28 = vmax.f32 %v7281_v50, %v3955_v40  ;;  %v4571_v34 = vmax.f32 %v4509_v61, 0.0  ;;  %v4176_v40 = vmax.f32 %v3966_v16, %v4160_v39 }
 0x20e   : > { %v4364_v20 = vmax.f32 %v4310_v29, 0.0  ;;  %v4377_v23 = vmax.f32 %v4167_v55, %v4361_v31  ;;  %v4302_v49 = vadd.f32 %v7031_v27, %v4301_v47  ;;  %v4512_v37 = vadd.f32 %v7031_v27, %v4511_v25 }
 0x20f   : > { %v5809_v26 = vpop.f32.mrf.mxu0  ;;  %v5829_v35 = vpop.f32.mrf.mxu1  ;;  %v4574_v4 = vmax.f32 %v4520_v46, 0.0  ;;  %v4589_v58 = vmax.f32 %v4379_v63, %v4573_v59  ;;  %v7389_v29 = vadd.f32 %v7031_v27, %v7316_v0 }
 0x210   : > { %v4380_v2 = vmax.f32 %v4170_v17, %v4364_v20  ;;  %v4323_v5 = vadd.f32 %v7031_v27, %v5809_v26  ;;  %v4533_v38 = vadd.f32 %v7031_v27, %v5829_v35  ;;  %v4362_v55 = vmax.f32 %v4302_v49, 0.0 }
 0x211   : > { %v4314_v32 = vpop.f32.mrf.mxu0  ;;  %v4524_v48 = vpop.f32.mrf.mxu1  ;;  %v4587_v11 = vmax.f32 %v4377_v23, %v4571_v34  ;;  %v4572_v50 = vmax.f32 %v4512_v37, 0.0  ;;  %v4163_v49 = vmax.f32 %v7376_v42, 0.0  ;;  %v3956_v37 = vmax.f32 %v3938_v3, 0.0 }
 0x212   : > { %v4590_v15 = vmax.f32 %v4380_v2, %v4574_v4  ;;  %v4367_v45 = vmax.f32 %v4323_v5, 0.0  ;;  %v4315_v17 = vadd.f32 %v7031_v27, %v4314_v32  ;;  %v4378_v18 = vmax.f32 %v7321_v54, %v4362_v55 }
 0x213   : > { %v5810_v44 = vpop.f32.mrf.mxu0  ;;  %v5830_v19 = vpop.f32.mrf.mxu1  ;;  %v4577_v41 = vmax.f32 %v4533_v38, 0.0  ;;  %v4525_v21 = vadd.f32 %v7031_v27, %v4524_v48  ;;  %v3953_v54 = vmax.f32 %v7364_v43, 0.0  ;;  %v3930_v38 = vadd.f32 %v7031_v27, %v7326_v10 }
 0x214   : > { %v5320_v36 = vpack.c.bf16 %v4590_v15, %v4589_v58  ;;  %v4365_v6 = vmax.f32 %v4315_v17, 0.0  ;;  %v4326_v9 = vadd.f32 %v7031_v27, %v5810_v44  ;;  %v4588_v53 = vmax.f32 %v4378_v18, %v4572_v50 }
 0x215   : > { %v4383_v33 = vmax.f32 %v7323_v62, %v4367_v45  ;;  %v4536_v13 = vadd.f32 %v7031_v27, %v5830_v19  ;;  %v4317_v12 = vpop.f32.mrf.mxu0  ;;  %v4527_v31 = vpop.f32.mrf.mxu1  ;;  %v4575_v35 = vmax.f32 %v4525_v21, 0.0  ;;  %v3972_v3 = vmax.f32 %v7285_v51, %v3956_v37  ;;  %v6013_v51 = vld [vmem:[%s7484_s2] ss:$0 sm:$0xff] }
 0x216   : > { %5352 = vst [vmem:[%s7393_s29 + $0x8] sm:$0xff] %v5320_v36   ;;  %v4368_v46 = vmax.f32 %v4326_v9, 0.0  ;;  %v4318_v62 = vadd.f32 %v7031_v27, %v4317_v12  ;;  %v5315_v61 = vpack.c.bf16 %v4588_v53, %v4587_v11  ;;  %v4381_v47 = vmax.f32 %v7330_v24, %v4365_v6 }
 0x217   : > { %v4528_v25 = vadd.f32 %v7031_v27, %v4527_v31  ;;  %v5813_v43 = vpop.f32.mrf.mxu0  ;;  %v5833_v63 = vpop.f32.mrf.mxu1  ;;  %v4578_v59 = vmax.f32 %v4536_v13, 0.0  ;;  %v4593_v26 = vmax.f32 %v4383_v33, %v4577_v41  ;;  %v4166_v11 = vmax.f32 %v7389_v29, 0.0 }
 0x218   : > { %v4384_v0 = vmax.f32 %v7337_v52, %v4368_v46  ;;  %v4366_v20 = vmax.f32 %v4318_v62, 0.0  ;;  %v4339_v23 = vadd.f32 %v7031_v27, %v5813_v43  ;;  %5316 = vst [vmem:[%s7393_s29] sm:$0xff] %v5315_v61   ;;  %v4181_v52 = vmax.f32 %v3971_v28, %v4165_v22 }
 0x219   : > { %v4330_v39 = vpop.f32.mrf.mxu0  ;;  %v4540_v16 = vpop.f32.mrf.mxu1  ;;  %v4576_v4 = vmax.f32 %v4528_v25, 0.0  ;;  %v4549_v42 = vadd.f32 %v7031_v27, %v5833_v63  ;;  %v4591_v48 = vmax.f32 %v4381_v47, %v4575_v35  ;;  %v3954_v9 = vmax.f32 %v3930_v38, 0.0 }
 0x21a   : > { %v4594_v2 = vmax.f32 %v4384_v0, %v4578_v59  ;;  %v4382_v24 = vmax.f32 %v7348_v30, %v4366_v20  ;;  %v4331_v5 = vadd.f32 %v7031_v27, %v4330_v39  ;;  %v4371_v34 = vmax.f32 %v4339_v23, 0.0 }
 0x21b   : > { %v5814_v55 = vpop.f32.mrf.mxu0  ;;  %v5834_v32 = vpop.f32.mrf.mxu1  ;;  %v3969_v30 = vmax.f32 %v7283_v60, %v3953_v54  ;;  %v4541_v17 = vadd.f32 %v7031_v27, %v4540_v16  ;;  %v4581_v60 = vmax.f32 %v4549_v42, 0.0  ;;  %v4182_v59 = vmax.f32 %v3972_v3, %v4166_v11 }
 0x21c   : > { %v5330_v58 = vpack.c.bf16 %v4594_v2, %v4593_v26  ;;  %v4592_v15 = vmax.f32 %v4382_v24, %v4576_v4  ;;  %v4369_v45 = vmax.f32 %v4331_v5, 0.0  ;;  %v4342_v1 = vadd.f32 %v7031_v27, %v5814_v55 }
 0x21d   : > { %v4552_v22 = vadd.f32 %v7031_v27, %v5834_v32  ;;  %v4333_v10 = vpop.f32.mrf.mxu0  ;;  %v4543_v28 = vpop.f32.mrf.mxu1  ;;  %v4387_v44 = vmax.f32 %v7352_v57, %v4371_v34  ;;  %v4579_v13 = vmax.f32 %v4541_v17, 0.0  ;;  %v4179_v47 = vmax.f32 %v3969_v30, %v4163_v49 }
 0x21e   : > { %5354 = vst [vmem:[%s7393_s29 + $0x18] sm:$0xff] %v5330_v58   ;;  %v5325_v18 = vpack.c.bf16 %v4592_v15, %v4591_v48  ;;  %v4334_v50 = vadd.f32 %v7031_v27, %v4333_v10  ;;  %v4372_v19 = vmax.f32 %v4342_v1, 0.0  ;;  %v4544_v36 = vadd.f32 %v7031_v27, %v4543_v28 }
 0x21f   : > { %v5817_v41 = vpop.f32.mrf.mxu0  ;;  %v5837_v6 = vpop.f32.mrf.mxu1  ;;  %v4385_v53 = vmax.f32 %v7354_v56, %v4369_v45  ;;  %v4582_v57 = vmax.f32 %v4552_v22, 0.0  ;;  %v4140_v56 = vadd.f32 %v6013_v51, %v7328_v7  ;;  %v4597_v25 = vmax.f32 %v4387_v44, %v4581_v60 }
 0x220   : > { %5353 = vst [vmem:[%s7393_s29 + $0x10] sm:$0xff] %v5325_v18   ;;  %v4370_v33 = vmax.f32 %v4334_v50, 0.0  ;;  %v4355_v21 = vadd.f32 %v6013_v51, %v5817_v41  ;;  %v4388_v12 = vmax.f32 %v7359_v8, %v4372_v19  ;;  %v4565_v31 = vadd.f32 %v6013_v51, %v5837_v6 }
 0x221   : > { %v4346_v54 = vpop.f32.mrf.mxu0  ;;  %v4556_v29 = vpop.f32.mrf.mxu1  ;;  %v4580_v46 = vmax.f32 %v4544_v36, 0.0  ;;  %v4595_v20 = vmax.f32 %v4385_v53, %v4579_v13  ;;  %v3970_v37 = vmax.f32 %v7290_v14, %v3954_v9  ;;  %v4164_v4 = vmax.f32 %v4140_v56, 0.0 }
 0x222   : > { %v4386_v27 = vmax.f32 %v4176_v40, %v4370_v33  ;;  %v4375_v62 = vmax.f32 %v4355_v21, 0.0  ;;  %v4347_v61 = vadd.f32 %v6013_v51, %v4346_v54  ;;  %v4598_v43 = vmax.f32 %v4388_v12, %v4582_v57 }
 0x223   : > { %v5818_v63 = vpop.f32.mrf.mxu0  ;;  %v5838_v0 = vpop.f32.mrf.mxu1  ;;  %v4585_v7 = vmax.f32 %v4565_v31, 0.0  ;;  %v4557_v5 = vadd.f32 %v6013_v51, %v4556_v29  ;;  %v4180_v55 = vmax.f32 %v3970_v37, %v4164_v4 }
 0x224   : > { %v4596_v23 = vmax.f32 %v4386_v27, %v4580_v46  ;;  %v4358_v8 = vadd.f32 %v6013_v51, %v5818_v63  ;;  %v5340_v26 = vpack.c.bf16 %v4598_v43, %v4597_v25  ;;  %v4373_v40 = vmax.f32 %v4347_v61, 0.0 }
 0x225   : > { %v4568_v35 = vadd.f32 %v6013_v51, %v5838_v0  ;;  %v4349_v39 = vpop.f32.mrf.mxu0  ;;  %v4559_v16 = vpop.f32.mrf.mxu1  ;;  %v4391_v2 = vmax.f32 %v4181_v52, %v4375_v62  ;;  %v4583_v15 = vmax.f32 %v4557_v5, 0.0 }
 0x226   : > { %v5335_v49 = vpack.c.bf16 %v4596_v23, %v4595_v20  ;;  %v4376_v24 = vmax.f32 %v4358_v8, 0.0  ;;  %5356 = vst [vmem:[%s7393_s29 + $0x28] sm:$0xff] %v5340_v26   ;;  %v4350_v38 = vadd.f32 %v6013_v51, %v4349_v39  ;;  %v4560_v34 = vadd.f32 %v6013_v51, %v4559_v16 }
 0x227   : > { %v4586_v14 = vmax.f32 %v4568_v35, 0.0  ;;  %v4389_v32 = vmax.f32 %v4179_v47, %v4373_v40  ;;  %v4601_v58 = vmax.f32 %v4391_v2, %v4585_v7 }
 0x228   : > { %5355 = vst [vmem:[%s7393_s29 + $0x20] sm:$0xff] %v5335_v49   ;;  %v4392_v42 = vmax.f32 %v4182_v59, %v4376_v24  ;;  %v4374_v48 = vmax.f32 %v4350_v38, 0.0  ;;  %v4584_v30 = vmax.f32 %v4560_v34, 0.0 }
 0x229   : > { %v4599_v1 = vmax.f32 %v4389_v32, %v4583_v15 }
 0x22a   : > { %v4602_v52 = vmax.f32 %v4392_v42, %v4586_v14  ;;  %v4390_v45 = vmax.f32 %v4180_v55, %v4374_v48 }
 0x22c   : > { %v5350_v17 = vpack.c.bf16 %v4602_v52, %v4601_v58  ;;  %v4600_v22 = vmax.f32 %v4390_v45, %v4584_v30 }
 0x22e   : > { %5358 = vst [vmem:[%s7393_s29 + $0x38] sm:$0xff] %v5350_v17   ;;  %v5345_v10 = vpack.c.bf16 %v4600_v22, %v4599_v1 }
 0x230   : > { %5357 = vst [vmem:[%s7393_s29 + $0x30] sm:$0xff] %v5345_v10  }
 0x231   : > { %6027 = shalt.err (!%p6024_p5)
}
 0x232   : > { %s6028_s24 = scalar_lea.hbm %s7437_s10, 1024  ;;  %s6032_s27 = scalar_lea.hbm %s7485_s3, 8192 }
 0x233   : > { %p6029_p7 = scmp.ne.s32.totalorder %s7437_s10, %s6028_s24  ;;  %p6033_p11 = scmp.lt.s32.totalorder %s7437_s10, %s7485_s3 }
 0x234   : > { %p6034_p12 = scmp.lt.s32.totalorder %s6032_s27, %s6028_s24 }
 0x235   : > { %p6030_p9 = pnand %p6029_p7, %p6137_p6 }
 0x236   : > { %p6035_p13 = por %p6034_p12, %p6033_p11 }
 0x237   : > { %p6031_p10 = pneg %p6030_p9 }
 0x239   : > { %p6036_p0 = pnand %p6035_p13, %p6031_p10 }
 0x23b   : > { %6039 = shalt.err (!%p6036_p0)
}
 0x23c   : > { %s6077_s30 = smov 64   ;;  %s6078_s4 = smov 4  }
 0x23d   : > { %5839 = dma.vmem_to_hbm [thread:$0]  (%p6137_p6), %s7439_s7, 1024, %s7437_s10, %s4684_s11, %s6077_s30, %s6077_s30, %s6078_s4  }
 0x23e PF: > { %p5845_p1 = scmp.ge.s32.totalorder %s6074_s15, 2  ;;  %s4712_s5 = sand.u32 1, %s6062_s12  }
 0x23f   : > { %s4713_s8 = scalar_lea.sflag [#allocation4], %s4712_s5 }
 0x240   : > { %p5842_p2 = pnand %p5845_p1, %p6141_p8 }
 0x242   : > { %p5843_p3 = pneg %p5842_p2 }
 0x244   : > { %6057 = dma.done.wait (%p5843_p3), %s4713_s8, 1024  }
 0x245   : > { %6059 = vsyncadd (%p5843_p3), %s4713_s8, 4294966272  ;;  %p13_p4 = scmp.ge.s32.totalorder %s6122_s18, 10   ;;  %s7488_s12 = smov %s6066_s13 }
 0x246   : > { %s7489_s13 = smov %s6070_s14  ;;  %s7490_s14 = smov %s6135_s21 }
 0x247   : > { %s7491_s15 = smov %s6122_s18  ;;  %15 = sbr.rel (!%p13_p4) target bundleno = 3 (0x3), region = 128 }
 0x24c   :  { %4718 = vsyncpa [#allocation4], 1 }
 0x24d   :  { %4720 = vsyncpa [#allocation4 + $0x1], 1 }

// kernel: tpu_custom_call.1
= control target key start
LH: loop header
LB: loop body
LE: loop exit
PB: predicated region body
PF: predicated region fallthrough
CT: control target
= control target key end

     0   :  { %8 = vsyncpa [#allocation4], 0  ;;  %s7482_s0 = inlined_call_operand.vmem [shape: bf16[16,1024,32], index: 0, kind: input, shape index: {}]   ;;  %s7483_s1 = inlined_call_operand.vmem [shape: bf16[32,128], index: 1, kind: input, shape index: {}]   ;;  %s7484_s2 = inlined_call_operand.vmem [shape: f32[1,128], index: 2, kind: input, shape index: {}]   ;;  %s7485_s3 = inlined_call_operand.hbm [shape: bf16[1024,128], index: 3, kind: output, shape index: {}]  }
   0x1   :  { %10 = vsyncpa [#allocation4 + $0x1], 0  ;;  %s6099_s12 = smov 0   ;;  %s6101_s13 = smov 0  }
   0x2   :  { %s6103_s14 = smov 0   ;;  %s6105_s15 = smov 0  }
   0x3 LB: > { %s4764_s16 = sadd.s32 4294967295, %s6074_s15   ;;  %s4765_s17 = sadd.s32 4294967294, %s6074_s15   ;;  %s6074_s15 = sphi %s6105_s15, %s7491_s15   ;;  %s6070_s14 = sphi %s6103_s14, %s7490_s14   ;;  %s6066_s13 = sphi %s6101_s13, %s7489_s13   ;;  %s6062_s12 = sphi %s6099_s12, %s7488_s12  }
   0x4   : > { %s6122_s18 = sadd.s32 1, %s6074_s15   ;;  %s23_s19 = sadd.s32 1, %s6070_s14 }
   0x5   : > { %s20_s20 = ssub.s32 %s6074_s15, %s6122_s18  ;;  %p30_p0 = scmp.ne.s32.totalorder %s6070_s14, %s6066_s13 }
   0x6   : > { %p21_p1 = scmp.eq.s32.totalorder %s20_s20, 0  ;;  %p31_p2 = scmp.eq.s32.totalorder %s6074_s15, 0 }
   0x7   : > { %p102_p3 = scmp.eq.s32.totalorder %s4764_s16, 7  ;;  %p107_p4 = scmp.ne.s32.totalorder %s6066_s13, %s6062_s12 }
   0x8   : > { %s6135_s21 = scalar_select %p21_p1, %s6070_s14, %s23_s19  }
   0x9   : > { %p32_p5 = por %p31_p2, %p30_p0  ;;  %p6137_p6 = por %p102_p3, %p30_p0 }
   0xa   : > { %p108_p7 = scmp.eq.s32.totalorder %s4765_s17, 7  ;;  %p4767_p9 = scmp.ge.s32.totalorder %s6074_s15, 8 }
   0xc   : > { %p6141_p8 = por %p108_p7, %p107_p4  ;;  %130 = sbr.rel (%p4767_p9) target bundleno = 85 (0x55), region = 24 }
  0x11   : > { %133 = sbr.rel (!%p32_p5) target bundleno = 85 (0x55), region = 28  ;;  %s135_s24 = sand.u32 (%p32_p5), 1, %s6070_s14  }
  0x12   : > { %s5294_s25 = sshll.u32 (%p32_p5), %s6074_s15, 6  ;;  %s4768_s26 = sshll.u32 (%p32_p5), %s135_s24, 10 }
  0x13   : > { %s6151_s29 = scalar_lea.vmem (%p32_p5), %s7482_s0, %s5294_s25  ;;  %s6156_s30 = scalar_lea.vmem (%p32_p5), [#allocation2], %s4768_s26 }
  0x14   : > { %v157_v0 = vld [vmem:[%s6151_s29] sm:$0xff] (%p32_p5)   ;;  %v161_v1 = vld [vmem:[%s6151_s29 + $0x8] sm:$0xff] (%p32_p5)   ;;  %v165_v2 = vld [vmem:[%s6151_s29 + $0x10] sm:$0xff] (%p32_p5)  }
  0x15   : > { %158 = vst [vmem:[%s6156_s30] sm:$0xff] (%p32_p5), %v157_v0   ;;  %162 = vst [vmem:[%s6156_s30 + $0x8] sm:$0xff] (%p32_p5), %v161_v1   ;;  %v169_v3 = vld [vmem:[%s6151_s29 + $0x18] sm:$0xff] (%p32_p5)   ;;  %v173_v4 = vld [vmem:[%s6151_s29 + $0x20] sm:$0xff] (%p32_p5)  }
  0x16   : > { %166 = vst [vmem:[%s6156_s30 + $0x10] sm:$0xff] %v165_v2   ;;  %v177_v5 = vld [vmem:[%s6151_s29 + $0x28] sm:$0xff]   ;;  %170 = vst [vmem:[%s6156_s30 + $0x18] sm:$0xff] %v169_v3   ;;  %v181_v6 = vld [vmem:[%s6151_s29 + $0x30] sm:$0xff]  }
  0x17   : > { %174 = vst [vmem:[%s6156_s30 + $0x20] sm:$0xff] %v173_v4   ;;  %178 = vst [vmem:[%s6156_s30 + $0x28] sm:$0xff] %v177_v5   ;;  %v185_v7 = vld [vmem:[%s6151_s29 + $0x38] sm:$0xff]   ;;  %v189_v8 = vld [vmem:[%s6151_s29 + $0x200] sm:$0xff]  }
  0x18   : > { %182 = vst [vmem:[%s6156_s30 + $0x30] sm:$0xff] %v181_v6   ;;  %186 = vst [vmem:[%s6156_s30 + $0x38] sm:$0xff] %v185_v7   ;;  %v193_v9 = vld [vmem:[%s6151_s29 + $0x208] sm:$0xff]   ;;  %v197_v10 = vld [vmem:[%s6151_s29 + $0x210] sm:$0xff]  }
  0x19   : > { %190 = vst [vmem:[%s6156_s30 + $0x40] sm:$0xff] %v189_v8   ;;  %v201_v11 = vld [vmem:[%s6151_s29 + $0x218] sm:$0xff]   ;;  %194 = vst [vmem:[%s6156_s30 + $0x48] sm:$0xff] %v193_v9   ;;  %v205_v12 = vld [vmem:[%s6151_s29 + $0x220] sm:$0xff]  }
  0x1a   : > { %198 = vst [vmem:[%s6156_s30 + $0x50] sm:$0xff] %v197_v10   ;;  %202 = vst [vmem:[%s6156_s30 + $0x58] sm:$0xff] %v201_v11   ;;  %v209_v13 = vld [vmem:[%s6151_s29 + $0x228] sm:$0xff]   ;;  %v213_v14 = vld [vmem:[%s6151_s29 + $0x230] sm:$0xff]  }
  0x1b   : > { %206 = vst [vmem:[%s6156_s30 + $0x60] sm:$0xff] %v205_v12   ;;  %210 = vst [vmem:[%s6156_s30 + $0x68] sm:$0xff] %v209_v13   ;;  %v217_v15 = vld [vmem:[%s6151_s29 + $0x238] sm:$0xff]   ;;  %v221_v16 = vld [vmem:[%s6151_s29 + $0x400] sm:$0xff]  }
  0x1c   : > { %214 = vst [vmem:[%s6156_s30 + $0x70] sm:$0xff] %v213_v14   ;;  %v225_v17 = vld [vmem:[%s6151_s29 + $0x408] sm:$0xff]   ;;  %218 = vst [vmem:[%s6156_s30 + $0x78] sm:$0xff] %v217_v15   ;;  %v229_v18 = vld [vmem:[%s6151_s29 + $0x410] sm:$0xff]  }
  0x1d   : > { %222 = vst [vmem:[%s6156_s30 + $0x80] sm:$0xff] %v221_v16   ;;  %226 = vst [vmem:[%s6156_s30 + $0x88] sm:$0xff] %v225_v17   ;;  %v233_v19 = vld [vmem:[%s6151_s29 + $0x418] sm:$0xff]   ;;  %v237_v20 = vld [vmem:[%s6151_s29 + $0x420] sm:$0xff]  }
  0x1e   : > { %230 = vst [vmem:[%s6156_s30 + $0x90] sm:$0xff] %v229_v18   ;;  %234 = vst [vmem:[%s6156_s30 + $0x98] sm:$0xff] %v233_v19   ;;  %v241_v21 = vld [vmem:[%s6151_s29 + $0x428] sm:$0xff]   ;;  %v245_v22 = vld [vmem:[%s6151_s29 + $0x430] sm:$0xff]  }
  0x1f   : > { %238 = vst [vmem:[%s6156_s30 + $0xa0] sm:$0xff] %v237_v20   ;;  %v249_v23 = vld [vmem:[%s6151_s29 + $0x438] sm:$0xff]   ;;  %242 = vst [vmem:[%s6156_s30 + $0xa8] sm:$0xff] %v241_v21   ;;  %v253_v24 = vld [vmem:[%s6151_s29 + $0x600] sm:$0xff]  }
  0x20   : > { %246 = vst [vmem:[%s6156_s30 + $0xb0] sm:$0xff] %v245_v22   ;;  %250 = vst [vmem:[%s6156_s30 + $0xb8] sm:$0xff] %v249_v23   ;;  %v257_v25 = vld [vmem:[%s6151_s29 + $0x608] sm:$0xff]   ;;  %v261_v26 = vld [vmem:[%s6151_s29 + $0x610] sm:$0xff]  }
  0x21   : > { %254 = vst [vmem:[%s6156_s30 + $0xc0] sm:$0xff] %v253_v24   ;;  %258 = vst [vmem:[%s6156_s30 + $0xc8] sm:$0xff] %v257_v25   ;;  %v265_v27 = vld [vmem:[%s6151_s29 + $0x618] sm:$0xff]   ;;  %v269_v28 = vld [vmem:[%s6151_s29 + $0x620] sm:$0xff]  }
  0x22   : > { %262 = vst [vmem:[%s6156_s30 + $0xd0] sm:$0xff] %v261_v26   ;;  %v273_v29 = vld [vmem:[%s6151_s29 + $0x628] sm:$0xff]   ;;  %266 = vst [vmem:[%s6156_s30 + $0xd8] sm:$0xff] %v265_v27   ;;  %v277_v30 = vld [vmem:[%s6151_s29 + $0x630] sm:$0xff]  }
  0x23   : > { %270 = vst [vmem:[%s6156_s30 + $0xe0] sm:$0xff] %v269_v28   ;;  %274 = vst [vmem:[%s6156_s30 + $0xe8] sm:$0xff] %v273_v29   ;;  %v281_v31 = vld [vmem:[%s6151_s29 + $0x638] sm:$0xff]   ;;  %v285_v32 = vld [vmem:[%s6151_s29 + $0x800] sm:$0xff]  }
  0x24   : > { %278 = vst [vmem:[%s6156_s30 + $0xf0] sm:$0xff] %v277_v30   ;;  %282 = vst [vmem:[%s6156_s30 + $0xf8] sm:$0xff] %v281_v31   ;;  %v289_v33 = vld [vmem:[%s6151_s29 + $0x808] sm:$0xff]   ;;  %v293_v34 = vld [vmem:[%s6151_s29 + $0x810] sm:$0xff]  }
  0x25   : > { %286 = vst [vmem:[%s6156_s30 + $0x100] sm:$0xff] %v285_v32   ;;  %v297_v35 = vld [vmem:[%s6151_s29 + $0x818] sm:$0xff]   ;;  %290 = vst [vmem:[%s6156_s30 + $0x108] sm:$0xff] %v289_v33   ;;  %v301_v36 = vld [vmem:[%s6151_s29 + $0x820] sm:$0xff]  }
  0x26   : > { %294 = vst [vmem:[%s6156_s30 + $0x110] sm:$0xff] %v293_v34   ;;  %298 = vst [vmem:[%s6156_s30 + $0x118] sm:$0xff] %v297_v35   ;;  %v305_v37 = vld [vmem:[%s6151_s29 + $0x828] sm:$0xff]   ;;  %v309_v38 = vld [vmem:[%s6151_s29 + $0x830] sm:$0xff]  }
  0x27   : > { %302 = vst [vmem:[%s6156_s30 + $0x120] sm:$0xff] %v301_v36   ;;  %306 = vst [vmem:[%s6156_s30 + $0x128] sm:$0xff] %v305_v37   ;;  %v313_v39 = vld [vmem:[%s6151_s29 + $0x838] sm:$0xff]   ;;  %v317_v40 = vld [vmem:[%s6151_s29 + $0xa00] sm:$0xff]  }
  0x28   : > { %310 = vst [vmem:[%s6156_s30 + $0x130] sm:$0xff] %v309_v38   ;;  %v321_v41 = vld [vmem:[%s6151_s29 + $0xa08] sm:$0xff]   ;;  %314 = vst [vmem:[%s6156_s30 + $0x138] sm:$0xff] %v313_v39   ;;  %v325_v42 = vld [vmem:[%s6151_s29 + $0xa10] sm:$0xff]  }
  0x29   : > { %318 = vst [vmem:[%s6156_s30 + $0x140] sm:$0xff] %v317_v40   ;;  %322 = vst [vmem:[%s6156_s30 + $0x148] sm:$0xff] %v321_v41   ;;  %v329_v43 = vld [vmem:[%s6151_s29 + $0xa18] sm:$0xff]   ;;  %v333_v44 = vld [vmem:[%s6151_s29 + $0xa20] sm:$0xff]  }
  0x2a   : > { %326 = vst [vmem:[%s6156_s30 + $0x150] sm:$0xff] %v325_v42   ;;  %330 = vst [vmem:[%s6156_s30 + $0x158] sm:$0xff] %v329_v43   ;;  %v337_v45 = vld [vmem:[%s6151_s29 + $0xa28] sm:$0xff]   ;;  %v341_v46 = vld [vmem:[%s6151_s29 + $0xa30] sm:$0xff]  }
  0x2b   : > { %334 = vst [vmem:[%s6156_s30 + $0x160] sm:$0xff] %v333_v44   ;;  %v345_v47 = vld [vmem:[%s6151_s29 + $0xa38] sm:$0xff]   ;;  %338 = vst [vmem:[%s6156_s30 + $0x168] sm:$0xff] %v337_v45   ;;  %v349_v48 = vld [vmem:[%s6151_s29 + $0xc00] sm:$0xff]  }
  0x2c   : > { %342 = vst [vmem:[%s6156_s30 + $0x170] sm:$0xff] %v341_v46   ;;  %346 = vst [vmem:[%s6156_s30 + $0x178] sm:$0xff] %v345_v47   ;;  %v353_v49 = vld [vmem:[%s6151_s29 + $0xc08] sm:$0xff]   ;;  %v357_v50 = vld [vmem:[%s6151_s29 + $0xc10] sm:$0xff]  }
  0x2d   : > { %350 = vst [vmem:[%s6156_s30 + $0x180] sm:$0xff] %v349_v48   ;;  %354 = vst [vmem:[%s6156_s30 + $0x188] sm:$0xff] %v353_v49   ;;  %v361_v51 = vld [vmem:[%s6151_s29 + $0xc18] sm:$0xff]   ;;  %v365_v52 = vld [vmem:[%s6151_s29 + $0xc20] sm:$0xff]  }
  0x2e   : > { %358 = vst [vmem:[%s6156_s30 + $0x190] sm:$0xff] %v357_v50   ;;  %v369_v53 = vld [vmem:[%s6151_s29 + $0xc28] sm:$0xff]   ;;  %362 = vst [vmem:[%s6156_s30 + $0x198] sm:$0xff] %v361_v51   ;;  %v373_v54 = vld [vmem:[%s6151_s29 + $0xc30] sm:$0xff]  }
  0x2f   : > { %366 = vst [vmem:[%s6156_s30 + $0x1a0] sm:$0xff] %v365_v52   ;;  %370 = vst [vmem:[%s6156_s30 + $0x1a8] sm:$0xff] %v369_v53   ;;  %v377_v55 = vld [vmem:[%s6151_s29 + $0xc38] sm:$0xff]   ;;  %v381_v56 = vld [vmem:[%s6151_s29 + $0xe00] sm:$0xff]  }
  0x30   : > { %374 = vst [vmem:[%s6156_s30 + $0x1b0] sm:$0xff] %v373_v54   ;;  %378 = vst [vmem:[%s6156_s30 + $0x1b8] sm:$0xff] %v377_v55   ;;  %v385_v57 = vld [vmem:[%s6151_s29 + $0xe08] sm:$0xff]   ;;  %v389_v58 = vld [vmem:[%s6151_s29 + $0xe10] sm:$0xff]  }
  0x31   : > { %382 = vst [vmem:[%s6156_s30 + $0x1c0] sm:$0xff] %v381_v56   ;;  %v393_v59 = vld [vmem:[%s6151_s29 + $0xe18] sm:$0xff]   ;;  %386 = vst [vmem:[%s6156_s30 + $0x1c8] sm:$0xff] %v385_v57   ;;  %v397_v60 = vld [vmem:[%s6151_s29 + $0xe20] sm:$0xff]  }
  0x32   : > { %390 = vst [vmem:[%s6156_s30 + $0x1d0] sm:$0xff] %v389_v58   ;;  %394 = vst [vmem:[%s6156_s30 + $0x1d8] sm:$0xff] %v393_v59   ;;  %v401_v61 = vld [vmem:[%s6151_s29 + $0xe28] sm:$0xff]   ;;  %v405_v62 = vld [vmem:[%s6151_s29 + $0xe30] sm:$0xff]  }
  0x33   : > { %398 = vst [vmem:[%s6156_s30 + $0x1e0] sm:$0xff] %v397_v60   ;;  %402 = vst [vmem:[%s6156_s30 + $0x1e8] sm:$0xff] %v401_v61   ;;  %v409_v63 = vld [vmem:[%s6151_s29 + $0xe38] sm:$0xff]   ;;  %v413_v0 = vld [vmem:[%s6151_s29 + $0x1000] sm:$0xff]  }
  0x34   : > { %406 = vst [vmem:[%s6156_s30 + $0x1f0] sm:$0xff] %v405_v62   ;;  %v417_v1 = vld [vmem:[%s6151_s29 + $0x1008] sm:$0xff]   ;;  %410 = vst [vmem:[%s6156_s30 + $0x1f8] sm:$0xff] %v409_v63   ;;  %v421_v2 = vld [vmem:[%s6151_s29 + $0x1010] sm:$0xff]  }
  0x35   : > { %414 = vst [vmem:[%s6156_s30 + $0x200] sm:$0xff] %v413_v0   ;;  %418 = vst [vmem:[%s6156_s30 + $0x208] sm:$0xff] %v417_v1   ;;  %v425_v3 = vld [vmem:[%s6151_s29 + $0x1018] sm:$0xff]   ;;  %v429_v4 = vld [vmem:[%s6151_s29 + $0x1020] sm:$0xff]  }
  0x36   : > { %422 = vst [vmem:[%s6156_s30 + $0x210] sm:$0xff] %v421_v2   ;;  %426 = vst [vmem:[%s6156_s30 + $0x218] sm:$0xff] %v425_v3   ;;  %v433_v5 = vld [vmem:[%s6151_s29 + $0x1028] sm:$0xff]   ;;  %v437_v6 = vld [vmem:[%s6151_s29 + $0x1030] sm:$0xff]  }
  0x37   : > { %430 = vst [vmem:[%s6156_s30 + $0x220] sm:$0xff] %v429_v4   ;;  %v441_v7 = vld [vmem:[%s6151_s29 + $0x1038] sm:$0xff]   ;;  %434 = vst [vmem:[%s6156_s30 + $0x228] sm:$0xff] %v433_v5   ;;  %v445_v8 = vld [vmem:[%s6151_s29 + $0x1200] sm:$0xff]  }
  0x38   : > { %438 = vst [vmem:[%s6156_s30 + $0x230] sm:$0xff] %v437_v6   ;;  %442 = vst [vmem:[%s6156_s30 + $0x238] sm:$0xff] %v441_v7   ;;  %v449_v9 = vld [vmem:[%s6151_s29 + $0x1208] sm:$0xff]   ;;  %v453_v10 = vld [vmem:[%s6151_s29 + $0x1210] sm:$0xff]  }
  0x39   : > { %446 = vst [vmem:[%s6156_s30 + $0x240] sm:$0xff] %v445_v8   ;;  %450 = vst [vmem:[%s6156_s30 + $0x248] sm:$0xff] %v449_v9   ;;  %v457_v11 = vld [vmem:[%s6151_s29 + $0x1218] sm:$0xff]   ;;  %v461_v12 = vld [vmem:[%s6151_s29 + $0x1220] sm:$0xff]  }
  0x3a   : > { %454 = vst [vmem:[%s6156_s30 + $0x250] sm:$0xff] %v453_v10   ;;  %v465_v13 = vld [vmem:[%s6151_s29 + $0x1228] sm:$0xff]   ;;  %458 = vst [vmem:[%s6156_s30 + $0x258] sm:$0xff] %v457_v11   ;;  %v469_v14 = vld [vmem:[%s6151_s29 + $0x1230] sm:$0xff]  }
  0x3b   : > { %462 = vst [vmem:[%s6156_s30 + $0x260] sm:$0xff] %v461_v12   ;;  %466 = vst [vmem:[%s6156_s30 + $0x268] sm:$0xff] %v465_v13   ;;  %v473_v15 = vld [vmem:[%s6151_s29 + $0x1238] sm:$0xff]   ;;  %v477_v16 = vld [vmem:[%s6151_s29 + $0x1400] sm:$0xff]  }
  0x3c   : > { %470 = vst [vmem:[%s6156_s30 + $0x270] sm:$0xff] %v469_v14   ;;  %474 = vst [vmem:[%s6156_s30 + $0x278] sm:$0xff] %v473_v15   ;;  %v481_v17 = vld [vmem:[%s6151_s29 + $0x1408] sm:$0xff]   ;;  %v485_v18 = vld [vmem:[%s6151_s29 + $0x1410] sm:$0xff]  }
  0x3d   : > { %478 = vst [vmem:[%s6156_s30 + $0x280] sm:$0xff] %v477_v16   ;;  %v489_v19 = vld [vmem:[%s6151_s29 + $0x1418] sm:$0xff]   ;;  %482 = vst [vmem:[%s6156_s30 + $0x288] sm:$0xff] %v481_v17   ;;  %v493_v20 = vld [vmem:[%s6151_s29 + $0x1420] sm:$0xff]  }
  0x3e   : > { %486 = vst [vmem:[%s6156_s30 + $0x290] sm:$0xff] %v485_v18   ;;  %490 = vst [vmem:[%s6156_s30 + $0x298] sm:$0xff] %v489_v19   ;;  %v497_v21 = vld [vmem:[%s6151_s29 + $0x1428] sm:$0xff]   ;;  %v501_v22 = vld [vmem:[%s6151_s29 + $0x1430] sm:$0xff]  }
  0x3f   : > { %494 = vst [vmem:[%s6156_s30 + $0x2a0] sm:$0xff] %v493_v20   ;;  %498 = vst [vmem:[%s6156_s30 + $0x2a8] sm:$0xff] %v497_v21   ;;  %v505_v23 = vld [vmem:[%s6151_s29 + $0x1438] sm:$0xff]   ;;  %v509_v24 = vld [vmem:[%s6151_s29 + $0x1600] sm:$0xff]  }
  0x40   : > { %502 = vst [vmem:[%s6156_s30 + $0x2b0] sm:$0xff] %v501_v22   ;;  %v513_v25 = vld [vmem:[%s6151_s29 + $0x1608] sm:$0xff]   ;;  %506 = vst [vmem:[%s6156_s30 + $0x2b8] sm:$0xff] %v505_v23   ;;  %v517_v26 = vld [vmem:[%s6151_s29 + $0x1610] sm:$0xff]  }
  0x41   : > { %510 = vst [vmem:[%s6156_s30 + $0x2c0] sm:$0xff] %v509_v24   ;;  %514 = vst [vmem:[%s6156_s30 + $0x2c8] sm:$0xff] %v513_v25   ;;  %v521_v27 = vld [vmem:[%s6151_s29 + $0x1618] sm:$0xff]   ;;  %v525_v28 = vld [vmem:[%s6151_s29 + $0x1620] sm:$0xff]  }
  0x42   : > { %518 = vst [vmem:[%s6156_s30 + $0x2d0] sm:$0xff] %v517_v26   ;;  %522 = vst [vmem:[%s6156_s30 + $0x2d8] sm:$0xff] %v521_v27   ;;  %v529_v29 = vld [vmem:[%s6151_s29 + $0x1628] sm:$0xff]   ;;  %v533_v30 = vld [vmem:[%s6151_s29 + $0x1630] sm:$0xff]  }
  0x43   : > { %526 = vst [vmem:[%s6156_s30 + $0x2e0] sm:$0xff] %v525_v28   ;;  %v537_v31 = vld [vmem:[%s6151_s29 + $0x1638] sm:$0xff]   ;;  %530 = vst [vmem:[%s6156_s30 + $0x2e8] sm:$0xff] %v529_v29   ;;  %v541_v32 = vld [vmem:[%s6151_s29 + $0x1800] sm:$0xff]  }
  0x44   : > { %534 = vst [vmem:[%s6156_s30 + $0x2f0] sm:$0xff] %v533_v30   ;;  %538 = vst [vmem:[%s6156_s30 + $0x2f8] sm:$0xff] %v537_v31   ;;  %v545_v33 = vld [vmem:[%s6151_s29 + $0x1808] sm:$0xff]   ;;  %v549_v34 = vld [vmem:[%s6151_s29 + $0x1810] sm:$0xff]  }
  0x45   : > { %542 = vst [vmem:[%s6156_s30 + $0x300] sm:$0xff] %v541_v32   ;;  %546 = vst [vmem:[%s6156_s30 + $0x308] sm:$0xff] %v545_v33   ;;  %v553_v35 = vld [vmem:[%s6151_s29 + $0x1818] sm:$0xff]   ;;  %v557_v36 = vld [vmem:[%s6151_s29 + $0x1820] sm:$0xff]  }
  0x46   : > { %550 = vst [vmem:[%s6156_s30 + $0x310] sm:$0xff] %v549_v34   ;;  %v561_v37 = vld [vmem:[%s6151_s29 + $0x1828] sm:$0xff]   ;;  %554 = vst [vmem:[%s6156_s30 + $0x318] sm:$0xff] %v553_v35   ;;  %v565_v38 = vld [vmem:[%s6151_s29 + $0x1830] sm:$0xff]  }
  0x47   : > { %558 = vst [vmem:[%s6156_s30 + $0x320] sm:$0xff] %v557_v36   ;;  %562 = vst [vmem:[%s6156_s30 + $0x328] sm:$0xff] %v561_v37   ;;  %v569_v39 = vld [vmem:[%s6151_s29 + $0x1838] sm:$0xff]   ;;  %v573_v40 = vld [vmem:[%s6151_s29 + $0x1a00] sm:$0xff]  }
  0x48   : > { %566 = vst [vmem:[%s6156_s30 + $0x330] sm:$0xff] %v565_v38   ;;  %570 = vst [vmem:[%s6156_s30 + $0x338] sm:$0xff] %v569_v39   ;;  %v577_v41 = vld [vmem:[%s6151_s29 + $0x1a08] sm:$0xff]   ;;  %v581_v42 = vld [vmem:[%s6151_s29 + $0x1a10] sm:$0xff]  }
  0x49   : > { %574 = vst [vmem:[%s6156_s30 + $0x340] sm:$0xff] %v573_v40   ;;  %v585_v43 = vld [vmem:[%s6151_s29 + $0x1a18] sm:$0xff]   ;;  %578 = vst [vmem:[%s6156_s30 + $0x348] sm:$0xff] %v577_v41   ;;  %v589_v44 = vld [vmem:[%s6151_s29 + $0x1a20] sm:$0xff]  }
  0x4a   : > { %582 = vst [vmem:[%s6156_s30 + $0x350] sm:$0xff] %v581_v42   ;;  %586 = vst [vmem:[%s6156_s30 + $0x358] sm:$0xff] %v585_v43   ;;  %v593_v45 = vld [vmem:[%s6151_s29 + $0x1a28] sm:$0xff]   ;;  %v597_v46 = vld [vmem:[%s6151_s29 + $0x1a30] sm:$0xff]  }
  0x4b   : > { %590 = vst [vmem:[%s6156_s30 + $0x360] sm:$0xff] %v589_v44   ;;  %594 = vst [vmem:[%s6156_s30 + $0x368] sm:$0xff] %v593_v45   ;;  %v601_v47 = vld [vmem:[%s6151_s29 + $0x1a38] sm:$0xff]   ;;  %v605_v48 = vld [vmem:[%s6151_s29 + $0x1c00] sm:$0xff]  }
  0x4c   : > { %598 = vst [vmem:[%s6156_s30 + $0x370] sm:$0xff] %v597_v46   ;;  %v609_v49 = vld [vmem:[%s6151_s29 + $0x1c08] sm:$0xff]   ;;  %602 = vst [vmem:[%s6156_s30 + $0x378] sm:$0xff] %v601_v47   ;;  %v613_v50 = vld [vmem:[%s6151_s29 + $0x1c10] sm:$0xff]  }
  0x4d   : > { %606 = vst [vmem:[%s6156_s30 + $0x380] sm:$0xff] %v605_v48   ;;  %610 = vst [vmem:[%s6156_s30 + $0x388] sm:$0xff] %v609_v49   ;;  %v617_v51 = vld [vmem:[%s6151_s29 + $0x1c18] sm:$0xff]   ;;  %v621_v52 = vld [vmem:[%s6151_s29 + $0x1c20] sm:$0xff]  }
  0x4e   : > { %614 = vst [vmem:[%s6156_s30 + $0x390] sm:$0xff] %v613_v50   ;;  %618 = vst [vmem:[%s6156_s30 + $0x398] sm:$0xff] %v617_v51   ;;  %v625_v53 = vld [vmem:[%s6151_s29 + $0x1c28] sm:$0xff]   ;;  %v629_v54 = vld [vmem:[%s6151_s29 + $0x1c30] sm:$0xff]  }
  0x4f   : > { %622 = vst [vmem:[%s6156_s30 + $0x3a0] sm:$0xff] %v621_v52   ;;  %v633_v55 = vld [vmem:[%s6151_s29 + $0x1c38] sm:$0xff]   ;;  %626 = vst [vmem:[%s6156_s30 + $0x3a8] sm:$0xff] %v625_v53   ;;  %v637_v56 = vld [vmem:[%s6151_s29 + $0x1e00] sm:$0xff]  }
  0x50   : > { %630 = vst [vmem:[%s6156_s30 + $0x3b0] sm:$0xff] %v629_v54   ;;  %634 = vst [vmem:[%s6156_s30 + $0x3b8] sm:$0xff] %v633_v55   ;;  %v641_v57 = vld [vmem:[%s6151_s29 + $0x1e08] sm:$0xff]   ;;  %v645_v58 = vld [vmem:[%s6151_s29 + $0x1e10] sm:$0xff]  }
  0x51   : > { %638 = vst [vmem:[%s6156_s30 + $0x3c0] sm:$0xff] %v637_v56   ;;  %642 = vst [vmem:[%s6156_s30 + $0x3c8] sm:$0xff] %v641_v57   ;;  %v649_v59 = vld [vmem:[%s6151_s29 + $0x1e18] sm:$0xff]   ;;  %v653_v60 = vld [vmem:[%s6151_s29 + $0x1e20] sm:$0xff]  }
  0x52   : > { %646 = vst [vmem:[%s6156_s30 + $0x3d0] sm:$0xff] %v645_v58   ;;  %v657_v61 = vld [vmem:[%s6151_s29 + $0x1e28] sm:$0xff]   ;;  %650 = vst [vmem:[%s6156_s30 + $0x3d8] sm:$0xff] %v649_v59   ;;  %v661_v62 = vld [vmem:[%s6151_s29 + $0x1e30] sm:$0xff]  }
  0x53   : > { %654 = vst [vmem:[%s6156_s30 + $0x3e0] sm:$0xff] %v653_v60   ;;  %658 = vst [vmem:[%s6156_s30 + $0x3e8] sm:$0xff] %v657_v61   ;;  %v665_v63 = vld [vmem:[%s6151_s29 + $0x1e38] sm:$0xff]  }
  0x54   : > { %662 = vst [vmem:[%s6156_s30 + $0x3f0] sm:$0xff] %v661_v62   ;;  %666 = vst [vmem:[%s6156_s30 + $0x3f8] sm:$0xff] %v665_v63  }
  0x55 PF: > { %p4771_p10 = scmp.ge.s32.totalorder %s6074_s15, 1  ;;  %p1203_p11 = scmp.lt.s32.totalorder %s6074_s15, 9 }
  0x57   : > { %p1204_p12 = pnand %p4771_p10, %p1203_p11 }
  0x58   : > { %s6419_s6 = sand.u32 (!%p1204_p12), 1, %s6066_s13   ;;  %s5311_s5 = sshll.u32 (!%p1204_p12), %s4764_s16, 10 }
  0x59   : > { %1207 = sbr.rel (%p1204_p12) target bundleno = 574 (0x23e), region = 69  ;;  %s4772_s9 = sshll.u32 (!%p1204_p12), %s6419_s6, 10 }
  0x5a   : > { %s6431_s10 = scalar_lea.vmem (!%p1204_p12), [#allocation2], %s4772_s9  ;;  %s4773_s28 = sshll.u32 (!%p1204_p12), %s6419_s6, 6 }
  0x5b   : > { %s7393_s29 = scalar_lea.vmem (!%p1204_p12), [#allocation3], %s4773_s28  ;;  %s4684_s11 = scalar_lea.sflag (!%p1204_p12), [#allocation4], %s6419_s6 }
  0x5c   : > { %s4697_s7 = sshll.u32 (!%p1204_p12), %s7393_s29, 4  ;;  %s6076_s16 = smov (!%p1204_p12), [#allocation3]   ;;  %s7439_s7 = int_to_ptr.vmem [resolvable:$true] %s4697_s7 }
  0x5d   : > { %s6014_s17 = scalar_lea.vmem (!%p1204_p12), %s7439_s7, 1024  ;;  %s6018_s19 = sshll.u32 (!%p1204_p12), %s6076_s16, 4  ;;  %s6019_s19 = int_to_ptr.vmem [resolvable:$false] %s6018_s19 }
  0x5e   : > { %v6416_v0 = vld [vmem:[%s7483_s1 + $0x8] sm:$0xff]   ;;  %v6424_v1 = vld [vmem:[%s7483_s1] sm:$0xff]   ;;  %vm1315_vm0 = vcmask 261120   ;;  %v5886_v6 = vld [vmem:[%s6431_s10 + $0x10] sm:$0xff]   ;;  %p6015_p13 = scmp.ne.s32.totalorder %s7439_s7, %s6014_s17  ;;  %s6020_s20 = scalar_lea.vmem %s6019_s19, 2048 }
  0x5f   : > { %5519 = vmatprep.subr.bf16.mxu0 %v6416_v0  ;;  %5539 = vmatprep.subr.bf16.mxu1 %v6416_v0  ;;  %v5882_v2 = vld [vmem:[%s6431_s10] sm:$0xff]   ;;  %v5884_v4 = vld [vmem:[%s6431_s10 + $0x8] sm:$0xff]   ;;  %v5887_v7 = vld [vmem:[%s6431_s10 + $0x50] sm:$0xff]   ;;  %p6021_p2 = scmp.lt.s32.totalorder %s7439_s7, %s6019_s19  ;;  %p6022_p3 = scmp.lt.s32.totalorder %s6020_s20, %s6014_s17 }
  0x60   : > { %5520 = vmatpush3.bf16.msra.mxu0 %v6416_v0  ;;  %5540 = vmatpush3.bf16.msra.mxu1 %v6416_v0  ;;  %v5883_v3 = vld [vmem:[%s6431_s10 + $0x40] sm:$0xff]   ;;  %v5885_v5 = vld [vmem:[%s6431_s10 + $0x48] sm:$0xff]   ;;  %v5888_v8 = vld [vmem:[%s6431_s10 + $0x18] sm:$0xff]   ;;  %p6016_p0 = pnand %p6015_p13, %p6137_p6 }
  0x61   : > { %5521 = vmatprep.subr.bf16.mxu0 %v6424_v1  ;;  %5541 = vmatprep.subr.bf16.mxu1 %v6424_v1  ;;  %v5889_v9 = vld [vmem:[%s6431_s10 + $0x58] sm:$0xff]   ;;  %v5890_v10 = vld [vmem:[%s6431_s10 + $0x20] sm:$0xff]   ;;  %v5892_v12 = vld [vmem:[%s6431_s10 + $0x28] sm:$0xff]   ;;  %p6023_p4 = por %p6022_p3, %p6021_p2 }
  0x62   : > { %5523 = vmatprep.mubr.msk.bf16.mxu0 %vm1315_vm0, %v5882_v2  ;;  %5543 = vmatprep.mubr.msk.bf16.mxu1 %vm1315_vm0, %v5883_v3  ;;  %v5891_v11 = vld [vmem:[%s6431_s10 + $0x60] sm:$0xff]   ;;  %v5893_v13 = vld [vmem:[%s6431_s10 + $0x68] sm:$0xff]   ;;  %v5894_v14 = vld [vmem:[%s6431_s10 + $0x30] sm:$0xff]   ;;  %p6017_p1 = pneg %p6016_p0 }
  0x63   : > { %v5895_v15 = vld [vmem:[%s6431_s10 + $0x70] sm:$0xff]   ;;  %v5896_v16 = vld [vmem:[%s6431_s10 + $0x38] sm:$0xff]   ;;  %v5898_v18 = vld [vmem:[%s6431_s10 + $0x80] sm:$0xff]  }
  0x64   : > { %5522 = vmatpush3.bf16.msra.mxu0 %v6424_v1  ;;  %5542 = vmatpush3.bf16.msra.mxu1 %v6424_v1  ;;  %v5897_v17 = vld [vmem:[%s6431_s10 + $0x78] sm:$0xff]   ;;  %v5899_v19 = vld [vmem:[%s6431_s10 + $0xc0] sm:$0xff]   ;;  %v5900_v20 = vld [vmem:[%s6431_s10 + $0x88] sm:$0xff]   ;;  %p6024_p5 = pnand %p6023_p4, %p6017_p1 }
  0x65   : > { %5559 = vmatprep.subr.bf16.mxu0 %v6416_v0  ;;  %5579 = vmatprep.subr.bf16.mxu1 %v6416_v0  ;;  %v5901_v21 = vld [vmem:[%s6431_s10 + $0xc8] sm:$0xff]   ;;  %v5902_v22 = vld [vmem:[%s6431_s10 + $0x90] sm:$0xff]   ;;  %v5904_v24 = vld [vmem:[%s6431_s10 + $0x98] sm:$0xff]  }
  0x66   : > { %v5903_v23 = vld [vmem:[%s6431_s10 + $0xd0] sm:$0xff]   ;;  %v5905_v25 = vld [vmem:[%s6431_s10 + $0xd8] sm:$0xff]   ;;  %v5906_v26 = vld [vmem:[%s6431_s10 + $0xa0] sm:$0xff]  }
  0x67   : > { %5524 = vmatmul.mubr.msk.bf16.vlgmr.msra.gmra.mxu0 %vm1315_vm0, %v5884_v4  ;;  %5544 = vmatmul.mubr.msk.bf16.vlgmr.msra.gmra.mxu1 %vm1315_vm0, %v5885_v5  ;;  %v5907_v27 = vld [vmem:[%s6431_s10 + $0xe0] sm:$0xff]   ;;  %v5908_v28 = vld [vmem:[%s6431_s10 + $0xa8] sm:$0xff]   ;;  %v5910_v30 = vld [vmem:[%s6431_s10 + $0xb0] sm:$0xff]  }
  0x68   : > { %5560 = vmatpush3.bf16.msra.mxu0 %v6416_v0  ;;  %5580 = vmatpush3.bf16.msra.mxu1 %v6416_v0  ;;  %v5909_v29 = vld [vmem:[%s6431_s10 + $0xe8] sm:$0xff]   ;;  %v5911_v31 = vld [vmem:[%s6431_s10 + $0xf0] sm:$0xff]   ;;  %v5912_v32 = vld [vmem:[%s6431_s10 + $0xb8] sm:$0xff]  }
  0x69   : > { %5527 = vmatprep.mubr.msk.bf16.mxu0 %vm1315_vm0, %v5886_v6  ;;  %5547 = vmatprep.mubr.msk.bf16.mxu1 %vm1315_vm0, %v5887_v7  ;;  %v5913_v33 = vld [vmem:[%s6431_s10 + $0xf8] sm:$0xff]   ;;  %v5914_v34 = vld [vmem:[%s6431_s10 + $0x100] sm:$0xff]   ;;  %v5916_v36 = vld [vmem:[%s6431_s10 + $0x108] sm:$0xff]  }
  0x6a   : > { %5561 = vmatprep.subr.bf16.mxu0 %v6424_v1  ;;  %5581 = vmatprep.subr.bf16.mxu1 %v6424_v1  ;;  %v5915_v35 = vld [vmem:[%s6431_s10 + $0x140] sm:$0xff]   ;;  %v5917_v37 = vld [vmem:[%s6431_s10 + $0x148] sm:$0xff]   ;;  %v5918_v38 = vld [vmem:[%s6431_s10 + $0x110] sm:$0xff]  }
  0x6b   : > { %v5919_v39 = vld [vmem:[%s6431_s10 + $0x150] sm:$0xff]   ;;  %v5920_v40 = vld [vmem:[%s6431_s10 + $0x118] sm:$0xff]   ;;  %v5922_v42 = vld [vmem:[%s6431_s10 + $0x120] sm:$0xff]  }
  0x6c   : > { %5562 = vmatpush3.bf16.msra.mxu0 %v6424_v1  ;;  %5582 = vmatpush3.bf16.msra.mxu1 %v6424_v1  ;;  %v5921_v41 = vld [vmem:[%s6431_s10 + $0x158] sm:$0xff]   ;;  %v5923_v43 = vld [vmem:[%s6431_s10 + $0x160] sm:$0xff]   ;;  %v5924_v44 = vld [vmem:[%s6431_s10 + $0x128] sm:$0xff]  }
  0x6d   : > { %5599 = vmatprep.subr.bf16.mxu0 %v6416_v0  ;;  %5619 = vmatprep.subr.bf16.mxu1 %v6416_v0  ;;  %v5925_v45 = vld [vmem:[%s6431_s10 + $0x168] sm:$0xff]   ;;  %v5926_v46 = vld [vmem:[%s6431_s10 + $0x130] sm:$0xff]   ;;  %v5928_v48 = vld [vmem:[%s6431_s10 + $0x138] sm:$0xff]  }
  0x6e   : > { %v5927_v47 = vld [vmem:[%s6431_s10 + $0x170] sm:$0xff]   ;;  %v5929_v49 = vld [vmem:[%s6431_s10 + $0x178] sm:$0xff]   ;;  %v5930_v50 = vld [vmem:[%s6431_s10 + $0x180] sm:$0xff]  }
  0x6f   : > { %5528 = vmatmul.mubr.msk.bf16.gmra.mxu0 %vm1315_vm0, %v5888_v8  ;;  %5548 = vmatmul.mubr.msk.bf16.gmra.mxu1 %vm1315_vm0, %v5889_v9  ;;  %v5931_v51 = vld [vmem:[%s6431_s10 + $0x1c0] sm:$0xff]   ;;  %v5932_v52 = vld [vmem:[%s6431_s10 + $0x188] sm:$0xff]   ;;  %v5934_v54 = vld [vmem:[%s6431_s10 + $0x190] sm:$0xff]  }
  0x70   : > { %5531 = vmatprep.mubr.msk.bf16.mxu0 %vm1315_vm0, %v5890_v10  ;;  %5551 = vmatprep.mubr.msk.bf16.mxu1 %vm1315_vm0, %v5891_v11  ;;  %v5933_v53 = vld [vmem:[%s6431_s10 + $0x1c8] sm:$0xff]   ;;  %v5935_v55 = vld [vmem:[%s6431_s10 + $0x1d0] sm:$0xff]   ;;  %v5936_v56 = vld [vmem:[%s6431_s10 + $0x198] sm:$0xff]  }
  0x71   : > { %v5937_v57 = vld [vmem:[%s6431_s10 + $0x1d8] sm:$0xff]   ;;  %v5938_v58 = vld [vmem:[%s6431_s10 + $0x1a0] sm:$0xff]   ;;  %v5940_v60 = vld [vmem:[%s6431_s10 + $0x1a8] sm:$0xff]  }
  0x72   : > { %v5939_v59 = vld [vmem:[%s6431_s10 + $0x1e0] sm:$0xff]   ;;  %v5941_v61 = vld [vmem:[%s6431_s10 + $0x1e8] sm:$0xff]   ;;  %v5942_v62 = vld [vmem:[%s6431_s10 + $0x1b0] sm:$0xff]  }
  0x73   : > { %v5943_v63 = vld [vmem:[%s6431_s10 + $0x1f0] sm:$0xff]   ;;  %v5944_v2 = vld [vmem:[%s6431_s10 + $0x1b8] sm:$0xff]   ;;  %v5946_v4 = vld [vmem:[%s6431_s10 + $0x200] sm:$0xff]  }
  0x74   : > { %v5945_v3 = vld [vmem:[%s6431_s10 + $0x1f8] sm:$0xff]   ;;  %v5947_v5 = vld [vmem:[%s6431_s10 + $0x240] sm:$0xff]   ;;  %v5948_v6 = vld [vmem:[%s6431_s10 + $0x208] sm:$0xff]  }
  0x75   : > { %v5949_v7 = vld [vmem:[%s6431_s10 + $0x248] sm:$0xff]   ;;  %v5950_v8 = vld [vmem:[%s6431_s10 + $0x210] sm:$0xff]   ;;  %v5952_v10 = vld [vmem:[%s6431_s10 + $0x218] sm:$0xff]  }
  0x76   : > { %v5951_v9 = vld [vmem:[%s6431_s10 + $0x250] sm:$0xff]   ;;  %v5953_v11 = vld [vmem:[%s6431_s10 + $0x258] sm:$0xff]  }
  0x77   : > { %5532 = vmatmul.mubr.msk.bf16.gmra.mxu0 %vm1315_vm0, %v5892_v12  ;;  %5552 = vmatmul.mubr.msk.bf16.gmra.mxu1 %vm1315_vm0, %v5893_v13  ;;  %v5954_v12 = vld [vmem:[%s6431_s10 + $0x220] sm:$0xff]  }
  0x78   : > { %5535 = vmatprep.mubr.msk.bf16.mxu0 %vm1315_vm0, %v5894_v14  ;;  %5555 = vmatprep.mubr.msk.bf16.mxu1 %vm1315_vm0, %v5895_v15  ;;  %v5955_v13 = vld [vmem:[%s6431_s10 + $0x260] sm:$0xff]   ;;  %v5956_v14 = vld [vmem:[%s6431_s10 + $0x228] sm:$0xff]  }
  0x79   : > { %v5957_v15 = vld [vmem:[%s6431_s10 + $0x268] sm:$0xff]  }
  0x7f   : > { %5536 = vmatmul.mubr.msk.bf16.gmra.mxu0 %vm1315_vm0, %v5896_v16  ;;  %5556 = vmatmul.mubr.msk.bf16.gmra.mxu1 %vm1315_vm0, %v5897_v17  ;;  %v5958_v16 = vld [vmem:[%s6431_s10 + $0x230] sm:$0xff]  }
  0x80   : > { %5563 = vmatprep.mubr.msk.bf16.mxu0 %vm1315_vm0, %v5898_v18  ;;  %5583 = vmatprep.mubr.msk.bf16.mxu1 %vm1315_vm0, %v5899_v19  ;;  %v5959_v17 = vld [vmem:[%s6431_s10 + $0x270] sm:$0xff]   ;;  %v5960_v18 = vld [vmem:[%s6431_s10 + $0x238] sm:$0xff]  }
  0x81   : > { %v5961_v19 = vld [vmem:[%s6431_s10 + $0x278] sm:$0xff]  }
  0x87   : > { %5564 = vmatmul.mubr.msk.bf16.vlgmr.msra.gmra.mxu0 %vm1315_vm0, %v5900_v20  ;;  %5584 = vmatmul.mubr.msk.bf16.vlgmr.msra.gmra.mxu1 %vm1315_vm0, %v5901_v21  ;;  %v5962_v20 = vld [vmem:[%s6431_s10 + $0x280] sm:$0xff]  }
  0x88   : > { %5600 = vmatpush3.bf16.msra.mxu0 %v6416_v0  ;;  %5620 = vmatpush3.bf16.msra.mxu1 %v6416_v0  ;;  %v5963_v21 = vld [vmem:[%s6431_s10 + $0x2c0] sm:$0xff]  }
  0x89   : > { %5567 = vmatprep.mubr.msk.bf16.mxu0 %vm1315_vm0, %v5902_v22  ;;  %5587 = vmatprep.mubr.msk.bf16.mxu1 %vm1315_vm0, %v5903_v23  ;;  %v5964_v22 = vld [vmem:[%s6431_s10 + $0x288] sm:$0xff]  }
  0x8a   : > { %5601 = vmatprep.subr.bf16.mxu0 %v6424_v1  ;;  %5621 = vmatprep.subr.bf16.mxu1 %v6424_v1  ;;  %v5965_v23 = vld [vmem:[%s6431_s10 + $0x2c8] sm:$0xff]  }
  0x8c   : > { %5602 = vmatpush3.bf16.msra.mxu0 %v6424_v1  ;;  %5622 = vmatpush3.bf16.msra.mxu1 %v6424_v1 }
  0x8d   : > { %5639 = vmatprep.subr.bf16.mxu0 %v6416_v0  ;;  %5659 = vmatprep.subr.bf16.mxu1 %v6416_v0 }
  0x8f   : > { %5568 = vmatmul.mubr.msk.bf16.gmra.mxu0 %vm1315_vm0, %v5904_v24  ;;  %5588 = vmatmul.mubr.msk.bf16.gmra.mxu1 %vm1315_vm0, %v5905_v25  ;;  %v5966_v24 = vld [vmem:[%s6431_s10 + $0x290] sm:$0xff]  }
  0x90   : > { %5571 = vmatprep.mubr.msk.bf16.mxu0 %vm1315_vm0, %v5906_v26  ;;  %5591 = vmatprep.mubr.msk.bf16.mxu1 %vm1315_vm0, %v5907_v27  ;;  %v5967_v25 = vld [vmem:[%s6431_s10 + $0x2d0] sm:$0xff]   ;;  %v5968_v26 = vld [vmem:[%s6431_s10 + $0x298] sm:$0xff]  }
  0x91   : > { %v5969_v27 = vld [vmem:[%s6431_s10 + $0x2d8] sm:$0xff]  }
  0x97   : > { %5572 = vmatmul.mubr.msk.bf16.gmra.mxu0 %vm1315_vm0, %v5908_v28  ;;  %5592 = vmatmul.mubr.msk.bf16.gmra.mxu1 %vm1315_vm0, %v5909_v29  ;;  %v5970_v28 = vld [vmem:[%s6431_s10 + $0x2a0] sm:$0xff]  }
  0x98   : > { %5575 = vmatprep.mubr.msk.bf16.mxu0 %vm1315_vm0, %v5910_v30  ;;  %5595 = vmatprep.mubr.msk.bf16.mxu1 %vm1315_vm0, %v5911_v31  ;;  %v5971_v29 = vld [vmem:[%s6431_s10 + $0x2e0] sm:$0xff]   ;;  %v5972_v30 = vld [vmem:[%s6431_s10 + $0x2a8] sm:$0xff]  }
  0x99   : > { %v5973_v31 = vld [vmem:[%s6431_s10 + $0x2e8] sm:$0xff]  }
  0x9f   : > { %5576 = vmatmul.mubr.msk.bf16.gmra.mxu0 %vm1315_vm0, %v5912_v32  ;;  %5596 = vmatmul.mubr.msk.bf16.gmra.mxu1 %vm1315_vm0, %v5913_v33  ;;  %v5975_v32 = vld [vmem:[%s6431_s10 + $0x2f0] sm:$0xff]   ;;  %v5977_v33 = vld [vmem:[%s6431_s10 + $0x2f8] sm:$0xff]  }
  0xa0   : > { %5603 = vmatprep.mubr.msk.bf16.mxu0 %vm1315_vm0, %v5914_v34  ;;  %5623 = vmatprep.mubr.msk.bf16.mxu1 %vm1315_vm0, %v5915_v35  ;;  %v5978_v34 = vld [vmem:[%s6431_s10 + $0x300] sm:$0xff]  }
  0xa1   : > { %v5979_v35 = vld [vmem:[%s6431_s10 + $0x340] sm:$0xff]  }
  0xa7   : > { %5604 = vmatmul.mubr.msk.bf16.vlgmr.msra.gmra.mxu0 %vm1315_vm0, %v5916_v36  ;;  %5624 = vmatmul.mubr.msk.bf16.vlgmr.msra.gmra.mxu1 %vm1315_vm0, %v5917_v37  ;;  %v5980_v36 = vld [vmem:[%s6431_s10 + $0x308] sm:$0xff]  }
  0xa8   : > { %5640 = vmatpush3.bf16.msra.mxu0 %v6416_v0  ;;  %5660 = vmatpush3.bf16.msra.mxu1 %v6416_v0  ;;  %v5981_v37 = vld [vmem:[%s6431_s10 + $0x348] sm:$0xff]  }
  0xa9   : > { %5607 = vmatprep.mubr.msk.bf16.mxu0 %vm1315_vm0, %v5918_v38  ;;  %5627 = vmatprep.mubr.msk.bf16.mxu1 %vm1315_vm0, %v5919_v39  ;;  %v6688_v38 = vld [vmem:[%s7484_s2] ss:$0 sm:$0xff]  ;;  %v5982_v39 = vld [vmem:[%s6431_s10 + $0x310] sm:$0xff]  }
  0xaa   : > { %5641 = vmatprep.subr.bf16.mxu0 %v6424_v1  ;;  %5661 = vmatprep.subr.bf16.mxu1 %v6424_v1 }
  0xac   : > { %5642 = vmatpush3.bf16.msra.mxu0 %v6424_v1  ;;  %5662 = vmatpush3.bf16.msra.mxu1 %v6424_v1 }
  0xad   : > { %5679 = vmatprep.subr.bf16.mxu0 %v6416_v0  ;;  %5699 = vmatprep.subr.bf16.mxu1 %v6416_v0 }
  0xaf   : > { %5608 = vmatmul.mubr.msk.bf16.gmra.mxu0 %vm1315_vm0, %v5920_v40  ;;  %5628 = vmatmul.mubr.msk.bf16.gmra.mxu1 %vm1315_vm0, %v5921_v41  ;;  %v5983_v40 = vld [vmem:[%s6431_s10 + $0x350] sm:$0xff]  }
  0xb0   : > { %5611 = vmatprep.mubr.msk.bf16.mxu0 %vm1315_vm0, %v5922_v42  ;;  %5631 = vmatprep.mubr.msk.bf16.mxu1 %vm1315_vm0, %v5923_v43 }
  0xb7   : > { %5612 = vmatmul.mubr.msk.bf16.gmra.mxu0 %vm1315_vm0, %v5924_v44  ;;  %5632 = vmatmul.mubr.msk.bf16.gmra.mxu1 %vm1315_vm0, %v5925_v45  ;;  %v6010_v45 = vld [vmem:[%s7483_s1 + $0x8] sm:$0xff]  }
  0xb8   : > { %5615 = vmatprep.mubr.msk.bf16.mxu0 %vm1315_vm0, %v5926_v46  ;;  %5635 = vmatprep.mubr.msk.bf16.mxu1 %vm1315_vm0, %v5927_v47 }
  0xbf   : > { %5616 = vmatmul.mubr.msk.bf16.gmra.mxu0 %vm1315_vm0, %v5928_v48  ;;  %5636 = vmatmul.mubr.msk.bf16.gmra.mxu1 %vm1315_vm0, %v5929_v49 }
  0xc0   : > { %5643 = vmatprep.mubr.msk.bf16.mxu0 %vm1315_vm0, %v5930_v50  ;;  %5663 = vmatprep.mubr.msk.bf16.mxu1 %vm1315_vm0, %v5931_v51 }
  0xc7   : > { %5644 = vmatmul.mubr.msk.bf16.vlgmr.msra.gmra.mxu0 %vm1315_vm0, %v5932_v52  ;;  %5664 = vmatmul.mubr.msk.bf16.vlgmr.msra.gmra.mxu1 %vm1315_vm0, %v5933_v53  ;;  %v6011_v52 = vld [vmem:[%s7483_s1] sm:$0xff]  }
  0xc8   : > { %5680 = vmatpush3.bf16.msra.mxu0 %v6416_v0  ;;  %5700 = vmatpush3.bf16.msra.mxu1 %v6416_v0 }
  0xc9   : > { %5647 = vmatprep.mubr.msk.bf16.mxu0 %vm1315_vm0, %v5934_v54  ;;  %5667 = vmatprep.mubr.msk.bf16.mxu1 %vm1315_vm0, %v5935_v55  ;;  %v5984_v55 = vld [vmem:[%s6431_s10 + $0x318] sm:$0xff]  }
  0xca   : > { %5681 = vmatprep.subr.bf16.mxu0 %v6424_v1  ;;  %5701 = vmatprep.subr.bf16.mxu1 %v6424_v1 }
  0xcc   : > { %5682 = vmatpush3.bf16.msra.mxu0 %v6424_v1  ;;  %5702 = vmatpush3.bf16.msra.mxu1 %v6424_v1 }
  0xcd   : > { %5719 = vmatprep.subr.bf16.mxu0 %v6416_v0  ;;  %5739 = vmatprep.subr.bf16.mxu1 %v6416_v0 }
  0xcf   : > { %5648 = vmatmul.mubr.msk.bf16.gmra.mxu0 %vm1315_vm0, %v5936_v56  ;;  %5668 = vmatmul.mubr.msk.bf16.gmra.mxu1 %vm1315_vm0, %v5937_v57  ;;  %v5985_v56 = vld [vmem:[%s6431_s10 + $0x358] sm:$0xff]  }
  0xd0   : > { %5651 = vmatprep.mubr.msk.bf16.mxu0 %vm1315_vm0, %v5938_v58  ;;  %5671 = vmatprep.mubr.msk.bf16.mxu1 %vm1315_vm0, %v5939_v59 }
  0xd7   : > { %5652 = vmatmul.mubr.msk.bf16.gmra.mxu0 %vm1315_vm0, %v5940_v60  ;;  %5672 = vmatmul.mubr.msk.bf16.gmra.mxu1 %vm1315_vm0, %v5941_v61  ;;  %v5986_v61 = vld [vmem:[%s6431_s10 + $0x320] sm:$0xff]  }
  0xd8   : > { %5655 = vmatprep.mubr.msk.bf16.mxu0 %vm1315_vm0, %v5942_v62  ;;  %5675 = vmatprep.mubr.msk.bf16.mxu1 %vm1315_vm0, %v5943_v63  ;;  %v5987_v62 = vld [vmem:[%s6431_s10 + $0x360] sm:$0xff]  }
  0xdf   : > { %5656 = vmatmul.mubr.msk.bf16.gmra.mxu0 %vm1315_vm0, %v5944_v2  ;;  %5676 = vmatmul.mubr.msk.bf16.gmra.mxu1 %vm1315_vm0, %v5945_v3 }
  0xe0   : > { %5683 = vmatprep.mubr.msk.bf16.mxu0 %vm1315_vm0, %v5946_v4  ;;  %5703 = vmatprep.mubr.msk.bf16.mxu1 %vm1315_vm0, %v5947_v5 }
  0xe7   : > { %5684 = vmatmul.mubr.msk.bf16.vlgmr.msra.gmra.mxu0 %vm1315_vm0, %v5948_v6  ;;  %5704 = vmatmul.mubr.msk.bf16.vlgmr.msra.gmra.mxu1 %vm1315_vm0, %v5949_v7 }
  0xe8   : > { %5720 = vmatpush3.bf16.msra.mxu0 %v6416_v0  ;;  %5740 = vmatpush3.bf16.msra.mxu1 %v6416_v0 }
  0xe9   : > { %5687 = vmatprep.mubr.msk.bf16.mxu0 %vm1315_vm0, %v5950_v8  ;;  %5707 = vmatprep.mubr.msk.bf16.mxu1 %vm1315_vm0, %v5951_v9 }
  0xea   : > { %5721 = vmatprep.subr.bf16.mxu0 %v6424_v1  ;;  %5741 = vmatprep.subr.bf16.mxu1 %v6424_v1 }
  0xec   : > { %5722 = vmatpush3.bf16.msra.mxu0 %v6424_v1  ;;  %5742 = vmatpush3.bf16.msra.mxu1 %v6424_v1 }
  0xed   : > { %5759 = vmatprep.subr.bf16.mxu0 %v6416_v0  ;;  %5779 = vmatprep.subr.bf16.mxu1 %v6416_v0 }
  0xef   : > { %5688 = vmatmul.mubr.msk.bf16.gmra.mxu0 %vm1315_vm0, %v5952_v10  ;;  %5708 = vmatmul.mubr.msk.bf16.gmra.mxu1 %vm1315_vm0, %v5953_v11 }
  0xf0   : > { %5691 = vmatprep.mubr.msk.bf16.mxu0 %vm1315_vm0, %v5954_v12  ;;  %5711 = vmatprep.mubr.msk.bf16.mxu1 %vm1315_vm0, %v5955_v13 }
  0xf7   : > { %5692 = vmatmul.mubr.msk.bf16.gmra.mxu0 %vm1315_vm0, %v5956_v14  ;;  %5712 = vmatmul.mubr.msk.bf16.gmra.mxu1 %vm1315_vm0, %v5957_v15 }
  0xf8   : > { %5695 = vmatprep.mubr.msk.bf16.mxu0 %vm1315_vm0, %v5958_v16  ;;  %5715 = vmatprep.mubr.msk.bf16.mxu1 %vm1315_vm0, %v5959_v17 }
  0xff   : > { %5696 = vmatmul.mubr.msk.bf16.gmra.mxu0 %vm1315_vm0, %v5960_v18  ;;  %5716 = vmatmul.mubr.msk.bf16.gmra.mxu1 %vm1315_vm0, %v5961_v19 }
 0x100   : > { %5723 = vmatprep.mubr.msk.bf16.mxu0 %vm1315_vm0, %v5962_v20  ;;  %5743 = vmatprep.mubr.msk.bf16.mxu1 %vm1315_vm0, %v5963_v21 }
 0x107   : > { %5724 = vmatmul.mubr.msk.bf16.vlgmr.msra.gmra.mxu0 %vm1315_vm0, %v5964_v22  ;;  %5744 = vmatmul.mubr.msk.bf16.vlgmr.msra.gmra.mxu1 %vm1315_vm0, %v5965_v23 }
 0x108   : > { %5760 = vmatpush3.bf16.msra.mxu0 %v6416_v0  ;;  %5780 = vmatpush3.bf16.msra.mxu1 %v6416_v0 }
 0x109   : > { %5727 = vmatprep.mubr.msk.bf16.mxu0 %vm1315_vm0, %v5966_v24  ;;  %5747 = vmatprep.mubr.msk.bf16.mxu1 %vm1315_vm0, %v5967_v25  ;;  %v5988_v25 = vld [vmem:[%s6431_s10 + $0x328] sm:$0xff]  }
 0x10a   : > { %5761 = vmatprep.subr.bf16.mxu0 %v6424_v1  ;;  %5781 = vmatprep.subr.bf16.mxu1 %v6424_v1 }
 0x10c   : > { %5762 = vmatpush3.bf16.msra.mxu0 %v6424_v1  ;;  %5782 = vmatpush3.bf16.msra.mxu1 %v6424_v1  ;;  %v5974_v1 = vld [vmem:[%s6431_s10 + $0x2b0] sm:$0xff]  }
 0x10d   : > { %5799 = vmatprep.subr.bf16.mxu0 %v6416_v0  ;;  %5819 = vmatprep.subr.bf16.mxu1 %v6416_v0  ;;  %v5976_v0 = vld [vmem:[%s6431_s10 + $0x2b8] sm:$0xff]  }
 0x10f   : > { %5728 = vmatmul.mubr.msk.bf16.gmra.mxu0 %vm1315_vm0, %v5968_v26  ;;  %5748 = vmatmul.mubr.msk.bf16.gmra.mxu1 %vm1315_vm0, %v5969_v27  ;;  %v5989_v26 = vld [vmem:[%s6431_s10 + $0x368] sm:$0xff]  }
 0x110   : > { %5731 = vmatprep.mubr.msk.bf16.mxu0 %vm1315_vm0, %v5970_v28  ;;  %5751 = vmatprep.mubr.msk.bf16.mxu1 %vm1315_vm0, %v5971_v29 }
 0x117   : > { %5732 = vmatmul.mubr.msk.bf16.gmra.mxu0 %vm1315_vm0, %v5972_v30  ;;  %5752 = vmatmul.mubr.msk.bf16.gmra.mxu1 %vm1315_vm0, %v5973_v31  ;;  %v5990_v31 = vld [vmem:[%s6431_s10 + $0x330] sm:$0xff]  }
 0x118   : > { %5735 = vmatprep.mubr.msk.bf16.mxu0 %vm1315_vm0, %v5974_v1  ;;  %5755 = vmatprep.mubr.msk.bf16.mxu1 %vm1315_vm0, %v5975_v32  ;;  %v5991_v1 = vld [vmem:[%s6431_s10 + $0x370] sm:$0xff]  }
 0x11f   : > { %5736 = vmatmul.mubr.msk.bf16.gmra.mxu0 %vm1315_vm0, %v5976_v0  ;;  %5756 = vmatmul.mubr.msk.bf16.gmra.mxu1 %vm1315_vm0, %v5977_v33 }
 0x120   : > { %5763 = vmatprep.mubr.msk.bf16.mxu0 %vm1315_vm0, %v5978_v34  ;;  %5783 = vmatprep.mubr.msk.bf16.mxu1 %vm1315_vm0, %v5979_v35 }
 0x127   : > { %v5525_v41 = vpop.f32.mrf.mxu0  ;;  %v5545_v42 = vpop.f32.mrf.mxu1  ;;  %5764 = vmatmul.mubr.msk.bf16.vlgmr.msra.gmra.mxu0 %vm1315_vm0, %v5980_v36  ;;  %5784 = vmatmul.mubr.msk.bf16.vlgmr.msra.gmra.mxu1 %vm1315_vm0, %v5981_v37 }
 0x128   : > { %v1383_v43 = vadd.f32 %v5525_v41, %v6688_v38  ;;  %v1577_v44 = vadd.f32 %v5545_v42, %v6688_v38  ;;  %5800 = vmatpush3.bf16.msra.mxu0 %v6010_v45  ;;  %5820 = vmatpush3.bf16.msra.mxu1 %v6010_v45 }
 0x129   : > { %v1374_v46 = vpop.f32.mrf.mxu0  ;;  %v1568_v47 = vpop.f32.mrf.mxu1  ;;  %5767 = vmatprep.mubr.msk.bf16.mxu0 %vm1315_vm0, %v5982_v39  ;;  %5787 = vmatprep.mubr.msk.bf16.mxu1 %vm1315_vm0, %v5983_v40 }
 0x12a   : > { %v1439_v48 = vmax.f32 %v1383_v43, 0.0  ;;  %v1633_v49 = vmax.f32 %v1577_v44, 0.0  ;;  %v1375_v50 = vadd.f32 %v6688_v38, %v1374_v46  ;;  %v1569_v51 = vadd.f32 %v6688_v38, %v1568_v47  ;;  %5801 = vmatprep.subr.bf16.mxu0 %v6011_v52  ;;  %5821 = vmatprep.subr.bf16.mxu1 %v6011_v52 }
 0x12b   : > { %v5526_v53 = vpop.f32.mrf.mxu0  ;;  %v5546_v54 = vpop.f32.mrf.mxu1 }
 0x12c   : > { %v6708_v57 = vmax.f32 %v1439_v48, %v1633_v49  ;;  %v1437_v58 = vmax.f32 %v1375_v50, 0.0  ;;  %v1631_v59 = vmax.f32 %v1569_v51, 0.0  ;;  %v1386_v60 = vadd.f32 %v5526_v53, %v6688_v38  ;;  %5802 = vmatpush3.bf16.msra.mxu0 %v6011_v52  ;;  %5822 = vmatpush3.bf16.msra.mxu1 %v6011_v52 }
 0x12d   : > { %v1580_v63 = vadd.f32 %v5546_v54, %v6688_v38  ;;  %v1377_v2 = vpop.f32.mrf.mxu0  ;;  %v1571_v3 = vpop.f32.mrf.mxu1 }
 0x12e   : > { %v6714_v4 = vmax.f32 %v1437_v58, %v1631_v59  ;;  %v1440_v5 = vmax.f32 %v1386_v60, 0.0  ;;  %v1378_v6 = vadd.f32 %v6688_v38, %v1377_v2  ;;  %v1572_v7 = vadd.f32 %v6688_v38, %v1571_v3  ;;  %v5993_v58 = vld [vmem:[%s6431_s10 + $0x378] sm:$0xff]   ;;  %v5995_v2 = vld [vmem:[%s6431_s10 + $0x3c0] sm:$0xff]  }
 0x12f   : > { %v1634_v8 = vmax.f32 %v1580_v63, 0.0  ;;  %v5529_v9 = vpop.f32.mrf.mxu0  ;;  %v5549_v10 = vpop.f32.mrf.mxu1  ;;  %5768 = vmatmul.mubr.msk.bf16.gmra.mxu0 %vm1315_vm0, %v5984_v55  ;;  %5788 = vmatmul.mubr.msk.bf16.gmra.mxu1 %vm1315_vm0, %v5985_v56  ;;  %v5992_v56 = vld [vmem:[%s6431_s10 + $0x338] sm:$0xff]   ;;  %v5994_v63 = vld [vmem:[%s6431_s10 + $0x380] sm:$0xff]  }
 0x130   : > { %v1438_v11 = vmax.f32 %v1378_v6, 0.0  ;;  %v1632_v12 = vmax.f32 %v1572_v7, 0.0  ;;  %v1399_v13 = vadd.f32 %v5529_v9, %v6688_v38  ;;  %v1593_v14 = vadd.f32 %v5549_v10, %v6688_v38  ;;  %5771 = vmatprep.mubr.msk.bf16.mxu0 %vm1315_vm0, %v5986_v61  ;;  %5791 = vmatprep.mubr.msk.bf16.mxu1 %vm1315_vm0, %v5987_v62 }
 0x131   : > { %v6724_v15 = vmax.f32 %v1440_v5, %v1634_v8  ;;  %v1390_v16 = vpop.f32.mrf.mxu0  ;;  %v1584_v17 = vpop.f32.mrf.mxu1 }
 0x132   : > { %v6726_v18 = vmax.f32 %v1438_v11, %v1632_v12  ;;  %v1443_v19 = vmax.f32 %v1399_v13, 0.0  ;;  %v1637_v20 = vmax.f32 %v1593_v14, 0.0  ;;  %v1391_v21 = vadd.f32 %v6688_v38, %v1390_v16 }
 0x133   : > { %v1585_v22 = vadd.f32 %v6688_v38, %v1584_v17  ;;  %v5530_v23 = vpop.f32.mrf.mxu0  ;;  %v5550_v24 = vpop.f32.mrf.mxu1 }
 0x134   : > { %v6732_v27 = vmax.f32 %v1443_v19, %v1637_v20  ;;  %v1441_v28 = vmax.f32 %v1391_v21, 0.0  ;;  %v1402_v29 = vadd.f32 %v5530_v23, %v6688_v38  ;;  %v1596_v30 = vadd.f32 %v5550_v24, %v6688_v38 }
 0x135   : > { %v1635_v32 = vmax.f32 %v1585_v22, 0.0  ;;  %v1393_v0 = vpop.f32.mrf.mxu0  ;;  %v1587_v33 = vpop.f32.mrf.mxu1 }
 0x136   : > { %v1444_v34 = vmax.f32 %v1402_v29, 0.0  ;;  %v1638_v35 = vmax.f32 %v1596_v30, 0.0  ;;  %v1394_v36 = vadd.f32 %v6688_v38, %v1393_v0  ;;  %v1588_v37 = vadd.f32 %v6688_v38, %v1587_v33 }
 0x137   : > { %v6740_v39 = vmax.f32 %v1441_v28, %v1635_v32  ;;  %v5533_v40 = vpop.f32.mrf.mxu0  ;;  %v5553_v41 = vpop.f32.mrf.mxu1  ;;  %5772 = vmatmul.mubr.msk.bf16.gmra.mxu0 %vm1315_vm0, %v5988_v25  ;;  %5792 = vmatmul.mubr.msk.bf16.gmra.mxu1 %vm1315_vm0, %v5989_v26 }
 0x138   : > { %v6744_v42 = vmax.f32 %v1444_v34, %v1638_v35  ;;  %v1442_v43 = vmax.f32 %v1394_v36, 0.0  ;;  %v1636_v44 = vmax.f32 %v1588_v37, 0.0  ;;  %v1415_v45 = vadd.f32 %v5533_v40, %v6688_v38  ;;  %5775 = vmatprep.mubr.msk.bf16.mxu0 %vm1315_vm0, %v5990_v31  ;;  %5795 = vmatprep.mubr.msk.bf16.mxu1 %vm1315_vm0, %v5991_v1  ;;  %v5996_v31 = vld [vmem:[%s6431_s10 + $0x388] sm:$0xff]   ;;  %v5998_v35 = vld [vmem:[%s6431_s10 + $0x390] sm:$0xff]  }
 0x139   : > { %v1609_v46 = vadd.f32 %v5553_v41, %v6688_v38  ;;  %v1406_v47 = vpop.f32.mrf.mxu0  ;;  %v1600_v48 = vpop.f32.mrf.mxu1  ;;  %v5997_v1 = vld [vmem:[%s6431_s10 + $0x3c8] sm:$0xff]   ;;  %v5999_v36 = vld [vmem:[%s6431_s10 + $0x3d0] sm:$0xff]  }
 0x13a   : > { %v6750_v49 = vmax.f32 %v1442_v43, %v1636_v44  ;;  %v1447_v50 = vmax.f32 %v1415_v45, 0.0  ;;  %v1407_v51 = vadd.f32 %v6688_v38, %v1406_v47  ;;  %v1601_v52 = vadd.f32 %v6688_v38, %v1600_v48 }
 0x13b   : > { %v1641_v53 = vmax.f32 %v1609_v46, 0.0  ;;  %v5534_v54 = vpop.f32.mrf.mxu0  ;;  %v5554_v55 = vpop.f32.mrf.mxu1 }
 0x13c   : > { %v1445_v59 = vmax.f32 %v1407_v51, 0.0  ;;  %v1639_v60 = vmax.f32 %v1601_v52, 0.0  ;;  %v1418_v61 = vadd.f32 %v5534_v54, %v6688_v38  ;;  %v1612_v62 = vadd.f32 %v5554_v55, %v6688_v38 }
 0x13d   : > { %v6760_v3 = vmax.f32 %v1447_v50, %v1641_v53  ;;  %v1409_v5 = vpop.f32.mrf.mxu0  ;;  %v1603_v6 = vpop.f32.mrf.mxu1 }
 0x13e   : > { %v6762_v7 = vmax.f32 %v1445_v59, %v1639_v60  ;;  %v1448_v8 = vmax.f32 %v1418_v61, 0.0  ;;  %v1642_v9 = vmax.f32 %v1612_v62, 0.0  ;;  %v1410_v10 = vadd.f32 %v6688_v38, %v1409_v5 }
 0x13f   : > { %v1604_v11 = vadd.f32 %v6688_v38, %v1603_v6  ;;  %v5537_v12 = vpop.f32.mrf.mxu0  ;;  %v5557_v13 = vpop.f32.mrf.mxu1  ;;  %5776 = vmatmul.mubr.msk.bf16.gmra.mxu0 %vm1315_vm0, %v5992_v56  ;;  %5796 = vmatmul.mubr.msk.bf16.gmra.mxu1 %vm1315_vm0, %v5993_v58  ;;  %v6000_v6 = vld [vmem:[%s6431_s10 + $0x398] sm:$0xff]  }
 0x140   : > { %v6768_v14 = vmax.f32 %v1448_v8, %v1642_v9  ;;  %v1446_v16 = vmax.f32 %v1410_v10, 0.0  ;;  %v1431_v17 = vadd.f32 %v5537_v12, %v6688_v38  ;;  %v1625_v19 = vadd.f32 %v5557_v13, %v6688_v38  ;;  %5803 = vmatprep.mubr.msk.bf16.mxu0 %vm1315_vm0, %v5994_v63  ;;  %5823 = vmatprep.mubr.msk.bf16.mxu1 %vm1315_vm0, %v5995_v2  ;;  %v6001_v8 = vld [vmem:[%s6431_s10 + $0x3d8] sm:$0xff]   ;;  %v6002_v13 = vld [vmem:[%s6431_s10 + $0x3a0] sm:$0xff]  }
 0x141   : > { %v1640_v20 = vmax.f32 %v1604_v11, 0.0  ;;  %v1422_v21 = vpop.f32.mrf.mxu0  ;;  %v1616_v22 = vpop.f32.mrf.mxu1 }
 0x142   : > { %v1451_v23 = vmax.f32 %v1431_v17, 0.0  ;;  %v1645_v24 = vmax.f32 %v1625_v19, 0.0  ;;  %v1423_v25 = vadd.f32 %v6688_v38, %v1422_v21  ;;  %v1617_v26 = vadd.f32 %v6688_v38, %v1616_v22  ;;  %v6003_v19 = vld [vmem:[%s6431_s10 + $0x3e0] sm:$0xff]  }
 0x143   : > { %v6776_v28 = vmax.f32 %v1446_v16, %v1640_v20  ;;  %v5538_v29 = vpop.f32.mrf.mxu0  ;;  %v5558_v30 = vpop.f32.mrf.mxu1 }
 0x144   : > { %v6780_v32 = vmax.f32 %v1451_v23, %v1645_v24  ;;  %v1449_v0 = vmax.f32 %v1423_v25, 0.0  ;;  %v1643_v33 = vmax.f32 %v1617_v26, 0.0  ;;  %v1434_v34 = vadd.f32 %v5538_v29, %v6688_v38 }
 0x145   : > { %v1628_v37 = vadd.f32 %v5558_v30, %v6688_v38  ;;  %v1425_v40 = vpop.f32.mrf.mxu0  ;;  %v1619_v41 = vpop.f32.mrf.mxu1 }
 0x146   : > { %v6786_v43 = vmax.f32 %v1449_v0, %v1643_v33  ;;  %v1452_v44 = vmax.f32 %v1434_v34, 0.0  ;;  %v1426_v45 = vadd.f32 %v6688_v38, %v1425_v40  ;;  %v1620_v46 = vadd.f32 %v6688_v38, %v1619_v41 }
 0x147   : > { %v1646_v47 = vmax.f32 %v1628_v37, 0.0  ;;  %v5565_v48 = vpop.f32.mrf.mxu0  ;;  %v5585_v50 = vpop.f32.mrf.mxu1  ;;  %5804 = vmatmul.mubr.msk.bf16.vlgmr.msra.gmra.mxu0 %vm1315_vm0, %v5996_v31  ;;  %5824 = vmatmul.mubr.msk.bf16.vlgmr.msra.gmra.mxu1 %vm1315_vm0, %v5997_v1 }
 0x148   : > { %v1450_v51 = vmax.f32 %v1426_v45, 0.0  ;;  %v1644_v52 = vmax.f32 %v1620_v46, 0.0  ;;  %v1787_v53 = vadd.f32 %v5565_v48, %v6688_v38  ;;  %v1997_v54 = vadd.f32 %v5585_v50, %v6688_v38  ;;  %5807 = vmatprep.mubr.msk.bf16.mxu0 %vm1315_vm0, %v5998_v35  ;;  %5827 = vmatprep.mubr.msk.bf16.mxu1 %vm1315_vm0, %v5999_v36  ;;  %v6005_v48 = vld [vmem:[%s6431_s10 + $0x3e8] sm:$0xff]  }
 0x149   : > { %v6796_v55 = vmax.f32 %v1452_v44, %v1646_v47  ;;  %v1778_v56 = vpop.f32.mrf.mxu0  ;;  %v1988_v58 = vpop.f32.mrf.mxu1  ;;  %v6004_v47 = vld [vmem:[%s6431_s10 + $0x3a8] sm:$0xff]  }
 0x14a   : > { %v6798_v59 = vmax.f32 %v1450_v51, %v1644_v52  ;;  %v1843_v60 = vmax.f32 %v1787_v53, 0.0  ;;  %v2053_v61 = vmax.f32 %v1997_v54, 0.0  ;;  %v1779_v62 = vadd.f32 %v6688_v38, %v1778_v56  ;;  %v6006_v54 = vld [vmem:[%s6431_s10 + $0x3b0] sm:$0xff]  }
 0x14b   : > { %v1989_v63 = vadd.f32 %v6688_v38, %v1988_v58  ;;  %v5566_v2 = vpop.f32.mrf.mxu0  ;;  %v5586_v5 = vpop.f32.mrf.mxu1 }
 0x14c   : > { %v1859_v9 = vmax.f32 %v6708_v57, %v1843_v60  ;;  %v1841_v10 = vmax.f32 %v1779_v62, 0.0  ;;  %v1790_v11 = vadd.f32 %v5566_v2, %v6688_v38  ;;  %v2000_v12 = vadd.f32 %v5586_v5, %v6688_v38 }
 0x14d   : > { %v1781_v16 = vpop.f32.mrf.mxu0  ;;  %v1991_v17 = vpop.f32.mrf.mxu1  ;;  %v2051_v22 = vmax.f32 %v1989_v63, 0.0 }
 0x14e   : > { %v6809_v20 = vmax.f32 %v1859_v9, %v2053_v61  ;;  %v1857_v21 = vmax.f32 %v6714_v4, %v1841_v10  ;;  %v1844_v23 = vmax.f32 %v1790_v11, 0.0  ;;  %v2054_v24 = vmax.f32 %v2000_v12, 0.0 }
 0x14f   : > { %v1782_v25 = vadd.f32 %v6688_v38, %v1781_v16  ;;  %v1992_v57 = vadd.f32 %v6688_v38, %v1991_v17  ;;  %v5569_v26 = vpop.f32.mrf.mxu0  ;;  %v5589_v29 = vpop.f32.mrf.mxu1  ;;  %5808 = vmatmul.mubr.msk.bf16.gmra.mxu0 %vm1315_vm0, %v6000_v6  ;;  %5828 = vmatmul.mubr.msk.bf16.gmra.mxu1 %vm1315_vm0, %v6001_v8 }
 0x150   : > { %v6816_v30 = vmax.f32 %v1857_v21, %v2051_v22  ;;  %v1860_v31 = vmax.f32 %v6724_v15, %v1844_v23  ;;  %v1803_v1 = vadd.f32 %v5569_v26, %v6688_v38  ;;  %v2013_v4 = vadd.f32 %v5589_v29, %v6688_v38  ;;  %5811 = vmatprep.mubr.msk.bf16.mxu0 %vm1315_vm0, %v6002_v13  ;;  %v6008_v29 = vld [vmem:[%s6431_s10 + $0x3b8] sm:$0xff]  }
 0x151   : > { %v1842_v0 = vmax.f32 %v1782_v25, 0.0  ;;  %v1794_v33 = vpop.f32.mrf.mxu0  ;;  %v2004_v34 = vpop.f32.mrf.mxu1  ;;  %5831 = vmatprep.mubr.msk.bf16.mxu1 %vm1315_vm0, %v6003_v19  ;;  %v2052_v41 = vmax.f32 %v1992_v57, 0.0 }
 0x152   : > { %v6823_v35 = vmax.f32 %v1860_v31, %v2054_v24  ;;  %v1847_v36 = vmax.f32 %v1803_v1, 0.0  ;;  %v2057_v37 = vmax.f32 %v2013_v4, 0.0  ;;  %v1795_v15 = vadd.f32 %v6688_v38, %v1794_v33  ;;  %v6009_v31 = vld [vmem:[%s6431_s10 + $0x3f8] sm:$0xff]  }
 0x153   : > { %v1858_v40 = vmax.f32 %v6726_v18, %v1842_v0  ;;  %v2005_v44 = vadd.f32 %v6688_v38, %v2004_v34  ;;  %v5570_v45 = vpop.f32.mrf.mxu0  ;;  %v5590_v46 = vpop.f32.mrf.mxu1  ;;  %v6007_v18 = vld [vmem:[%s6431_s10 + $0x3f0] sm:$0xff]   ;;  %s7437_s10 = scalar_lea.hbm %s7485_s3, %s5311_s5 }
 0x154   : > { %v1863_v50 = vmax.f32 %v6732_v27, %v1847_v36  ;;  %v1845_v51 = vmax.f32 %v1795_v15, 0.0  ;;  %v1806_v52 = vadd.f32 %v5570_v45, %v6688_v38  ;;  %v2016_v53 = vadd.f32 %v5590_v46, %v6688_v38 }
 0x155   : > { %v6834_v56 = vmax.f32 %v1858_v40, %v2052_v41  ;;  %v1797_v58 = vpop.f32.mrf.mxu0  ;;  %v2007_v60 = vpop.f32.mrf.mxu1  ;;  %v2055_v63 = vmax.f32 %v2005_v44, 0.0 }
 0x156   : > { %v6837_v61 = vmax.f32 %v1863_v50, %v2057_v37  ;;  %v1861_v62 = vmax.f32 %v6740_v39, %v1845_v51  ;;  %v1848_v2 = vmax.f32 %v1806_v52, 0.0  ;;  %v2058_v5 = vmax.f32 %v2016_v53, 0.0 }
 0x157   : > { %v1798_v27 = vadd.f32 %v6688_v38, %v1797_v58  ;;  %v2008_v6 = vadd.f32 %v6688_v38, %v2007_v60  ;;  %v5573_v8 = vpop.f32.mrf.mxu0  ;;  %v5593_v9 = vpop.f32.mrf.mxu1  ;;  %5812 = vmatmul.mubr.msk.bf16.gmra.mxu0 %vm1315_vm0, %v6004_v47  ;;  %5832 = vmatmul.mubr.msk.bf16.gmra.mxu1 %vm1315_vm0, %v6005_v48 }
 0x158   : > { %v6844_v10 = vmax.f32 %v1861_v62, %v2055_v63  ;;  %v1864_v11 = vmax.f32 %v6744_v42, %v1848_v2  ;;  %v1819_v12 = vadd.f32 %v5573_v8, %v6688_v38  ;;  %v2029_v39 = vadd.f32 %v5593_v9, %v6688_v38  ;;  %5815 = vmatprep.mubr.msk.bf16.mxu0 %vm1315_vm0, %v6006_v54 }
 0x159   : > { %v1846_v13 = vmax.f32 %v1798_v27, 0.0  ;;  %v1810_v16 = vpop.f32.mrf.mxu0  ;;  %v2020_v17 = vpop.f32.mrf.mxu1  ;;  %5835 = vmatprep.mubr.msk.bf16.mxu1 %vm1315_vm0, %v6007_v18  ;;  %v2056_v24 = vmax.f32 %v2008_v6, 0.0 }
 0x15a   : > { %v6851_v19 = vmax.f32 %v1864_v11, %v2058_v5  ;;  %v1851_v21 = vmax.f32 %v1819_v12, 0.0  ;;  %v2061_v22 = vmax.f32 %v2029_v39, 0.0  ;;  %v1811_v23 = vadd.f32 %v6688_v38, %v1810_v16 }
 0x15b   : > { %v1862_v42 = vmax.f32 %v6750_v49, %v1846_v13  ;;  %v2021_v25 = vadd.f32 %v6688_v38, %v2020_v17  ;;  %v5574_v57 = vpop.f32.mrf.mxu0  ;;  %v5594_v26 = vpop.f32.mrf.mxu1 }
 0x15c   : > { %v1867_v1 = vmax.f32 %v6760_v3, %v1851_v21  ;;  %v1849_v4 = vmax.f32 %v1811_v23, 0.0  ;;  %v1822_v0 = vadd.f32 %v5574_v57, %v6688_v38  ;;  %v2032_v33 = vadd.f32 %v5594_v26, %v6688_v38 }
 0x15d   : > { %v6861_v34 = vmax.f32 %v1862_v42, %v2056_v24  ;;  %v1813_v36 = vpop.f32.mrf.mxu0  ;;  %v2023_v37 = vpop.f32.mrf.mxu1  ;;  %v2059_v40 = vmax.f32 %v2021_v25, 0.0 }
 0x15e   : > { %v6863_v15 = vmax.f32 %v1867_v1, %v2061_v22  ;;  %v1865_v49 = vmax.f32 %v6762_v7, %v1849_v4  ;;  %v1852_v41 = vmax.f32 %v1822_v0, 0.0  ;;  %v2062_v44 = vmax.f32 %v2032_v33, 0.0 }
 0x15f   : > { %v1814_v45 = vadd.f32 %v6688_v38, %v1813_v36  ;;  %v2024_v3 = vadd.f32 %v6688_v38, %v2023_v37  ;;  %v5577_v46 = vpop.f32.mrf.mxu0  ;;  %v5597_v47 = vpop.f32.mrf.mxu1  ;;  %5816 = vmatmul.mubr.msk.bf16.gmra.mxu0 %vm1315_vm0, %v6008_v29  ;;  %5836 = vmatmul.mubr.msk.bf16.gmra.mxu1 %vm1315_vm0, %v6009_v31 }
 0x160   : > { %v6870_v48 = vmax.f32 %v1865_v49, %v2059_v40  ;;  %v1868_v50 = vmax.f32 %v6768_v14, %v1852_v41  ;;  %v1835_v51 = vadd.f32 %v5577_v46, %v6688_v38  ;;  %v2045_v7 = vadd.f32 %v5597_v47, %v6688_v38 }
 0x161   : > { %v1850_v52 = vmax.f32 %v1814_v45, 0.0  ;;  %v1826_v53 = vpop.f32.mrf.mxu0  ;;  %v2036_v54 = vpop.f32.mrf.mxu1  ;;  %v2060_v2 = vmax.f32 %v2024_v3, 0.0 }
 0x162   : > { %v6875_v58 = vmax.f32 %v1868_v50, %v2062_v44  ;;  %v1855_v60 = vmax.f32 %v1835_v51, 0.0  ;;  %v2065_v18 = vmax.f32 %v2045_v7, 0.0  ;;  %v1827_v62 = vadd.f32 %v6688_v38, %v1826_v53 }
 0x163   : > { %v1866_v63 = vmax.f32 %v6776_v28, %v1850_v52  ;;  %v2037_v5 = vadd.f32 %v6688_v38, %v2036_v54  ;;  %v5578_v27 = vpop.f32.mrf.mxu0  ;;  %v5598_v14 = vpop.f32.mrf.mxu1 }
 0x164   : > { %v1871_v6 = vmax.f32 %v6780_v32, %v1855_v60  ;;  %v1853_v8 = vmax.f32 %v1827_v62, 0.0  ;;  %v1838_v9 = vadd.f32 %v5578_v27, %v6688_v38  ;;  %v2048_v11 = vadd.f32 %v5598_v14, %v6688_v38 }
 0x165   : > { %v6883_v12 = vmax.f32 %v1866_v63, %v2060_v2  ;;  %v1829_v39 = vpop.f32.mrf.mxu0  ;;  %v2039_v13 = vpop.f32.mrf.mxu1  ;;  %v2063_v17 = vmax.f32 %v2037_v5, 0.0 }
 0x166   : > { %v6885_v16 = vmax.f32 %v1871_v6, %v2065_v18  ;;  %v1869_v28 = vmax.f32 %v6786_v43, %v1853_v8  ;;  %v1856_v21 = vmax.f32 %v1838_v9, 0.0  ;;  %v2066_v22 = vmax.f32 %v2048_v11, 0.0 }
 0x167   : > { %v1830_v23 = vadd.f32 %v6688_v38, %v1829_v39  ;;  %v2040_v32 = vadd.f32 %v6688_v38, %v2039_v13  ;;  %v5605_v42 = vpop.f32.mrf.mxu0  ;;  %v5625_v24 = vpop.f32.mrf.mxu1 }
 0x168   : > { %v6890_v25 = vmax.f32 %v1869_v28, %v2063_v17  ;;  %v1872_v57 = vmax.f32 %v6796_v55, %v1856_v21  ;;  %v2207_v26 = vadd.f32 %v5605_v42, %v6688_v38  ;;  %v2417_v29 = vadd.f32 %v5625_v24, %v6688_v38 }
 0x169   : > { %v1854_v31 = vmax.f32 %v1830_v23, 0.0  ;;  %v2198_v1 = vpop.f32.mrf.mxu0  ;;  %v2408_v43 = vpop.f32.mrf.mxu1  ;;  %v2064_v49 = vmax.f32 %v2040_v32, 0.0 }
 0x16a   : > { %v6895_v4 = vmax.f32 %v1872_v57, %v2066_v22  ;;  %v2263_v0 = vmax.f32 %v2207_v26, 0.0  ;;  %v2473_v33 = vmax.f32 %v2417_v29, 0.0  ;;  %v2199_v36 = vadd.f32 %v6688_v38, %v2198_v1 }
 0x16b   : > { %v1870_v37 = vmax.f32 %v6798_v59, %v1854_v31  ;;  %v2409_v40 = vadd.f32 %v6688_v38, %v2408_v43  ;;  %v5606_v41 = vpop.f32.mrf.mxu0  ;;  %v5626_v55 = vpop.f32.mrf.mxu1 }
 0x16c   : > { %v2279_v44 = vmax.f32 %v6809_v20, %v2263_v0  ;;  %v2261_v45 = vmax.f32 %v2199_v36, 0.0  ;;  %v2210_v3 = vadd.f32 %v5606_v41, %v6688_v38  ;;  %v2420_v46 = vadd.f32 %v5626_v55, %v6688_v38 }
 0x16d   : > { %v6903_v47 = vmax.f32 %v1870_v37, %v2064_v49  ;;  %v2201_v50 = vpop.f32.mrf.mxu0  ;;  %v2411_v51 = vpop.f32.mrf.mxu1  ;;  %v2471_v52 = vmax.f32 %v2409_v40, 0.0 }
 0x16e   : > { %v6905_v7 = vmax.f32 %v2279_v44, %v2473_v33  ;;  %v2277_v59 = vmax.f32 %v6816_v30, %v2261_v45  ;;  %v2264_v53 = vmax.f32 %v2210_v3, 0.0  ;;  %v2474_v54 = vmax.f32 %v2420_v46, 0.0 }
 0x16f   : > { %v2202_v60 = vadd.f32 %v6688_v38, %v2201_v50  ;;  %v2412_v20 = vadd.f32 %v6688_v38, %v2411_v51  ;;  %v5609_v18 = vpop.f32.mrf.mxu0  ;;  %v5629_v62 = vpop.f32.mrf.mxu1 }
 0x170   : > { %v6910_v63 = vmax.f32 %v2277_v59, %v2471_v52  ;;  %v2280_v2 = vmax.f32 %v6823_v35, %v2264_v53  ;;  %v2223_v5 = vadd.f32 %v5609_v18, %v6688_v38  ;;  %v2433_v27 = vadd.f32 %v5629_v62, %v6688_v38 }
 0x171   : > { %v2262_v14 = vmax.f32 %v2202_v60, 0.0  ;;  %v2214_v6 = vpop.f32.mrf.mxu0  ;;  %v2424_v30 = vpop.f32.mrf.mxu1  ;;  %v2472_v28 = vmax.f32 %v2412_v20, 0.0 }
 0x172   : > { %v6915_v8 = vmax.f32 %v2280_v2, %v2474_v54  ;;  %v2267_v9 = vmax.f32 %v2223_v5, 0.0  ;;  %v2477_v11 = vmax.f32 %v2433_v27, 0.0  ;;  %v2215_v39 = vadd.f32 %v6688_v38, %v2214_v6 }
 0x173   : > { %v2278_v13 = vmax.f32 %v6834_v56, %v2262_v14  ;;  %v2425_v17 = vadd.f32 %v6688_v38, %v2424_v30  ;;  %v5610_v21 = vpop.f32.mrf.mxu0  ;;  %v5630_v35 = vpop.f32.mrf.mxu1 }
 0x174   : > { %v2283_v22 = vmax.f32 %v6837_v61, %v2267_v9  ;;  %v2265_v23 = vmax.f32 %v2215_v39, 0.0  ;;  %v2226_v32 = vadd.f32 %v5610_v21, %v6688_v38  ;;  %v2436_v42 = vadd.f32 %v5630_v35, %v6688_v38 }
 0x175   : > { %v6923_v24 = vmax.f32 %v2278_v13, %v2472_v28  ;;  %v2217_v57 = vpop.f32.mrf.mxu0  ;;  %v2427_v26 = vpop.f32.mrf.mxu1  ;;  %v2475_v31 = vmax.f32 %v2425_v17, 0.0 }
 0x176   : > { %v6925_v29 = vmax.f32 %v2283_v22, %v2477_v11  ;;  %v2281_v56 = vmax.f32 %v6844_v10, %v2265_v23  ;;  %v2268_v1 = vmax.f32 %v2226_v32, 0.0  ;;  %v2478_v43 = vmax.f32 %v2436_v42, 0.0 }
 0x177   : > { %v2218_v0 = vadd.f32 %v6688_v38, %v2217_v57  ;;  %v2428_v61 = vadd.f32 %v6688_v38, %v2427_v26  ;;  %v5613_v33 = vpop.f32.mrf.mxu0  ;;  %v5633_v36 = vpop.f32.mrf.mxu1 }
 0x178   : > { %v6930_v37 = vmax.f32 %v2281_v56, %v2475_v31  ;;  %v2284_v49 = vmax.f32 %v6851_v19, %v2268_v1  ;;  %v2239_v40 = vadd.f32 %v5613_v33, %v6688_v38  ;;  %v2449_v41 = vadd.f32 %v5633_v36, %v6688_v38 }
 0x179   : > { %v2266_v55 = vmax.f32 %v2218_v0, 0.0  ;;  %v2230_v44 = vpop.f32.mrf.mxu0  ;;  %v2440_v10 = vpop.f32.mrf.mxu1  ;;  %v2476_v59 = vmax.f32 %v2428_v61, 0.0 }
 0x17a   : > { %v6935_v45 = vmax.f32 %v2284_v49, %v2478_v43  ;;  %v2271_v3 = vmax.f32 %v2239_v40, 0.0  ;;  %v2481_v46 = vmax.f32 %v2449_v41, 0.0  ;;  %v2231_v50 = vadd.f32 %v6688_v38, %v2230_v44 }
 0x17b   : > { %v2282_v51 = vmax.f32 %v6861_v34, %v2266_v55  ;;  %v2441_v52 = vadd.f32 %v6688_v38, %v2440_v10  ;;  %v5614_v53 = vpop.f32.mrf.mxu0  ;;  %v5634_v19 = vpop.f32.mrf.mxu1 }
 0x17c   : > { %v2287_v54 = vmax.f32 %v6863_v15, %v2271_v3  ;;  %v2269_v60 = vmax.f32 %v2231_v50, 0.0  ;;  %v2242_v20 = vadd.f32 %v5614_v53, %v6688_v38  ;;  %v2452_v18 = vadd.f32 %v5634_v19, %v6688_v38 }
 0x17d   : > { %v6943_v62 = vmax.f32 %v2282_v51, %v2476_v59  ;;  %v2233_v2 = vpop.f32.mrf.mxu0  ;;  %v2443_v5 = vpop.f32.mrf.mxu1  ;;  %v2479_v14 = vmax.f32 %v2441_v52, 0.0 }
 0x17e   : > { %v6945_v27 = vmax.f32 %v2287_v54, %v2481_v46  ;;  %v2285_v34 = vmax.f32 %v6870_v48, %v2269_v60  ;;  %v2272_v6 = vmax.f32 %v2242_v20, 0.0  ;;  %v2482_v30 = vmax.f32 %v2452_v18, 0.0 }
 0x17f   : > { %v2234_v9 = vadd.f32 %v6688_v38, %v2233_v2  ;;  %v2444_v15 = vadd.f32 %v6688_v38, %v2443_v5  ;;  %v5617_v11 = vpop.f32.mrf.mxu0  ;;  %v5637_v39 = vpop.f32.mrf.mxu1 }
 0x180   : > { %v6950_v13 = vmax.f32 %v2285_v34, %v2479_v14  ;;  %v2288_v28 = vmax.f32 %v6875_v58, %v2272_v6  ;;  %v2255_v17 = vadd.f32 %v5617_v11, %v6688_v38  ;;  %v2465_v21 = vadd.f32 %v5637_v39, %v6688_v38 }
 0x181   : > { %v2270_v35 = vmax.f32 %v2234_v9, 0.0  ;;  %v2246_v22 = vpop.f32.mrf.mxu0  ;;  %v2456_v48 = vpop.f32.mrf.mxu1  ;;  %v2480_v56 = vmax.f32 %v2444_v15, 0.0 }
 0x182   : > { %v6955_v23 = vmax.f32 %v2288_v28, %v2482_v30  ;;  %v2275_v32 = vmax.f32 %v2255_v17, 0.0  ;;  %v2485_v42 = vmax.f32 %v2465_v21, 0.0  ;;  %v2247_v57 = vadd.f32 %v6688_v38, %v2246_v22 }
 0x183   : > { %v2286_v26 = vmax.f32 %v6883_v12, %v2270_v35  ;;  %v2457_v31 = vadd.f32 %v6688_v38, %v2456_v48  ;;  %v5618_v1 = vpop.f32.mrf.mxu0  ;;  %v5638_v58 = vpop.f32.mrf.mxu1 }
 0x184   : > { %v2291_v43 = vmax.f32 %v6885_v16, %v2275_v32  ;;  %v2273_v0 = vmax.f32 %v2247_v57, 0.0  ;;  %v2258_v61 = vadd.f32 %v5618_v1, %v6688_v38  ;;  %v2468_v33 = vadd.f32 %v5638_v58, %v6688_v38 }
 0x185   : > { %v6963_v36 = vmax.f32 %v2286_v26, %v2480_v56  ;;  %v2249_v49 = vpop.f32.mrf.mxu0  ;;  %v2459_v40 = vpop.f32.mrf.mxu1  ;;  %v2483_v55 = vmax.f32 %v2457_v31, 0.0 }
 0x186   : > { %v6965_v41 = vmax.f32 %v2291_v43, %v2485_v42  ;;  %v2289_v12 = vmax.f32 %v6890_v25, %v2273_v0  ;;  %v2276_v44 = vmax.f32 %v2258_v61, 0.0  ;;  %v2486_v10 = vmax.f32 %v2468_v33, 0.0 }
 0x187   : > { %v2250_v3 = vadd.f32 %v6688_v38, %v2249_v49  ;;  %v2460_v16 = vadd.f32 %v6688_v38, %v2459_v40  ;;  %v5645_v46 = vpop.f32.mrf.mxu0  ;;  %v5665_v50 = vpop.f32.mrf.mxu1 }
 0x188   : > { %v6970_v51 = vmax.f32 %v2289_v12, %v2483_v55  ;;  %v2292_v59 = vmax.f32 %v6895_v4, %v2276_v44  ;;  %v2627_v52 = vadd.f32 %v5645_v46, %v6688_v38  ;;  %v2837_v53 = vadd.f32 %v5665_v50, %v6688_v38 }
 0x189   : > { %v2274_v19 = vmax.f32 %v2250_v3, 0.0  ;;  %v2618_v54 = vpop.f32.mrf.mxu0  ;;  %v2828_v25 = vpop.f32.mrf.mxu1  ;;  %v2484_v34 = vmax.f32 %v2460_v16, 0.0 }
 0x18a   : > { %v6975_v60 = vmax.f32 %v2292_v59, %v2486_v10  ;;  %v2683_v20 = vmax.f32 %v2627_v52, 0.0  ;;  %v2893_v18 = vmax.f32 %v2837_v53, 0.0  ;;  %v2619_v2 = vadd.f32 %v6688_v38, %v2618_v54 }
 0x18b   : > { %v2290_v5 = vmax.f32 %v6903_v47, %v2274_v19  ;;  %v2829_v14 = vadd.f32 %v6688_v38, %v2828_v25  ;;  %v5646_v6 = vpop.f32.mrf.mxu0  ;;  %v5666_v4 = vpop.f32.mrf.mxu1 }
 0x18c   : > { %v2699_v30 = vmax.f32 %v6905_v7, %v2683_v20  ;;  %v2681_v9 = vmax.f32 %v2619_v2, 0.0  ;;  %v2630_v15 = vadd.f32 %v5646_v6, %v6688_v38  ;;  %v2840_v11 = vadd.f32 %v5666_v4, %v6688_v38 }
 0x18d   : > { %v6983_v39 = vmax.f32 %v2290_v5, %v2484_v34  ;;  %v2621_v28 = vpop.f32.mrf.mxu0  ;;  %v2831_v17 = vpop.f32.mrf.mxu1  ;;  %v2891_v35 = vmax.f32 %v2829_v14, 0.0 }
 0x18e   : > { %v6985_v21 = vmax.f32 %v2699_v30, %v2893_v18  ;;  %v2697_v47 = vmax.f32 %v6910_v63, %v2681_v9  ;;  %v2684_v22 = vmax.f32 %v2630_v15, 0.0  ;;  %v2894_v48 = vmax.f32 %v2840_v11, 0.0 }
 0x18f   : > { %v2622_v32 = vadd.f32 %v6688_v38, %v2621_v28  ;;  %v2832_v7 = vadd.f32 %v6688_v38, %v2831_v17  ;;  %v5649_v42 = vpop.f32.mrf.mxu0  ;;  %v5669_v57 = vpop.f32.mrf.mxu1 }
 0x190   : > { %v6990_v26 = vmax.f32 %v2697_v47, %v2891_v35  ;;  %v2700_v56 = vmax.f32 %v6915_v8, %v2684_v22  ;;  %v2643_v31 = vadd.f32 %v5649_v42, %v6688_v38  ;;  %v2853_v1 = vadd.f32 %v5669_v57, %v6688_v38 }
 0x191   : > { %v2682_v58 = vmax.f32 %v2622_v32, 0.0  ;;  %v2634_v43 = vpop.f32.mrf.mxu0  ;;  %v2844_v63 = vpop.f32.mrf.mxu1  ;;  %v2892_v12 = vmax.f32 %v2832_v7, 0.0 }
 0x192   : > { %v6995_v0 = vmax.f32 %v2700_v56, %v2894_v48  ;;  %v2687_v61 = vmax.f32 %v2643_v31, 0.0  ;;  %v2897_v33 = vmax.f32 %v2853_v1, 0.0  ;;  %v2635_v49 = vadd.f32 %v6688_v38, %v2634_v43 }
 0x193   : > { %v2698_v40 = vmax.f32 %v6923_v24, %v2682_v58  ;;  %v2845_v55 = vadd.f32 %v6688_v38, %v2844_v63  ;;  %v5650_v44 = vpop.f32.mrf.mxu0  ;;  %v5670_v8 = vpop.f32.mrf.mxu1 }
 0x194   : > { %v2703_v10 = vmax.f32 %v6925_v29, %v2687_v61  ;;  %v2685_v3 = vmax.f32 %v2635_v49, 0.0  ;;  %v2646_v16 = vadd.f32 %v5650_v44, %v6688_v38  ;;  %v2856_v46 = vadd.f32 %v5670_v8, %v6688_v38 }
 0x195   : > { %v7003_v50 = vmax.f32 %v2698_v40, %v2892_v12  ;;  %v2637_v59 = vpop.f32.mrf.mxu0  ;;  %v2847_v52 = vpop.f32.mrf.mxu1  ;;  %v2895_v19 = vmax.f32 %v2845_v55, 0.0 }
 0x196   : > { %v7005_v53 = vmax.f32 %v2703_v10, %v2897_v33  ;;  %v2701_v24 = vmax.f32 %v6930_v37, %v2685_v3  ;;  %v2688_v54 = vmax.f32 %v2646_v16, 0.0  ;;  %v2898_v25 = vmax.f32 %v2856_v46, 0.0 }
 0x197   : > { %v2638_v20 = vadd.f32 %v6688_v38, %v2637_v59  ;;  %v2848_v29 = vadd.f32 %v6688_v38, %v2847_v52  ;;  %v5653_v18 = vpop.f32.mrf.mxu0  ;;  %v5673_v2 = vpop.f32.mrf.mxu1 }
 0x198   : > { %v7010_v5 = vmax.f32 %v2701_v24, %v2895_v19  ;;  %v2704_v34 = vmax.f32 %v6935_v45, %v2688_v54  ;;  %v2659_v14 = vadd.f32 %v5653_v18, %v6688_v38  ;;  %v2869_v6 = vadd.f32 %v5673_v2, %v6688_v38 }
 0x199   : > { %v2686_v4 = vmax.f32 %v2638_v20, 0.0  ;;  %v2650_v30 = vpop.f32.mrf.mxu0  ;;  %v2860_v37 = vpop.f32.mrf.mxu1  ;;  %v2896_v47 = vmax.f32 %v2848_v29, 0.0 }
 0x19a   : > { %v7015_v9 = vmax.f32 %v2704_v34, %v2898_v25  ;;  %v2691_v15 = vmax.f32 %v2659_v14, 0.0  ;;  %v2901_v11 = vmax.f32 %v2869_v6, 0.0  ;;  %v2651_v28 = vadd.f32 %v6688_v38, %v2650_v30 }
 0x19b   : > { %v2702_v17 = vmax.f32 %v6943_v62, %v2686_v4  ;;  %v2861_v35 = vadd.f32 %v6688_v38, %v2860_v37  ;;  %v5654_v22 = vpop.f32.mrf.mxu0  ;;  %v5674_v45 = vpop.f32.mrf.mxu1 }
 0x19c   : > { %v2707_v48 = vmax.f32 %v6945_v27, %v2691_v15  ;;  %v2689_v32 = vmax.f32 %v2651_v28, 0.0  ;;  %v2662_v7 = vadd.f32 %v5654_v22, %v6688_v38  ;;  %v2872_v42 = vadd.f32 %v5674_v45, %v6688_v38  ;;  %v7031_v27 = vld [vmem:[%s7484_s2] ss:$0 sm:$0xff] }
 0x19d   : > { %v7023_v57 = vmax.f32 %v2702_v17, %v2896_v47  ;;  %v2653_v56 = vpop.f32.mrf.mxu0  ;;  %v2863_v31 = vpop.f32.mrf.mxu1  ;;  %v2899_v58 = vmax.f32 %v2861_v35, 0.0 }
 0x19e   : > { %v7025_v1 = vmax.f32 %v2707_v48, %v2901_v11  ;;  %v2705_v62 = vmax.f32 %v6950_v13, %v2689_v32  ;;  %v2692_v43 = vmax.f32 %v2662_v7, 0.0  ;;  %v2902_v63 = vmax.f32 %v2872_v42, 0.0 }
 0x19f   : > { %v2654_v61 = vadd.f32 %v7031_v27, %v2653_v56  ;;  %v2864_v38 = vadd.f32 %v7031_v27, %v2863_v31  ;;  %v5657_v33 = vpop.f32.mrf.mxu0  ;;  %v5677_v49 = vpop.f32.mrf.mxu1 }
 0x1a0   : > { %v7035_v40 = vmax.f32 %v2705_v62, %v2899_v58  ;;  %v2708_v12 = vmax.f32 %v6955_v23, %v2692_v43  ;;  %v2675_v13 = vadd.f32 %v7031_v27, %v5657_v33  ;;  %v2885_v55 = vadd.f32 %v7031_v27, %v5677_v49 }
 0x1a1   : > { %v2690_v44 = vmax.f32 %v2654_v61, 0.0  ;;  %v2666_v8 = vpop.f32.mrf.mxu0  ;;  %v2876_v10 = vpop.f32.mrf.mxu1  ;;  %v2900_v24 = vmax.f32 %v2864_v38, 0.0 }
 0x1a2   : > { %v7040_v3 = vmax.f32 %v2708_v12, %v2902_v63  ;;  %v2695_v16 = vmax.f32 %v2675_v13, 0.0  ;;  %v2905_v46 = vmax.f32 %v2885_v55, 0.0  ;;  %v2667_v59 = vadd.f32 %v7031_v27, %v2666_v8 }
 0x1a3   : > { %v2706_v52 = vmax.f32 %v6963_v36, %v2690_v44  ;;  %v2877_v19 = vadd.f32 %v7031_v27, %v2876_v10  ;;  %v5658_v54 = vpop.f32.mrf.mxu0  ;;  %v5678_v23 = vpop.f32.mrf.mxu1 }
 0x1a4   : > { %v2711_v25 = vmax.f32 %v6965_v41, %v2695_v16  ;;  %v2693_v20 = vmax.f32 %v2667_v59, 0.0  ;;  %v2678_v29 = vadd.f32 %v7031_v27, %v5658_v54  ;;  %v2888_v18 = vadd.f32 %v7031_v27, %v5678_v23 }
 0x1a5   : > { %v7048_v2 = vmax.f32 %v2706_v52, %v2900_v24  ;;  %v2669_v34 = vpop.f32.mrf.mxu0  ;;  %v2879_v14 = vpop.f32.mrf.mxu1  ;;  %v2903_v4 = vmax.f32 %v2877_v19, 0.0 }
 0x1a6   : > { %v7050_v6 = vmax.f32 %v2711_v25, %v2905_v46  ;;  %v2709_v36 = vmax.f32 %v6970_v51, %v2693_v20  ;;  %v2696_v30 = vmax.f32 %v2678_v29, 0.0  ;;  %v2906_v37 = vmax.f32 %v2888_v18, 0.0 }
 0x1a7   : > { %v2670_v15 = vadd.f32 %v7031_v27, %v2669_v34  ;;  %v2880_v41 = vadd.f32 %v7031_v27, %v2879_v14  ;;  %v5685_v11 = vpop.f32.mrf.mxu0  ;;  %v5705_v28 = vpop.f32.mrf.mxu1 }
 0x1a8   : > { %v7055_v17 = vmax.f32 %v2709_v36, %v2903_v4  ;;  %v2712_v47 = vmax.f32 %v6975_v60, %v2696_v30  ;;  %v3047_v35 = vadd.f32 %v7031_v27, %v5685_v11  ;;  %v3257_v22 = vadd.f32 %v7031_v27, %v5705_v28 }
 0x1a9   : > { %v2694_v45 = vmax.f32 %v2670_v15, 0.0  ;;  %v3038_v48 = vpop.f32.mrf.mxu0  ;;  %v3248_v51 = vpop.f32.mrf.mxu1  ;;  %v2904_v62 = vmax.f32 %v2880_v41, 0.0 }
 0x1aa   : > { %v7060_v32 = vmax.f32 %v2712_v47, %v2906_v37  ;;  %v3103_v7 = vmax.f32 %v3047_v35, 0.0  ;;  %v3313_v42 = vmax.f32 %v3257_v22, 0.0  ;;  %v3039_v56 = vadd.f32 %v7031_v27, %v3038_v48 }
 0x1ab   : > { %v2710_v31 = vmax.f32 %v6983_v39, %v2694_v45  ;;  %v3249_v58 = vadd.f32 %v7031_v27, %v3248_v51  ;;  %v5686_v43 = vpop.f32.mrf.mxu0  ;;  %v5706_v60 = vpop.f32.mrf.mxu1 }
 0x1ac   : > { %v3119_v63 = vmax.f32 %v6985_v21, %v3103_v7  ;;  %v3101_v61 = vmax.f32 %v3039_v56, 0.0  ;;  %v3050_v38 = vadd.f32 %v7031_v27, %v5686_v43  ;;  %v3260_v33 = vadd.f32 %v7031_v27, %v5706_v60 }
 0x1ad   : > { %v7068_v49 = vmax.f32 %v2710_v31, %v2904_v62  ;;  %v3041_v12 = vpop.f32.mrf.mxu0  ;;  %v3251_v13 = vpop.f32.mrf.mxu1  ;;  %v3311_v44 = vmax.f32 %v3249_v58, 0.0 }
 0x1ae   : > { %v7070_v55 = vmax.f32 %v3119_v63, %v3313_v42  ;;  %v3117_v39 = vmax.f32 %v6990_v26, %v3101_v61  ;;  %v3104_v8 = vmax.f32 %v3050_v38, 0.0  ;;  %v3314_v10 = vmax.f32 %v3260_v33, 0.0 }
 0x1af   : > { %v3042_v16 = vadd.f32 %v7031_v27, %v3041_v12  ;;  %v3252_v21 = vadd.f32 %v7031_v27, %v3251_v13  ;;  %v5689_v46 = vpop.f32.mrf.mxu0  ;;  %v5709_v59 = vpop.f32.mrf.mxu1 }
 0x1b0   : > { %v7075_v52 = vmax.f32 %v3117_v39, %v3311_v44  ;;  %v3120_v24 = vmax.f32 %v6995_v0, %v3104_v8  ;;  %v3063_v19 = vadd.f32 %v7031_v27, %v5689_v46  ;;  %v3273_v54 = vadd.f32 %v7031_v27, %v5709_v59 }
 0x1b1   : > { %v3102_v23 = vmax.f32 %v3042_v16, 0.0  ;;  %v3054_v25 = vpop.f32.mrf.mxu0  ;;  %v3264_v26 = vpop.f32.mrf.mxu1  ;;  %v3312_v36 = vmax.f32 %v3252_v21, 0.0 }
 0x1b2   : > { %v7080_v20 = vmax.f32 %v3120_v24, %v3314_v10  ;;  %v3107_v29 = vmax.f32 %v3063_v19, 0.0  ;;  %v3317_v18 = vmax.f32 %v3273_v54, 0.0  ;;  %v3055_v34 = vadd.f32 %v7031_v27, %v3054_v25 }
 0x1b3   : > { %v3118_v14 = vmax.f32 %v7003_v50, %v3102_v23  ;;  %v3265_v4 = vadd.f32 %v7031_v27, %v3264_v26  ;;  %v5690_v30 = vpop.f32.mrf.mxu0  ;;  %v5710_v0 = vpop.f32.mrf.mxu1 }
 0x1b4   : > { %v3123_v37 = vmax.f32 %v7005_v53, %v3107_v29  ;;  %v3105_v15 = vmax.f32 %v3055_v34, 0.0  ;;  %v3066_v41 = vadd.f32 %v7031_v27, %v5690_v30  ;;  %v3276_v11 = vadd.f32 %v7031_v27, %v5710_v0 }
 0x1b5   : > { %v7088_v28 = vmax.f32 %v3118_v14, %v3312_v36  ;;  %v3057_v47 = vpop.f32.mrf.mxu0  ;;  %v3267_v35 = vpop.f32.mrf.mxu1  ;;  %v3315_v45 = vmax.f32 %v3265_v4, 0.0 }
 0x1b6   : > { %v7090_v22 = vmax.f32 %v3123_v37, %v3317_v18  ;;  %v3121_v50 = vmax.f32 %v7010_v5, %v3105_v15  ;;  %v3108_v48 = vmax.f32 %v3066_v41, 0.0  ;;  %v3318_v51 = vmax.f32 %v3276_v11, 0.0 }
 0x1b7   : > { %v3058_v7 = vadd.f32 %v7031_v27, %v3057_v47  ;;  %v3268_v53 = vadd.f32 %v7031_v27, %v3267_v35  ;;  %v5693_v42 = vpop.f32.mrf.mxu0  ;;  %v5713_v56 = vpop.f32.mrf.mxu1 }
 0x1b8   : > { %v7095_v31 = vmax.f32 %v3121_v50, %v3315_v45  ;;  %v3124_v62 = vmax.f32 %v7015_v9, %v3108_v48  ;;  %v3079_v58 = vadd.f32 %v7031_v27, %v5693_v42  ;;  %v3289_v43 = vadd.f32 %v7031_v27, %v5713_v56 }
 0x1b9   : > { %v3106_v60 = vmax.f32 %v3058_v7, 0.0  ;;  %v3070_v63 = vpop.f32.mrf.mxu0  ;;  %v3280_v5 = vpop.f32.mrf.mxu1  ;;  %v3316_v39 = vmax.f32 %v3268_v53, 0.0 }
 0x1ba   : > { %v7100_v61 = vmax.f32 %v3124_v62, %v3318_v51  ;;  %v3111_v38 = vmax.f32 %v3079_v58, 0.0  ;;  %v3321_v33 = vmax.f32 %v3289_v43, 0.0  ;;  %v3071_v12 = vadd.f32 %v7031_v27, %v3070_v63 }
 0x1bb   : > { %v3122_v13 = vmax.f32 %v7023_v57, %v3106_v60  ;;  %v3281_v44 = vadd.f32 %v7031_v27, %v3280_v5  ;;  %v5694_v8 = vpop.f32.mrf.mxu0  ;;  %v5714_v9 = vpop.f32.mrf.mxu1 }
 0x1bc   : > { %v3127_v10 = vmax.f32 %v7025_v1, %v3111_v38  ;;  %v3109_v16 = vmax.f32 %v3071_v12, 0.0  ;;  %v3082_v21 = vadd.f32 %v7031_v27, %v5694_v8  ;;  %v3292_v46 = vadd.f32 %v7031_v27, %v5714_v9 }
 0x1bd   : > { %v7108_v59 = vmax.f32 %v3122_v13, %v3316_v39  ;;  %v3073_v24 = vpop.f32.mrf.mxu0  ;;  %v3283_v19 = vpop.f32.mrf.mxu1  ;;  %v3319_v23 = vmax.f32 %v3281_v44, 0.0 }
 0x1be   : > { %v7110_v54 = vmax.f32 %v3127_v10, %v3321_v33  ;;  %v3125_v57 = vmax.f32 %v7035_v40, %v3109_v16  ;;  %v3112_v25 = vmax.f32 %v3082_v21, 0.0  ;;  %v3322_v26 = vmax.f32 %v3292_v46, 0.0 }
 0x1bf   : > { %v3074_v29 = vadd.f32 %v7031_v27, %v3073_v24  ;;  %v3284_v1 = vadd.f32 %v7031_v27, %v3283_v19  ;;  %v5697_v18 = vpop.f32.mrf.mxu0  ;;  %v5717_v34 = vpop.f32.mrf.mxu1 }
 0x1c0   : > { %v7115_v14 = vmax.f32 %v3125_v57, %v3319_v23  ;;  %v3128_v36 = vmax.f32 %v7040_v3, %v3112_v25  ;;  %v3095_v4 = vadd.f32 %v7031_v27, %v5697_v18  ;;  %v3305_v30 = vadd.f32 %v7031_v27, %v5717_v34 }
 0x1c1   : > { %v3110_v0 = vmax.f32 %v3074_v29, 0.0  ;;  %v3086_v37 = vpop.f32.mrf.mxu0  ;;  %v3296_v40 = vpop.f32.mrf.mxu1  ;;  %v3320_v50 = vmax.f32 %v3284_v1, 0.0 }
 0x1c2   : > { %v7120_v15 = vmax.f32 %v3128_v36, %v3322_v26  ;;  %v3115_v41 = vmax.f32 %v3095_v4, 0.0  ;;  %v3325_v11 = vmax.f32 %v3305_v30, 0.0  ;;  %v3087_v47 = vadd.f32 %v7031_v27, %v3086_v37 }
 0x1c3   : > { %v3126_v35 = vmax.f32 %v7048_v2, %v3110_v0  ;;  %v3297_v45 = vadd.f32 %v7031_v27, %v3296_v40  ;;  %v5698_v48 = vpop.f32.mrf.mxu0  ;;  %v5718_v3 = vpop.f32.mrf.mxu1 }
 0x1c4   : > { %v3131_v51 = vmax.f32 %v7050_v6, %v3115_v41  ;;  %v3113_v7 = vmax.f32 %v3087_v47, 0.0  ;;  %v3098_v53 = vadd.f32 %v7031_v27, %v5698_v48  ;;  %v3308_v42 = vadd.f32 %v7031_v27, %v5718_v3 }
 0x1c5   : > { %v7128_v56 = vmax.f32 %v3126_v35, %v3320_v50  ;;  %v3089_v62 = vpop.f32.mrf.mxu0  ;;  %v3299_v58 = vpop.f32.mrf.mxu1  ;;  %v3323_v60 = vmax.f32 %v3297_v45, 0.0 }
 0x1c6   : > { %v7130_v43 = vmax.f32 %v3131_v51, %v3325_v11  ;;  %v3129_v2 = vmax.f32 %v7055_v17, %v3113_v7  ;;  %v3116_v63 = vmax.f32 %v3098_v53, 0.0  ;;  %v3090_v5 = vadd.f32 %v7031_v27, %v3089_v62 }
 0x1c7   : > { %v3300_v38 = vadd.f32 %v7031_v27, %v3299_v58  ;;  %v5725_v6 = vpop.f32.mrf.mxu0  ;;  %v5745_v33 = vpop.f32.mrf.mxu1  ;;  %v3326_v39 = vmax.f32 %v3308_v42, 0.0 }
 0x1c8   : > { %v7135_v12 = vmax.f32 %v3129_v2, %v3323_v60  ;;  %v3132_v13 = vmax.f32 %v7060_v32, %v3116_v63  ;;  %v3114_v44 = vmax.f32 %v3090_v5, 0.0  ;;  %v3467_v11 = vadd.f32 %v7031_v27, %v5725_v6 }
 0x1c9   : > { %v3458_v8 = vpop.f32.mrf.mxu0  ;;  %v3668_v9 = vpop.f32.mrf.mxu1  ;;  %v3324_v16 = vmax.f32 %v3300_v38, 0.0  ;;  %v3677_v3 = vadd.f32 %v7031_v27, %v5745_v33 }
 0x1ca   : > { %v7138_v10 = vmax.f32 %v3132_v13, %v3326_v39  ;;  %v3130_v17 = vmax.f32 %v7068_v49, %v3114_v44  ;;  %v3459_v47 = vadd.f32 %v7031_v27, %v3458_v8  ;;  %v3523_v42 = vmax.f32 %v3467_v11, 0.0 }
 0x1cb   : > { %v5726_v21 = vpop.f32.mrf.mxu0  ;;  %v5746_v46 = vpop.f32.mrf.mxu1  ;;  %v3669_v62 = vadd.f32 %v7031_v27, %v3668_v9  ;;  %v3733_v39 = vmax.f32 %v3677_v3, 0.0 }
 0x1cc   : > { %v7141_v24 = vmax.f32 %v3130_v17, %v3324_v16  ;;  %v3470_v35 = vadd.f32 %v7031_v27, %v5726_v21  ;;  %v3521_v2 = vmax.f32 %v3459_v47, 0.0  ;;  %v3680_v63 = vadd.f32 %v7031_v27, %v5746_v46 }
 0x1cd   : > { %v3461_v19 = vpop.f32.mrf.mxu0  ;;  %v3671_v57 = vpop.f32.mrf.mxu1  ;;  %v3539_v16 = vmax.f32 %v7070_v55, %v3523_v42  ;;  %v3731_v21 = vmax.f32 %v3669_v62, 0.0 }
 0x1ce   : > { %v3462_v48 = vadd.f32 %v7031_v27, %v3461_v19  ;;  %v3524_v60 = vmax.f32 %v3470_v35, 0.0  ;;  %v3672_v33 = vadd.f32 %v7031_v27, %v3671_v57  ;;  %v3734_v57 = vmax.f32 %v3680_v63, 0.0 }
 0x1cf   : > { %v5729_v23 = vpop.f32.mrf.mxu0  ;;  %v5749_v25 = vpop.f32.mrf.mxu1 }
 0x1d0   : > { %v3483_v51 = vadd.f32 %v7031_v27, %v5729_v23  ;;  %v3522_v6 = vmax.f32 %v3462_v48, 0.0  ;;  %v3693_v13 = vadd.f32 %v7031_v27, %v5749_v25  ;;  %v3537_v23 = vmax.f32 %v7075_v52, %v3521_v2 }
 0x1d1   : > { %v3474_v26 = vpop.f32.mrf.mxu0  ;;  %v3684_v29 = vpop.f32.mrf.mxu1  ;;  %v3732_v35 = vmax.f32 %v3672_v33, 0.0  ;;  %v7196_v2 = vmax.f32 %v3539_v16, %v3733_v39 }
 0x1d2   : > { %v3475_v58 = vadd.f32 %v7031_v27, %v3474_v26  ;;  %v3527_v44 = vmax.f32 %v3483_v51, 0.0  ;;  %v3540_v26 = vmax.f32 %v7080_v20, %v3524_v60  ;;  %v3737_v48 = vmax.f32 %v3693_v13, 0.0 }
 0x1d3   : > { %v5730_v32 = vpop.f32.mrf.mxu0  ;;  %v5750_v1 = vpop.f32.mrf.mxu1  ;;  %v3685_v55 = vadd.f32 %v7031_v27, %v3684_v29  ;;  %v7198_v29 = vmax.f32 %v3537_v23, %v3731_v21 }
 0x1d4   : > { %v3486_v8 = vadd.f32 %v7031_v27, %v5730_v32  ;;  %v3525_v46 = vmax.f32 %v3475_v58, 0.0  ;;  %v3538_v32 = vmax.f32 %v7088_v28, %v3522_v6  ;;  %v3543_v3 = vmax.f32 %v7090_v22, %v3527_v44 }
 0x1d5   : > { %v3477_v18 = vpop.f32.mrf.mxu0  ;;  %v7143_v34 = vpop.f32.mrf.mxu1  ;;  %v7200_v22 = vmax.f32 %v3540_v26, %v3734_v57  ;;  %v3735_v6 = vmax.f32 %v3685_v55, 0.0 }
 0x1d6   : > { %v3478_v19 = vadd.f32 %v7031_v27, %v3477_v18  ;;  %v3528_v51 = vmax.f32 %v3486_v8, 0.0  ;;  %v3696_v18 = vadd.f32 %v7031_v27, %v5750_v1  ;;  %v7206_v63 = vmax.f32 %v3538_v32, %v3732_v35 }
 0x1d7   : > { %v5733_v36 = vpop.f32.mrf.mxu0  ;;  %v5753_v4 = vpop.f32.mrf.mxu1 }
 0x1d8   : > { %v3499_v25 = vadd.f32 %v7031_v27, %v5733_v36  ;;  %v3541_v36 = vmax.f32 %v7095_v31, %v3525_v46  ;;  %v3526_v62 = vmax.f32 %v3478_v19, 0.0  ;;  %v3709_v28 = vadd.f32 %v7031_v27, %v5753_v4 }
 0x1d9   : > { %v3490_v30 = vpop.f32.mrf.mxu0  ;;  %v7145_v49 = vpop.f32.mrf.mxu1  ;;  %v3688_v31 = vadd.f32 %v7031_v27, %v7143_v34  ;;  %v3544_v33 = vmax.f32 %v7100_v61, %v3528_v51  ;;  %v3738_v13 = vmax.f32 %v3696_v18, 0.0 }
 0x1da   : > { %v3491_v52 = vadd.f32 %v7031_v27, %v3490_v30  ;;  %v3531_v1 = vmax.f32 %v3499_v25, 0.0  ;;  %v7216_v16 = vmax.f32 %v3541_v36, %v3735_v6  ;;  %v3542_v21 = vmax.f32 %v7108_v59, %v3526_v62 }
 0x1db   : > { %v5734_v0 = vpop.f32.mrf.mxu0  ;;  %v7147_v37 = vpop.f32.mrf.mxu1  ;;  %v3741_v46 = vmax.f32 %v3709_v28, 0.0  ;;  %v3701_v34 = vadd.f32 %v7031_v27, %v7145_v49  ;;  %v3736_v25 = vmax.f32 %v3688_v31, 0.0  ;;  %v7232_v35 = vmax.f32 %v3544_v33, %v3738_v13 }
 0x1dc   : > { %v3502_v58 = vadd.f32 %v7031_v27, %v5734_v0  ;;  %v7211_v0 = vmax.f32 %v3543_v3, %v3737_v48  ;;  %v3529_v39 = vmax.f32 %v3491_v52, 0.0  ;;  %v3547_v23 = vmax.f32 %v7110_v54, %v3531_v1 }
 0x1dd   : > { %v3493_v40 = vpop.f32.mrf.mxu0  ;;  %v7149_v41 = vpop.f32.mrf.mxu1  ;;  %v3712_v59 = vadd.f32 %v7031_v27, %v7147_v37  ;;  %v7240_v3 = vmax.f32 %v3542_v21, %v3736_v25 }
 0x1de   : > { %v3494_v4 = vadd.f32 %v7031_v27, %v3493_v40  ;;  %v3532_v19 = vmax.f32 %v3502_v58, 0.0  ;;  %v3545_v49 = vmax.f32 %v7115_v14, %v3529_v39  ;;  %v7246_v18 = vmax.f32 %v3547_v23, %v3741_v46 }
 0x1df   : > { %v7154_v50 = vpop.f32.mrf.mxu0  ;;  %v7156_v45 = vpop.f32.mrf.mxu1  ;;  %v3739_v14 = vmax.f32 %v3701_v34, 0.0 }
 0x1e0   : > { %v3515_v40 = vadd.f32 %v7031_v27, %v7154_v50  ;;  %v3530_v32 = vmax.f32 %v3494_v4, 0.0  ;;  %v3704_v50 = vadd.f32 %v7031_v27, %v7149_v41  ;;  %v3548_v37 = vmax.f32 %v7120_v15, %v3532_v19 }
 0x1e1   : > { %v7161_v7 = vpop.f32.mrf.mxu0  ;;  %v7163_v53 = vpop.f32.mrf.mxu1  ;;  %v3725_v51 = vadd.f32 %v7031_v27, %v7156_v45  ;;  %v7253_v1 = vmax.f32 %v3545_v49, %v3739_v14 }
 0x1e2   : > { %v3507_v61 = vadd.f32 %v7031_v27, %v7161_v7  ;;  %v3535_v52 = vmax.f32 %v3515_v40, 0.0  ;;  %v3546_v28 = vmax.f32 %v7128_v56, %v3530_v32  ;;  %v3717_v58 = vadd.f32 %v7031_v27, %v7163_v53 }
 0x1e3   : > { %v7168_v5 = vpop.f32.mrf.mxu0  ;;  %v7170_v38 = vpop.f32.mrf.mxu1  ;;  %v3740_v45 = vmax.f32 %v3704_v50, 0.0  ;;  %v3745_v13 = vmax.f32 %v3725_v51, 0.0 }
 0x1e4   : > { %v3518_v54 = vadd.f32 %v7031_v27, %v7168_v5  ;;  %v3533_v36 = vmax.f32 %v3507_v61, 0.0  ;;  %v3551_v53 = vmax.f32 %v7130_v43, %v3535_v52  ;;  %v3743_v40 = vmax.f32 %v3717_v58, 0.0 }
 0x1e5   : > { %v3509_v9 = vpop.f32.mrf.mxu0  ;;  %v7175_v17 = vpop.f32.mrf.mxu1  ;;  %v7269_v34 = vmax.f32 %v3546_v28, %v3740_v45 }
 0x1e6   : > { %v3510_v7 = vadd.f32 %v7031_v27, %v3509_v9  ;;  %v3742_v9 = vmax.f32 %v3712_v59, 0.0  ;;  %v3536_v15 = vmax.f32 %v3518_v54, 0.0  ;;  %v3549_v21 = vmax.f32 %v7135_v12, %v3533_v36 }
 0x1e7   : > { %v5765_v11 = vpop.f32.mrf.mxu0  ;;  %v7182_v47 = vpop.f32.mrf.mxu1  ;;  %v3720_v46 = vadd.f32 %v7031_v27, %v7175_v17  ;;  %v7281_v50 = vmax.f32 %v3551_v53, %v3745_v13 }
 0x1e8   : > { %v3887_v5 = vadd.f32 %v7031_v27, %v5765_v11  ;;  %v3728_v11 = vadd.f32 %v7031_v27, %v7170_v38  ;;  %v3534_v6 = vmax.f32 %v3510_v7, 0.0  ;;  %v7259_v33 = vmax.f32 %v3548_v37, %v3742_v9 }
 0x1e9   : > { %v7189_v20 = vpop.f32.mrf.mxu0  ;;  %v7191_v42 = vpop.f32.mrf.mxu1  ;;  %v4097_v56 = vadd.f32 %v7031_v27, %v7182_v47  ;;  %v3552_v61 = vmax.f32 %v7138_v10, %v3536_v15  ;;  %v3744_v7 = vmax.f32 %v3720_v46, 0.0 }
 0x1ea   : > { %v3943_v39 = vmax.f32 %v3887_v5, 0.0  ;;  %v3879_v38 = vadd.f32 %v7031_v27, %v7189_v20  ;;  %v3746_v25 = vmax.f32 %v3728_v11, 0.0  ;;  %v3550_v43 = vmax.f32 %v7141_v24, %v3534_v6 }
 0x1eb   : > { %v7202_v60 = vpop.f32.mrf.mxu0  ;;  %v7204_v30 = vpop.f32.mrf.mxu1  ;;  %v4153_v54 = vmax.f32 %v4097_v56, 0.0  ;;  %v4089_v49 = vadd.f32 %v7031_v27, %v7191_v42 }
 0x1ec   : > { %v3890_v47 = vadd.f32 %v7031_v27, %v7202_v60  ;;  %v3959_v20 = vmax.f32 %v7196_v2, %v3943_v39  ;;  %v7283_v60 = vmax.f32 %v3549_v21, %v3743_v40  ;;  %v3941_v24 = vmax.f32 %v3879_v38, 0.0 }
 0x1ed   : > { %v3881_v44 = vpop.f32.mrf.mxu0  ;;  %v7214_v8 = vpop.f32.mrf.mxu1  ;;  %v7285_v51 = vmax.f32 %v3552_v61, %v3746_v25  ;;  %v4100_v2 = vadd.f32 %v7031_v27, %v7204_v30  ;;  %v7290_v14 = vmax.f32 %v3550_v43, %v3744_v7  ;;  %v4151_v58 = vmax.f32 %v4089_v49, 0.0 }
 0x1ee   : > { %v3882_v12 = vadd.f32 %v7031_v27, %v3881_v44  ;;  %v7294_v28 = vmax.f32 %v3959_v20, %v4153_v54  ;;  %v3957_v11 = vmax.f32 %v7198_v29, %v3941_v24  ;;  %v4092_v30 = vadd.f32 %v7031_v27, %v7214_v8 }
 0x1ef   : > { %v5769_v26 = vpop.f32.mrf.mxu0  ;;  %v7226_v57 = vpop.f32.mrf.mxu1  ;;  %v4154_v56 = vmax.f32 %v4100_v2, 0.0 }
 0x1f0   : > { %v3903_v17 = vadd.f32 %v7031_v27, %v5769_v26  ;;  %v3944_v26 = vmax.f32 %v3890_v47, 0.0  ;;  %v3942_v42 = vmax.f32 %v3882_v12, 0.0  ;;  %v4113_v52 = vadd.f32 %v7031_v27, %v7226_v57 }
 0x1f1   : > { %v3894_v48 = vpop.f32.mrf.mxu0  ;;  %v7238_v55 = vpop.f32.mrf.mxu1  ;;  %v4152_v25 = vmax.f32 %v4092_v30, 0.0 }
 0x1f2   : > { %v3895_v10 = vadd.f32 %v7031_v27, %v3894_v48  ;;  %v3947_v48 = vmax.f32 %v3903_v17, 0.0  ;;  %v3960_v57 = vmax.f32 %v7200_v22, %v3944_v26  ;;  %v4105_v53 = vadd.f32 %v7031_v27, %v7238_v55 }
 0x1f3   : > { %v5770_v41 = vpop.f32.mrf.mxu0  ;;  %v7248_v62 = vpop.f32.mrf.mxu1  ;;  %v4157_v46 = vmax.f32 %v4113_v52, 0.0  ;;  %v4167_v55 = vmax.f32 %v3957_v11, %v4151_v58 }
 0x1f4   : > { %v3906_v5 = vadd.f32 %v7031_v27, %v5770_v41  ;;  %v3945_v15 = vmax.f32 %v3895_v10, 0.0  ;;  %v3963_v29 = vmax.f32 %v7211_v0, %v3947_v48  ;;  %v4116_v22 = vadd.f32 %v7031_v27, %v7248_v62 }
 0x1f5   : > { %v3897_v31 = vpop.f32.mrf.mxu0  ;;  %v7257_v4 = vpop.f32.mrf.mxu1  ;;  %v4170_v17 = vmax.f32 %v3960_v57, %v4154_v56 }
 0x1f6   : > { %v3898_v45 = vadd.f32 %v7031_v27, %v3897_v31  ;;  %v3948_v21 = vmax.f32 %v3906_v5, 0.0  ;;  %v3958_v31 = vmax.f32 %v7206_v63, %v3942_v42  ;;  %v3961_v40 = vmax.f32 %v7216_v16, %v3945_v15 }
 0x1f7   : > { %v5773_v19 = vpop.f32.mrf.mxu0  ;;  %v5793_v23 = vpop.f32.mrf.mxu1  ;;  %v4108_v16 = vadd.f32 %v7031_v27, %v7257_v4  ;;  %v7323_v62 = vmax.f32 %v3963_v29, %v4157_v46 }
 0x1f8   : > { %v3919_v41 = vadd.f32 %v7031_v27, %v5773_v19  ;;  %v3946_v61 = vmax.f32 %v3898_v45, 0.0  ;;  %v4129_v47 = vadd.f32 %v7031_v27, %v5793_v23  ;;  %v3964_v20 = vmax.f32 %v7232_v35, %v3948_v21 }
 0x1f9   : > { %v3910_v59 = vpop.f32.mrf.mxu0  ;;  %v4120_v32 = vpop.f32.mrf.mxu1  ;;  %v7321_v54 = vmax.f32 %v3958_v31, %v4152_v25  ;;  %v4156_v58 = vmax.f32 %v4108_v16, 0.0 }
 0x1fa   : > { %v3911_v6 = vadd.f32 %v7031_v27, %v3910_v59  ;;  %v3951_v43 = vmax.f32 %v3919_v41, 0.0  ;;  %v4155_v59 = vmax.f32 %v4105_v53, 0.0  ;;  %v4121_v23 = vadd.f32 %v7031_v27, %v4120_v32 }
 0x1fb   : > { %v5774_v37 = vpop.f32.mrf.mxu0  ;;  %v5794_v44 = vpop.f32.mrf.mxu1  ;;  %v3962_v26 = vmax.f32 %v7240_v3, %v3946_v61  ;;  %v4161_v35 = vmax.f32 %v4129_v47, 0.0 }
 0x1fc   : > { %v3922_v8 = vadd.f32 %v7031_v27, %v5774_v37  ;;  %v3949_v63 = vmax.f32 %v3911_v6, 0.0  ;;  %v7330_v24 = vmax.f32 %v3961_v40, %v4155_v59  ;;  %v4158_v37 = vmax.f32 %v4116_v22, 0.0 }
 0x1fd   : > { %v3913_v36 = vpop.f32.mrf.mxu0  ;;  %v4123_v9 = vpop.f32.mrf.mxu1  ;;  %v3967_v2 = vmax.f32 %v7246_v18, %v3951_v43  ;;  %v4132_v5 = vadd.f32 %v7031_v27, %v5794_v44  ;;  %v4159_v3 = vmax.f32 %v4121_v23, 0.0  ;;  %v7348_v30 = vmax.f32 %v3962_v26, %v4156_v58 }
 0x1fe   : > { %v3952_v49 = vmax.f32 %v3922_v8, 0.0  ;;  %v3965_v4 = vmax.f32 %v7253_v1, %v3949_v63  ;;  %v3914_v42 = vadd.f32 %v7031_v27, %v3913_v36  ;;  %v7337_v52 = vmax.f32 %v3964_v20, %v4158_v37 }
 0x1ff   : > { %v5777_v13 = vpop.f32.mrf.mxu0  ;;  %v5797_v39 = vpop.f32.mrf.mxu1  ;;  %v7340_v15 = vadd.f32 %v7031_v27, %v4123_v9  ;;  %v7352_v57 = vmax.f32 %v3967_v2, %v4161_v35  ;;  %v4162_v53 = vmax.f32 %v4132_v5, 0.0 }
 0x200   : > { %v3968_v11 = vmax.f32 %v7259_v33, %v3952_v49  ;;  %v3935_v18 = vadd.f32 %v7031_v27, %v5777_v13  ;;  %v7346_v1 = vadd.f32 %v7031_v27, %v5797_v39  ;;  %v7354_v56 = vmax.f32 %v3965_v4, %v4159_v3 }
 0x201   : > { %v3926_v38 = vpop.f32.mrf.mxu0  ;;  %v7308_v19 = vpop.f32.mrf.mxu1  ;;  %v3950_v33 = vmax.f32 %v3914_v42, 0.0  ;;  %v4160_v39 = vmax.f32 %v7340_v15, 0.0 }
 0x202   : > { %v7359_v8 = vmax.f32 %v3968_v11, %v4162_v53  ;;  %v3955_v40 = vmax.f32 %v3935_v18, 0.0  ;;  %v4165_v22 = vmax.f32 %v7346_v1, 0.0  ;;  %v7364_v43 = vadd.f32 %v7031_v27, %v3926_v38 }
 0x203   : > { %v7314_v12 = vpop.f32.mrf.mxu0  ;;  %v7316_v0 = vpop.f32.mrf.mxu1  ;;  %v3966_v16 = vmax.f32 %v7269_v34, %v3950_v33  ;;  %v7376_v42 = vadd.f32 %v7031_v27, %v7308_v19 }
 0x204   : > { %v3938_v3 = vadd.f32 %v7031_v27, %v7314_v12 }
 0x205   : > { %v7326_v10 = vpop.f32.mrf.mxu0  ;;  %v7328_v7 = vpop.f32.mrf.mxu1 }
 0x207   : > { %v5805_v32 = vpop.f32.mrf.mxu0  ;;  %v5825_v48 = vpop.f32.mrf.mxu1 }
 0x208   : > { %v4307_v45 = vadd.f32 %v7031_v27, %v5805_v32  ;;  %v4517_v6 = vadd.f32 %v7031_v27, %v5825_v48 }
 0x209   : > { %v4298_v44 = vpop.f32.mrf.mxu0  ;;  %v4508_v36 = vpop.f32.mrf.mxu1 }
 0x20a   : > { %v4363_v41 = vmax.f32 %v4307_v45, 0.0  ;;  %v4299_v9 = vadd.f32 %v7031_v27, %v4298_v44  ;;  %v4509_v61 = vadd.f32 %v7031_v27, %v4508_v36  ;;  %v4573_v59 = vmax.f32 %v4517_v6, 0.0 }
 0x20b   : > { %v5806_v21 = vpop.f32.mrf.mxu0  ;;  %v5826_v13 = vpop.f32.mrf.mxu1 }
 0x20c   : > { %v4361_v31 = vmax.f32 %v4299_v9, 0.0  ;;  %v4310_v29 = vadd.f32 %v7031_v27, %v5806_v21  ;;  %v4520_v46 = vadd.f32 %v7031_v27, %v5826_v13  ;;  %v4379_v63 = vmax.f32 %v7294_v28, %v4363_v41 }
 0x20d   : > { %v4301_v47 = vpop.f32.mrf.mxu0  ;;  %v4511_v25 = vpop.f32.mrf.mxu1  ;;  %v3971_v28 = vmax.f32 %v7281_v50, %v3955_v40  ;;  %v4571_v34 = vmax.f32 %v4509_v61, 0.0  ;;  %v4176_v40 = vmax.f32 %v3966_v16, %v4160_v39 }
 0x20e   : > { %v4364_v20 = vmax.f32 %v4310_v29, 0.0  ;;  %v4377_v23 = vmax.f32 %v4167_v55, %v4361_v31  ;;  %v4302_v49 = vadd.f32 %v7031_v27, %v4301_v47  ;;  %v4512_v37 = vadd.f32 %v7031_v27, %v4511_v25 }
 0x20f   : > { %v5809_v26 = vpop.f32.mrf.mxu0  ;;  %v5829_v35 = vpop.f32.mrf.mxu1  ;;  %v4574_v4 = vmax.f32 %v4520_v46, 0.0  ;;  %v4589_v58 = vmax.f32 %v4379_v63, %v4573_v59  ;;  %v7389_v29 = vadd.f32 %v7031_v27, %v7316_v0 }
 0x210   : > { %v4380_v2 = vmax.f32 %v4170_v17, %v4364_v20  ;;  %v4323_v5 = vadd.f32 %v7031_v27, %v5809_v26  ;;  %v4533_v38 = vadd.f32 %v7031_v27, %v5829_v35  ;;  %v4362_v55 = vmax.f32 %v4302_v49, 0.0 }
 0x211   : > { %v4314_v32 = vpop.f32.mrf.mxu0  ;;  %v4524_v48 = vpop.f32.mrf.mxu1  ;;  %v4587_v11 = vmax.f32 %v4377_v23, %v4571_v34  ;;  %v4572_v50 = vmax.f32 %v4512_v37, 0.0  ;;  %v4163_v49 = vmax.f32 %v7376_v42, 0.0  ;;  %v3956_v37 = vmax.f32 %v3938_v3, 0.0 }
 0x212   : > { %v4590_v15 = vmax.f32 %v4380_v2, %v4574_v4  ;;  %v4367_v45 = vmax.f32 %v4323_v5, 0.0  ;;  %v4315_v17 = vadd.f32 %v7031_v27, %v4314_v32  ;;  %v4378_v18 = vmax.f32 %v7321_v54, %v4362_v55 }
 0x213   : > { %v5810_v44 = vpop.f32.mrf.mxu0  ;;  %v5830_v19 = vpop.f32.mrf.mxu1  ;;  %v4577_v41 = vmax.f32 %v4533_v38, 0.0  ;;  %v4525_v21 = vadd.f32 %v7031_v27, %v4524_v48  ;;  %v3953_v54 = vmax.f32 %v7364_v43, 0.0  ;;  %v3930_v38 = vadd.f32 %v7031_v27, %v7326_v10 }
 0x214   : > { %v5320_v36 = vpack.c.bf16 %v4590_v15, %v4589_v58  ;;  %v4365_v6 = vmax.f32 %v4315_v17, 0.0  ;;  %v4326_v9 = vadd.f32 %v7031_v27, %v5810_v44  ;;  %v4588_v53 = vmax.f32 %v4378_v18, %v4572_v50 }
 0x215   : > { %v4383_v33 = vmax.f32 %v7323_v62, %v4367_v45  ;;  %v4536_v13 = vadd.f32 %v7031_v27, %v5830_v19  ;;  %v4317_v12 = vpop.f32.mrf.mxu0  ;;  %v4527_v31 = vpop.f32.mrf.mxu1  ;;  %v4575_v35 = vmax.f32 %v4525_v21, 0.0  ;;  %v3972_v3 = vmax.f32 %v7285_v51, %v3956_v37  ;;  %v6013_v51 = vld [vmem:[%s7484_s2] ss:$0 sm:$0xff] }
 0x216   : > { %5352 = vst [vmem:[%s7393_s29 + $0x8] sm:$0xff] %v5320_v36   ;;  %v4368_v46 = vmax.f32 %v4326_v9, 0.0  ;;  %v4318_v62 = vadd.f32 %v7031_v27, %v4317_v12  ;;  %v5315_v61 = vpack.c.bf16 %v4588_v53, %v4587_v11  ;;  %v4381_v47 = vmax.f32 %v7330_v24, %v4365_v6 }
 0x217   : > { %v4528_v25 = vadd.f32 %v7031_v27, %v4527_v31  ;;  %v5813_v43 = vpop.f32.mrf.mxu0  ;;  %v5833_v63 = vpop.f32.mrf.mxu1  ;;  %v4578_v59 = vmax.f32 %v4536_v13, 0.0  ;;  %v4593_v26 = vmax.f32 %v4383_v33, %v4577_v41  ;;  %v4166_v11 = vmax.f32 %v7389_v29, 0.0 }
 0x218   : > { %v4384_v0 = vmax.f32 %v7337_v52, %v4368_v46  ;;  %v4366_v20 = vmax.f32 %v4318_v62, 0.0  ;;  %v4339_v23 = vadd.f32 %v7031_v27, %v5813_v43  ;;  %5316 = vst [vmem:[%s7393_s29] sm:$0xff] %v5315_v61   ;;  %v4181_v52 = vmax.f32 %v3971_v28, %v4165_v22 }
 0x219   : > { %v4330_v39 = vpop.f32.mrf.mxu0  ;;  %v4540_v16 = vpop.f32.mrf.mxu1  ;;  %v4576_v4 = vmax.f32 %v4528_v25, 0.0  ;;  %v4549_v42 = vadd.f32 %v7031_v27, %v5833_v63  ;;  %v4591_v48 = vmax.f32 %v4381_v47, %v4575_v35  ;;  %v3954_v9 = vmax.f32 %v3930_v38, 0.0 }
 0x21a   : > { %v4594_v2 = vmax.f32 %v4384_v0, %v4578_v59  ;;  %v4382_v24 = vmax.f32 %v7348_v30, %v4366_v20  ;;  %v4331_v5 = vadd.f32 %v7031_v27, %v4330_v39  ;;  %v4371_v34 = vmax.f32 %v4339_v23, 0.0 }
 0x21b   : > { %v5814_v55 = vpop.f32.mrf.mxu0  ;;  %v5834_v32 = vpop.f32.mrf.mxu1  ;;  %v3969_v30 = vmax.f32 %v7283_v60, %v3953_v54  ;;  %v4541_v17 = vadd.f32 %v7031_v27, %v4540_v16  ;;  %v4581_v60 = vmax.f32 %v4549_v42, 0.0  ;;  %v4182_v59 = vmax.f32 %v3972_v3, %v4166_v11 }
 0x21c   : > { %v5330_v58 = vpack.c.bf16 %v4594_v2, %v4593_v26  ;;  %v4592_v15 = vmax.f32 %v4382_v24, %v4576_v4  ;;  %v4369_v45 = vmax.f32 %v4331_v5, 0.0  ;;  %v4342_v1 = vadd.f32 %v7031_v27, %v5814_v55 }
 0x21d   : > { %v4552_v22 = vadd.f32 %v7031_v27, %v5834_v32  ;;  %v4333_v10 = vpop.f32.mrf.mxu0  ;;  %v4543_v28 = vpop.f32.mrf.mxu1  ;;  %v4387_v44 = vmax.f32 %v7352_v57, %v4371_v34  ;;  %v4579_v13 = vmax.f32 %v4541_v17, 0.0  ;;  %v4179_v47 = vmax.f32 %v3969_v30, %v4163_v49 }
 0x21e   : > { %5354 = vst [vmem:[%s7393_s29 + $0x18] sm:$0xff] %v5330_v58   ;;  %v5325_v18 = vpack.c.bf16 %v4592_v15, %v4591_v48  ;;  %v4334_v50 = vadd.f32 %v7031_v27, %v4333_v10  ;;  %v4372_v19 = vmax.f32 %v4342_v1, 0.0  ;;  %v4544_v36 = vadd.f32 %v7031_v27, %v4543_v28 }
 0x21f   : > { %v5817_v41 = vpop.f32.mrf.mxu0  ;;  %v5837_v6 = vpop.f32.mrf.mxu1  ;;  %v4385_v53 = vmax.f32 %v7354_v56, %v4369_v45  ;;  %v4582_v57 = vmax.f32 %v4552_v22, 0.0  ;;  %v4140_v56 = vadd.f32 %v6013_v51, %v7328_v7  ;;  %v4597_v25 = vmax.f32 %v4387_v44, %v4581_v60 }
 0x220   : > { %5353 = vst [vmem:[%s7393_s29 + $0x10] sm:$0xff] %v5325_v18   ;;  %v4370_v33 = vmax.f32 %v4334_v50, 0.0  ;;  %v4355_v21 = vadd.f32 %v6013_v51, %v5817_v41  ;;  %v4388_v12 = vmax.f32 %v7359_v8, %v4372_v19  ;;  %v4565_v31 = vadd.f32 %v6013_v51, %v5837_v6 }
 0x221   : > { %v4346_v54 = vpop.f32.mrf.mxu0  ;;  %v4556_v29 = vpop.f32.mrf.mxu1  ;;  %v4580_v46 = vmax.f32 %v4544_v36, 0.0  ;;  %v4595_v20 = vmax.f32 %v4385_v53, %v4579_v13  ;;  %v3970_v37 = vmax.f32 %v7290_v14, %v3954_v9  ;;  %v4164_v4 = vmax.f32 %v4140_v56, 0.0 }
 0x222   : > { %v4386_v27 = vmax.f32 %v4176_v40, %v4370_v33  ;;  %v4375_v62 = vmax.f32 %v4355_v21, 0.0  ;;  %v4347_v61 = vadd.f32 %v6013_v51, %v4346_v54  ;;  %v4598_v43 = vmax.f32 %v4388_v12, %v4582_v57 }
 0x223   : > { %v5818_v63 = vpop.f32.mrf.mxu0  ;;  %v5838_v0 = vpop.f32.mrf.mxu1  ;;  %v4585_v7 = vmax.f32 %v4565_v31, 0.0  ;;  %v4557_v5 = vadd.f32 %v6013_v51, %v4556_v29  ;;  %v4180_v55 = vmax.f32 %v3970_v37, %v4164_v4 }
 0x224   : > { %v4596_v23 = vmax.f32 %v4386_v27, %v4580_v46  ;;  %v4358_v8 = vadd.f32 %v6013_v51, %v5818_v63  ;;  %v5340_v26 = vpack.c.bf16 %v4598_v43, %v4597_v25  ;;  %v4373_v40 = vmax.f32 %v4347_v61, 0.0 }
 0x225   : > { %v4568_v35 = vadd.f32 %v6013_v51, %v5838_v0  ;;  %v4349_v39 = vpop.f32.mrf.mxu0  ;;  %v4559_v16 = vpop.f32.mrf.mxu1  ;;  %v4391_v2 = vmax.f32 %v4181_v52, %v4375_v62  ;;  %v4583_v15 = vmax.f32 %v4557_v5, 0.0 }
 0x226   : > { %v5335_v49 = vpack.c.bf16 %v4596_v23, %v4595_v20  ;;  %v4376_v24 = vmax.f32 %v4358_v8, 0.0  ;;  %5356 = vst [vmem:[%s7393_s29 + $0x28] sm:$0xff] %v5340_v26   ;;  %v4350_v38 = vadd.f32 %v6013_v51, %v4349_v39  ;;  %v4560_v34 = vadd.f32 %v6013_v51, %v4559_v16 }
 0x227   : > { %v4586_v14 = vmax.f32 %v4568_v35, 0.0  ;;  %v4389_v32 = vmax.f32 %v4179_v47, %v4373_v40  ;;  %v4601_v58 = vmax.f32 %v4391_v2, %v4585_v7 }
 0x228   : > { %5355 = vst [vmem:[%s7393_s29 + $0x20] sm:$0xff] %v5335_v49   ;;  %v4392_v42 = vmax.f32 %v4182_v59, %v4376_v24  ;;  %v4374_v48 = vmax.f32 %v4350_v38, 0.0  ;;  %v4584_v30 = vmax.f32 %v4560_v34, 0.0 }
 0x229   : > { %v4599_v1 = vmax.f32 %v4389_v32, %v4583_v15 }
 0x22a   : > { %v4602_v52 = vmax.f32 %v4392_v42, %v4586_v14  ;;  %v4390_v45 = vmax.f32 %v4180_v55, %v4374_v48 }
 0x22c   : > { %v5350_v17 = vpack.c.bf16 %v4602_v52, %v4601_v58  ;;  %v4600_v22 = vmax.f32 %v4390_v45, %v4584_v30 }
 0x22e   : > { %5358 = vst [vmem:[%s7393_s29 + $0x38] sm:$0xff] %v5350_v17   ;;  %v5345_v10 = vpack.c.bf16 %v4600_v22, %v4599_v1 }
 0x230   : > { %5357 = vst [vmem:[%s7393_s29 + $0x30] sm:$0xff] %v5345_v10  }
 0x231   : > { %6027 = shalt.err (!%p6024_p5)
}
 0x232   : > { %s6028_s24 = scalar_lea.hbm %s7437_s10, 1024  ;;  %s6032_s27 = scalar_lea.hbm %s7485_s3, 8192 }
 0x233   : > { %p6029_p7 = scmp.ne.s32.totalorder %s7437_s10, %s6028_s24  ;;  %p6033_p11 = scmp.lt.s32.totalorder %s7437_s10, %s7485_s3 }
 0x234   : > { %p6034_p12 = scmp.lt.s32.totalorder %s6032_s27, %s6028_s24 }
 0x235   : > { %p6030_p9 = pnand %p6029_p7, %p6137_p6 }
 0x236   : > { %p6035_p13 = por %p6034_p12, %p6033_p11 }
 0x237   : > { %p6031_p10 = pneg %p6030_p9 }
 0x239   : > { %p6036_p0 = pnand %p6035_p13, %p6031_p10 }
 0x23b   : > { %6039 = shalt.err (!%p6036_p0)
}
 0x23c   : > { %s6077_s30 = smov 64   ;;  %s6078_s4 = smov 4  }
 0x23d   : > { %5839 = dma.vmem_to_hbm [thread:$0]  (%p6137_p6), %s7439_s7, 1024, %s7437_s10, %s4684_s11, %s6077_s30, %s6077_s30, %s6078_s4  }
 0x23e PF: > { %p5845_p1 = scmp.ge.s32.totalorder %s6074_s15, 2  ;;  %s4712_s5 = sand.u32 1, %s6062_s12  }
 0x23f   : > { %s4713_s8 = scalar_lea.sflag [#allocation4], %s4712_s5 }
 0x240   : > { %p5842_p2 = pnand %p5845_p1, %p6141_p8 }
 0x242   : > { %p5843_p3 = pneg %p5842_p2 }
 0x244   : > { %6057 = dma.done.wait (%p5843_p3), %s4713_s8, 1024  }
 0x245   : > { %6059 = vsyncadd (%p5843_p3), %s4713_s8, 4294966272  ;;  %p13_p4 = scmp.ge.s32.totalorder %s6122_s18, 10   ;;  %s7488_s12 = smov %s6066_s13 }
 0x246   : > { %s7489_s13 = smov %s6070_s14  ;;  %s7490_s14 = smov %s6135_s21 }
 0x247   : > { %s7491_s15 = smov %s6122_s18  ;;  %15 = sbr.rel (!%p13_p4) target bundleno = 3 (0x3), region = 128 }
 0x24c   :  { %4718 = vsyncpa [#allocation4], 1 }
 0x24d   :  { %4720 = vsyncpa [#allocation4 + $0x1], 1 }

</bundles_post_ra>
